<compile_context>
chip_gen: v7x
topology: tpu7x:2x2x1
jax: 0.10.0
libtpu: 0.0.40
codegen_flags: <defaults>
</compile_context>

<pallas_src>
import functools

import jax
import jax.numpy as jnp
from jax import lax
from jax.experimental import pallas as pl
from jax.experimental.pallas import tpu as pltpu


def _ceil_to(x, m):
    return -(-x // m) * m


# ----------------------------------------------------------------------------
# Strided-roll convention calibration (tiny probe kernels, cached per process).
# ----------------------------------------------------------------------------
_ROLL_MODE = {}


def _run_probe(fn, x):
    return jax.device_get(
        pl.pallas_call(fn, out_shape=jax.ShapeDtypeStruct(x.shape, x.dtype))(x))


def _strided_roll_mode():
    """Determine pltpu.roll(x, shift, 1, stride=..., stride_axis=0) semantics."""
    if "mode" in _ROLL_MODE:
        return _ROLL_MODE["mode"]
    mode = "fallback"
    try:
        n, rows, tq = 128, 8, 8
        x = jnp.broadcast_to(jnp.arange(n, dtype=jnp.float32)[None, :], (rows, n))

        def probe_pos(x_ref, o_ref):
            o_ref[...] = pltpu.roll(x_ref[...], n - tq, 1, stride=1, stride_axis=0)

        col0 = [int(v) for v in _run_probe(probe_pos, x)[:, 0]]
        if col0 == [(tq - r) % n for r in range(rows)]:
            # out[r, c] = in[(c - shift - r*stride) % n]  (jnp.roll-like)
            mode = "numpy"
        elif col0 == [(n - tq + r) % n for r in range(rows)]:
            # out[r, c] = in[(c + shift + r*stride) % n]; verify the exact
            # negative-stride pattern the kernel would use.
            def probe_neg(x_ref, o_ref):
                o_ref[...] = pltpu.roll(x_ref[...], tq, 1, stride=-1, stride_axis=0)

            col0n = [int(v) for v in _run_probe(probe_neg, x)[:, 0]]
            if col0n == [(tq - r) % n for r in range(rows)]:
                mode = "left"
    except Exception:
        mode = "fallback"
    _ROLL_MODE["mode"] = mode
    return mode


def _rel_shift_tile(bd_n, *, tq, klen, w_win, roll_mode):
    """out[i, k] = bd_n[i, k + tq - i]  for i in [0, tq), k in [0, klen).

    bd_n is the (tq, w_win) BD tile computed against the K_r window starting at
    row qlen - q_start - tq, so the per-row shift (tq - i) is static.  Since
    w_win >= klen + tq, no modular wrap reaches the kept region.
    """
    if roll_mode == "numpy":
        return pltpu.roll(bd_n, w_win - tq, 1, stride=1, stride_axis=0)[:, :klen]
    if roll_mode == "left":
        return pltpu.roll(bd_n, tq, 1, stride=-1, stride_axis=0)[:, :klen]
    # Fallback (strided roll unavailable): static per-row slices -- correct but
    # slow; only used if the probe failed on this backend.
    rows = [lax.slice(bd_n, (i, tq - i), (i + 1, tq - i + klen)) for i in range(tq)]
    return jnp.concatenate(rows, axis=0)


# ----------------------------------------------------------------------------
# Pallas kernel
# ----------------------------------------------------------------------------
def _xlnet_attn_kernel(q_ref, k_ref, v_ref, kr_ref, rwb_ref, rrb_ref,
                       hres_ref, wo_ref, gamma_ref, beta_ref, *rest,
                       n_head, klen, tq, w_win, eps, has_mask, roll_mode):
    if has_mask:
        mask_ref, out_ref = rest
    else:
        (out_ref,) = rest

    qi = pl.program_id(1)
    # K_r window for this query tile starts at row qlen - (qi + 1) * tq, a
    # multiple of tq, so the roll shift inside the window is static.
    s = (pl.num_programs(1) - 1 - qi) * tq
    if tq % 8 == 0:
        s = pl.multiple_of(s, 8)

    q = q_ref[...]                                        # (N, tq, D) f32, pre-scaled
    qw = (q + rwb_ref[...]).astype(jnp.bfloat16)          # q + r_w_bias (scaled)
    qr = (q + rrb_ref[...]).astype(jnp.bfloat16)          # q + r_r_bias (scaled)

    dn_qk = (((2,), (2,)), ((0,), (0,)))   # (N,m,D) x (N,n,D) -> (N,m,n)
    dn_pv = (((2,), (1,)), ((0,), (0,)))   # (N,m,k) x (N,k,D) -> (N,m,D)

    ac = lax.dot_general(qw, k_ref[...], dn_qk,
                         preferred_element_type=jnp.float32)          # (N, tq, klen)
    kr_win = kr_ref[:, pl.ds(s, w_win), :]                            # (N, w_win, D)
    bd = lax.dot_general(qr, kr_win, dn_qk,
                         preferred_element_type=jnp.float32)          # (N, tq, w_win)

    bd_shift = jnp.stack(
        [_rel_shift_tile(bd[n], tq=tq, klen=klen, w_win=w_win, roll_mode=roll_mode)
         for n in range(n_head)], axis=0)                             # (N, tq, klen)

    # ef == 0 (seg_mat is None); 1/sqrt(d_head) already folded into q / biases.
    score = ac + bd_shift
    if has_mask:
        score = score + mask_ref[...].astype(jnp.float32)  # additive -1e30*mask (bf16)
    score = score - jnp.max(score, axis=-1, keepdims=True)
    p = jnp.exp(score)
    p = p * pl.reciprocal(jnp.sum(p, axis=-1, keepdims=True), approx=True)
    # TODO(synk): attention dropout / head_mask are identity (eval mode, None).

    attn = lax.dot_general(p.astype(jnp.bfloat16), v_ref[...], dn_pv,
                           preferred_element_type=jnp.float32)        # (N, tq, D)
    attn_b = attn.astype(jnp.bfloat16)
    wo = wo_ref[...]                                                  # (N, D, H) bf16
    d_model = hres_ref.shape[-1]
    attn_out = jnp.zeros((tq, d_model), jnp.float32)
    for n in range(n_head):            # leading-dim slices only (no lane relayout)
        attn_out = attn_out + jnp.dot(attn_b[n], wo[n],
                                      preferred_element_type=jnp.float32)

    # residual + LayerNorm (torch default eps=1e-5, biased variance), f32.
    x = attn_out + hres_ref[...]
    mu = jnp.mean(x, axis=-1, keepdims=True)
    var = jnp.mean(jnp.square(x - mu), axis=-1, keepdims=True)
    out_ref[...] = ((x - mu) * lax.rsqrt(var + eps) * gamma_ref[...]
                    + beta_ref[...]).astype(out_ref.dtype)


# ----------------------------------------------------------------------------
# Tiling / VMEM budget helpers
# ----------------------------------------------------------------------------
def _q_tile_candidates(seq_len, cap):
    if seq_len <= cap:
        return [seq_len]
    cands = []
    for t in range(cap - cap % 128, 127, -128):     # prefer 128-aligned tiles
        if seq_len % t == 0:
            cands.append(t)
    for t in range(cap - cap % 8, 7, -8):
        if seq_len % t == 0 and t not in cands:
            cands.append(t)
    return cands or [seq_len]


def _vmem_budget_bytes():
    try:
        cap = int(pltpu.get_tpu_info().vmem_capacity_bytes)
        if cap <= 0:
            cap = 128 * 1024 * 1024
    except Exception:
        cap = 128 * 1024 * 1024
    return int(cap * 0.85)


def _padded_bytes(rows, last_dim, itemsize):
    # lane-padding aware: minor dim occupies a whole 128-lane tile
    return rows * _ceil_to(max(last_dim, 1), 128) * itemsize


def _working_set_bytes(*, tq, w_win, r_kr, n_head, d_head, d_model, klen,
                       nh_mask, has_mask):
    N, D, H, K = n_head, d_head, d_model, klen
    blocks = (_padded_bytes(N * tq, D, 4)             # q tile (f32)
              + 2 * _padded_bytes(N * K, D, 2)        # k, v (bf16)
              + _padded_bytes(N * r_kr, D, 2)         # k_r (bf16)
              + 2 * _padded_bytes(tq, H, 4)           # h residual + output (f32)
              + _padded_bytes(N * D, H, 2)            # W_o (bf16)
              + (_padded_bytes(nh_mask * tq, K, 2) if has_mask else 0))
    temps = (3 * _padded_bytes(N * tq, K, 4)          # ac / score / p
             + _padded_bytes(N * tq, w_win, 4)        # bd
             + _padded_bytes(N * tq, D, 4)            # attn_vec
             + 2 * _padded_bytes(tq, H, 4))
    return 2 * blocks + temps + (1 << 20)


# ----------------------------------------------------------------------------
# Wrapper (layout / dtype plumbing + pallas_call)
# ----------------------------------------------------------------------------
def xlnet_relative_attention(h, r, params, attn_mask_h=None, *, g=None, mems=None,
                             seg_mat=None, target_mapping=None, head_mask=None,
                             q_tile_cap=256):
    """Forward of XLNetRelativeAttention with g=None. Returns (output_h, None)."""
    if (g is not None or seg_mat is not None or target_mapping is not None
            or head_mask is not None):
        raise NotImplementedError(
            "Two-stream (g) attention, seg_mat, target_mapping and head_mask "
            "are not implemented in the Pallas kernel.")
    if mems is not None and getattr(mems, "ndim", 0) > 1:
        raise NotImplementedError("mems are not implemented in the Pallas kernel.")

    I, B, H = h.shape                      # qlen, batch, d_model
    R = r.shape[0]                         # rlen
    N, D = params["r_w_bias"].shape        # n_head, d_head
    ND = N * D
    K = I                                  # klen (no mems => cat == h)
    if H != ND:
        raise ValueError("d_model must equal n_head * d_head")
    if R < I + K:
        raise ValueError(f"rel-shift requires rlen >= qlen + klen ({R} < {I + K})")
    scale = 1.0 / (D ** 0.5)
    eps = 1e-5

    has_mask = attn_mask_h is not None
    nh_mask = int(attn_mask_h.shape[3]) if has_mask else 0
    if has_mask and nh_mask not in (1, N):
        raise ValueError("attn_mask_h head dim must be 1 or n_head")

    # ---- query tiling + VMEM budget ------------------------------------------
    budget = _vmem_budget_bytes()
    tq = w_win = r_kr = ws = None
    for cand in _q_tile_candidates(I, q_tile_cap):
        ww = _ceil_to(K + cand, 128)
        rk = _ceil_to(max(R, (I - cand) + ww), 8)
        ws = _working_set_bytes(tq=cand, w_win=ww, r_kr=rk, n_head=N, d_head=D,
                                d_model=H, klen=K, nh_mask=nh_mask,
                                has_mask=has_mask)
        tq, w_win, r_kr = cand, ww, rk
        if ws <= budget:
            break
    # TODO(synk): sequences whose working set exceeds VMEM even at the smallest
    # q-tile would need a flash-style klen inner loop; not implemented here.
    n_qt = I // tq
    vmem_limit = int(max(32 << 20, min(budget, int(ws * 1.4))))

    # ---- wrapper-side projections (XLA) into head-major kernel layouts -------
    hb = h.astype(jnp.bfloat16)
    rb = r.astype(jnp.bfloat16)
    q_heads = (jnp.einsum("ibh,hnd->bnid", hb, params["q"].astype(jnp.bfloat16),
                          preferred_element_type=jnp.float32) * scale)     # (B,N,I,D) f32
    k_heads = jnp.einsum("ibh,hnd->bnid", hb, params["k"].astype(jnp.bfloat16),
                         preferred_element_type=jnp.float32).astype(jnp.bfloat16)
    v_heads = jnp.einsum("ibh,hnd->bnid", hb, params["v"].astype(jnp.bfloat16),
                         preferred_element_type=jnp.float32).astype(jnp.bfloat16)
    kr_heads = jnp.einsum("jbh,hnd->bnjd", rb, params["r"].astype(jnp.bfloat16),
                          preferred_element_type=jnp.float32).astype(jnp.bfloat16)
    if r_kr > R:
        kr_heads = jnp.pad(kr_heads, ((0, 0), (0, 0), (0, r_kr - R), (0, 0)))

    rwb = (params["r_w_bias"] * scale).reshape(N, 1, D).astype(jnp.float32)
    rrb = (params["r_r_bias"] * scale).reshape(N, 1, D).astype(jnp.float32)
    wo3 = jnp.transpose(params["o"], (1, 2, 0)).astype(jnp.bfloat16)        # (N, D, H)
    gamma = params["gamma"].reshape(1, H).astype(jnp.float32)
    beta = params["beta"].reshape(1, H).astype(jnp.float32)
    # TODO(synk): the (qlen,B,H)<->(B,qlen,H) transposes of h / output could be
    # avoided with squeezed-batch blocks; kept for layout safety.
    h_res = jnp.transpose(h, (1, 0, 2)).astype(jnp.float32)                 # (B, I, H)

    roll_mode = _strided_roll_mode()

    inputs = [q_heads, k_heads, v_heads, kr_heads, rwb, rrb, h_res, wo3, gamma, beta]
    in_specs = [
        pl.BlockSpec((None, N, tq, D), lambda b, qi: (b, 0, qi, 0)),      # q tile
        pl.BlockSpec((None, N, K, D), lambda b, qi: (b, 0, 0, 0)),        # k
        pl.BlockSpec((None, N, K, D), lambda b, qi: (b, 0, 0, 0)),        # v
        pl.BlockSpec((None, N, r_kr, D), lambda b, qi: (b, 0, 0, 0)),     # k_r
        pl.BlockSpec((N, 1, D), lambda b, qi: (0, 0, 0)),                 # r_w_bias*scale
        pl.BlockSpec((N, 1, D), lambda b, qi: (0, 0, 0)),                 # r_r_bias*scale
        pl.BlockSpec((None, tq, H), lambda b, qi: (b, qi, 0)),            # h (residual)
        pl.BlockSpec((N, D, H), lambda b, qi: (0, 0, 0)),                 # W_o
        pl.BlockSpec((1, H), lambda b, qi: (0, 0)),                       # gamma
        pl.BlockSpec((1, H), lambda b, qi: (0, 0)),                       # beta
    ]
    if has_mask:
        # torch layout 'ijbn' -> (B, nh, I, K) additive bf16 bias (-1e30 * mask);
        # a size-1 head dim stays size-1 and is broadcast in-kernel.
        mask_bias = (jnp.transpose(attn_mask_h, (2, 3, 0, 1)).astype(jnp.float32)
                     * (-1e30)).astype(jnp.bfloat16)
        inputs.append(mask_bias)
        in_specs.append(pl.BlockSpec((None, nh_mask, tq, K),
                                     lambda b, qi: (b, 0, qi, 0)))

    kernel = functools.partial(
        _xlnet_attn_kernel, n_head=N, klen=K, tq=tq, w_win=w_win, eps=eps,
        has_mask=has_mask, roll_mode=roll_mode)

    out = pl.pallas_call(
        kernel,
        out_shape=jax.ShapeDtypeStruct((B, I, H), jnp.float32),
        grid=(B, n_qt),
        in_specs=in_specs,
        out_specs=pl.BlockSpec((None, tq, H), lambda b, qi: (b, qi, 0)),
        compiler_params=pltpu.CompilerParams(
            dimension_semantics=("parallel", "parallel"),
            vmem_limit_bytes=vmem_limit),
    )(*inputs)

    output_h = jnp.transpose(out, (1, 0, 2))                # back to (qlen, B, H)
    return output_h, None


# ----------------------------------------------------------------------------
# Pure-JAX reference (mirrors the PyTorch forward, f32)
# ----------------------------------------------------------------------------
def _rel_shift_bnij(x, klen):
    b, n, i, j = x.shape
    x = x.reshape(b, n, j, i)
    x = x[:, :, 1:, :]
    x = x.reshape(b, n, i, j - 1)
    return x[:, :, :, :klen]


def reference_forward(h, r, params, attn_mask_h=None, eps=1e-5):
    N, D = params["r_w_bias"].shape
    scale = 1.0 / (D ** 0.5)
    hp = lax.Precision.HIGHEST
    q_head = jnp.einsum("ibh,hnd->ibnd", h, params["q"], precision=hp)
    k_head = jnp.einsum("ibh,hnd->ibnd", h, params["k"], precision=hp)
    v_head = jnp.einsum("ibh,hnd->ibnd", h, params["v"], precision=hp)
    k_r = jnp.einsum("ibh,hnd->ibnd", r, params["r"], precision=hp)
    ac = jnp.einsum("ibnd,jbnd->bnij", q_head + params["r_w_bias"], k_head, precision=hp)
    bd = jnp.einsum("ibnd,jbnd->bnij", q_head + params["r_r_bias"], k_r, precision=hp)
    bd = _rel_shift_bnij(bd, klen=ac.shape[3])
    score = (ac + bd) * scale
    if attn_mask_h is not None:
        score = score - 1e30 * jnp.einsum("ijbn->bnij", attn_mask_h)
    prob = jax.nn.softmax(score, axis=3)
    attn_vec = jnp.einsum("bnij,jbnd->ibnd", prob, v_head, precision=hp)
    attn_out = jnp.einsum("ibnd,hnd->ibh", attn_vec, params["o"], precision=hp)
    x = attn_out + h
    mu = jnp.mean(x, axis=-1, keepdims=True)
    var = jnp.mean((x - mu) ** 2, axis=-1, keepdims=True)
    return (x - mu) / jnp.sqrt(var + eps) * params["gamma"] + params["beta"]


# ----------------------------------------------------------------------------
# Parameter init (deterministic, xavier-style)
# ----------------------------------------------------------------------------
def init_params(key, d_model, n_head):
    d_head = d_model // n_head
    ks = jax.random.split(key, 7)
    bound = (6.0 / (d_model + n_head * d_head)) ** 0.5       # xavier_uniform-ish
    std = (2.0 / (n_head + d_head)) ** 0.5                   # xavier_normal-ish

    def uni(k):
        return jax.random.uniform(k, (d_model, n_head, d_head), jnp.float32,
                                  -bound, bound)

    return {
        "q": uni(ks[0]), "k": uni(ks[1]), "v": uni(ks[2]),
        "o": uni(ks[3]), "r": uni(ks[4]),
        "r_w_bias": std * jax.random.normal(ks[5], (n_head, d_head), jnp.float32),
        "r_r_bias": std * jax.random.normal(ks[6], (n_head, d_head), jnp.float32),
        "gamma": jnp.ones((d_model,), jnp.float32),          # LayerNorm weight
        "beta": jnp.zeros((d_model,), jnp.float32),          # LayerNorm bias
    }


if __name__ == "__main__":
    d_model, n_head = 128, 4
    key = jax.random.PRNGKey(0)
    k_h, k_r, k_p, k_h2, k_r2 = jax.random.split(key, 5)
    params = init_params(k_p, d_model, n_head)

    # --- config A: single query tile, no mask --------------------------------
    qlen, bsz = 64, 2
    rlen = 2 * qlen                                   # standard: rlen = klen + qlen
    h = jax.random.normal(k_h, (qlen, bsz, d_model), jnp.float32)    # 'ibh'
    r = jax.random.normal(k_r, (rlen, bsz, d_model), jnp.float32)    # 'ibh'
    out_h, out_g = xlnet_relative_attention(h, r, params)
    out_h = jax.block_until_ready(out_h)
    assert out_h.shape == (qlen, bsz, d_model) and out_g is None
    ref = reference_forward(h, r, params)
    err = jnp.abs(out_h - ref)
    max_err, mean_err = float(jnp.max(err)), float(jnp.mean(err))
    # bf16 MXU operands vs f32 HIGHEST reference -> loose-but-meaningful tolerance.
    assert max_err < 1e-1 and mean_err < 2e-2, (
        f"config A mismatch vs reference: max={max_err}, mean={mean_err}")

    # --- config B: two query tiles + head-broadcast causal mask --------------
    qlen2, bsz2 = 128, 2
    rlen2 = 2 * qlen2
    h2 = jax.random.normal(k_h2, (qlen2, bsz2, d_model), jnp.float32)
    r2 = jax.random.normal(k_r2, (rlen2, bsz2, d_model), jnp.float32)
    causal = (jnp.arange(qlen2)[None, :] > jnp.arange(qlen2)[:, None]).astype(jnp.float32)
    attn_mask = jnp.broadcast_to(causal[:, :, None, None],
                                 (qlen2, qlen2, bsz2, 1))             # 'ijbn', n=1
    out_h2, _ = xlnet_relative_attention(h2, r2, params, attn_mask_h=attn_mask,
                                         q_tile_cap=64)   # forces 2 query tiles
    out_h2 = jax.block_until_ready(out_h2)
    ref2 = reference_forward(h2, r2, params, attn_mask_h=attn_mask)
    err2 = jnp.abs(out_h2 - ref2)
    max_err2, mean_err2 = float(jnp.max(err2)), float(jnp.mean(err2))
    assert max_err2 < 1e-1 and mean_err2 < 2e-2, (
        f"config B mismatch vs reference: max={max_err2}, mean={mean_err2}")

    print("KERNEL_OK")
</pallas_src>

<mosaic_0001>
module attributes {stable_mosaic.version = 11 : i64} {
  func.func @probe_pos(%arg0: memref<8x128xf32, #tpu.memory_space<vmem>>, %arg1: memref<8x128xf32, #tpu.memory_space<vmem>>) attributes {dimension_semantics = [], scalar_prefetch = 0 : i64, scratch_operands = 0 : i64, tpu.core_type = #tpu.core_type<tc>} {
    %c0 = arith.constant 0 : index
    %c0_0 = arith.constant 0 : index
    %0 = vector.load %arg0[%c0, %c0_0] : memref<8x128xf32, #tpu.memory_space<vmem>>, vector<8x128xf32>
    %c120_i32 = arith.constant 120 : i32
    %1 = tpu.dynamic_rotate %0 by %c120_i32 dim 1 {stride = 1 : si32, stride_dimension = 0 : si32} : vector<8x128xf32>, i32 -> vector<8x128xf32>
    %c0_1 = arith.constant 0 : index
    %c0_2 = arith.constant 0 : index
    %2 = vector.load %arg1[%c0_1, %c0_2] : memref<8x128xf32, #tpu.memory_space<vmem>>, vector<8x128xf32>
    tpu.vector_store %arg1[%c0_1, %c0_2], %1 {strides = array<i32>} : memref<8x128xf32, #tpu.memory_space<vmem>>, vector<8x128xf32>,
    return
  }
}

module attributes {stable_mosaic.version = 11 : i64} {
  func.func @_xlnet_attn_kernel(%arg0: i32, %arg1: i32, %arg2: memref<1x4x64x32xf32, #tpu.memory_space<vmem>>, %arg3: memref<1x4x64x32xbf16, #tpu.memory_space<vmem>>, %arg4: memref<1x4x64x32xbf16, #tpu.memory_space<vmem>>, %arg5: memref<1x4x128x32xbf16, #tpu.memory_space<vmem>>, %arg6: memref<4x1x32xf32, #tpu.memory_space<vmem>>, %arg7: memref<4x1x32xf32, #tpu.memory_space<vmem>>, %arg8: memref<1x64x128xf32, #tpu.memory_space<vmem>>, %arg9: memref<4x32x128xbf16, #tpu.memory_space<vmem>>, %arg10: memref<1x128xf32, #tpu.memory_space<vmem>>, %arg11: memref<1x128xf32, #tpu.memory_space<vmem>>, %arg12: memref<1x64x128xf32, #tpu.memory_space<vmem>>) attributes {dimension_semantics = [#tpu.dimension_semantics<parallel>, #tpu.dimension_semantics<parallel>], iteration_bounds = array<i64: 2, 1>, scalar_prefetch = 0 : i64, scratch_operands = 0 : i64, tpu.core_type = #tpu.core_type<tc>, window_params = [{transform_indices = @transform_0, window_bounds = array<i64: 1, 4, 64, 32>}, {transform_indices = @transform_1, window_bounds = array<i64: 1, 4, 64, 32>}, {transform_indices = @transform_2, window_bounds = array<i64: 1, 4, 64, 32>}, {transform_indices = @transform_3, window_bounds = array<i64: 1, 4, 128, 32>}, {pipeline_mode = #tpu.pipeline_mode<synchronous>, transform_indices = @transform_4, window_bounds = array<i64: 4, 1, 32>}, {pipeline_mode = #tpu.pipeline_mode<synchronous>, transform_indices = @transform_5, window_bounds = array<i64: 4, 1, 32>}, {transform_indices = @transform_6, window_bounds = array<i64: 1, 64, 128>}, {pipeline_mode = #tpu.pipeline_mode<synchronous>, transform_indices = @transform_7, window_bounds = array<i64: 4, 32, 128>}, {pipeline_mode = #tpu.pipeline_mode<synchronous>, transform_indices = @transform_8, window_bounds = array<i64: 1, 128>}, {pipeline_mode = #tpu.pipeline_mode<synchronous>, transform_indices = @transform_9, window_bounds = array<i64: 1, 128>}, {transform_indices = @transform_10, window_bounds = array<i64: 1, 64, 128>}]} {
    %c0_i32 = arith.constant 0 : i32
    %0 = arith.subi %c0_i32, %arg1 : i32
    %c64_i32 = arith.constant 64 : i32
    %1 = arith.muli %0, %c64_i32 : i32
    %2 = tpu.assume_multiple %1, 8 : i32
    %c0 = arith.constant 0 : index
    %c0_0 = arith.constant 0 : index
    %c0_1 = arith.constant 0 : index
    %c0_2 = arith.constant 0 : index
    %3 = vector.load %arg2[%c0, %c0_0, %c0_1, %c0_2] : memref<1x4x64x32xf32, #tpu.memory_space<vmem>>, vector<1x4x64x32xf32>
    %4 = vector.shape_cast %3 : vector<1x4x64x32xf32> to vector<4x64x32xf32>
    %c0_3 = arith.constant 0 : index
    %c0_4 = arith.constant 0 : index
    %c0_5 = arith.constant 0 : index
    %5 = vector.load %arg6[%c0_3, %c0_4, %c0_5] : memref<4x1x32xf32, #tpu.memory_space<vmem>>, vector<4x1x32xf32>
    %6 = vector.broadcast %5 : vector<4x1x32xf32> to vector<4x64x32xf32>
    %7 = arith.addf %4, %6 : vector<4x64x32xf32>
    %8 = arith.truncf %7 : vector<4x64x32xf32> to vector<4x64x32xbf16>
    %c0_6 = arith.constant 0 : index
    %c0_7 = arith.constant 0 : index
    %c0_8 = arith.constant 0 : index
    %9 = vector.load %arg7[%c0_6, %c0_7, %c0_8] : memref<4x1x32xf32, #tpu.memory_space<vmem>>, vector<4x1x32xf32>
    %10 = vector.broadcast %9 : vector<4x1x32xf32> to vector<4x64x32xf32>
    %11 = arith.addf %4, %10 : vector<4x64x32xf32>
    %12 = arith.truncf %11 : vector<4x64x32xf32> to vector<4x64x32xbf16>
    %c0_9 = arith.constant 0 : index
    %c0_10 = arith.constant 0 : index
    %c0_11 = arith.constant 0 : index
    %c0_12 = arith.constant 0 : index
    %13 = vector.load %arg3[%c0_9, %c0_10, %c0_11, %c0_12] : memref<1x4x64x32xbf16, #tpu.memory_space<vmem>>, vector<1x4x64x32xbf16>
    %14 = vector.shape_cast %13 : vector<1x4x64x32xbf16> to vector<4x64x32xbf16>
    %cst = arith.constant dense<0.000000e+00> : vector<4x64x64xf32>
    %15 = tpu.matmul %8, %14, %cst {dimension_numbers = #tpu.dot_dimension_numbers<[2], [2], [1], [1], [0, 0, 0, 1, 1, 1], [0], [0]>} : vector<4x64x32xbf16>, vector<4x64x32xbf16>, vector<4x64x64xf32> -> vector<4x64x64xf32>
    %c0_13 = arith.constant 0 : index
    %c0_14 = arith.constant 0 : index
    %16 = arith.index_cast %2 : i32 to index
    %c0_15 = arith.constant 0 : index
    %17 = vector.load %arg5[%c0_13, %c0_14, %16, %c0_15] : memref<1x4x128x32xbf16, #tpu.memory_space<vmem>>, vector<1x4x128x32xbf16>
    %18 = vector.shape_cast %17 : vector<1x4x128x32xbf16> to vector<4x128x32xbf16>
    %cst_16 = arith.constant dense<0.000000e+00> : vector<4x64x128xf32>
    %19 = tpu.matmul %12, %18, %cst_16 {dimension_numbers = #tpu.dot_dimension_numbers<[2], [2], [1], [1], [0, 0, 0, 1, 1, 1], [0], [0]>} : vector<4x64x32xbf16>, vector<4x128x32xbf16>, vector<4x64x128xf32> -> vector<4x64x128xf32>
    %20 = vector.extract_strided_slice %19 {offsets = [0, 0, 0], sizes = [1, 64, 128], strides = [1, 1, 1]} : vector<4x64x128xf32> to vector<1x64x128xf32>
    %21 = vector.shape_cast %20 : vector<1x64x128xf32> to vector<64x128xf32>
    %22 = vector.extract_strided_slice %21 {offsets = [0, 64], sizes = [1, 64], strides = [1, 1]} : vector<64x128xf32> to vector<1x64xf32>
    %23 = vector.extract_strided_slice %21 {offsets = [1, 63], sizes = [1, 64], strides = [1, 1]} : vector<64x128xf32> to vector<1x64xf32>
    %24 = vector.extract_strided_slice %21 {offsets = [2, 62], sizes = [1, 64], strides = [1, 1]} : vector<64x128xf32> to vector<1x64xf32>
    %25 = vector.extract_strided_slice %21 {offsets = [3, 61], sizes = [1, 64], strides = [1, 1]} : vector<64x128xf32> to vector<1x64xf32>
    %26 = vector.extract_strided_slice %21 {offsets = [4, 60], sizes = [1, 64], strides = [1, 1]} : vector<64x128xf32> to vector<1x64xf32>
    %27 = vector.extract_strided_slice %21 {offsets = [5, 59], sizes = [1, 64], strides = [1, 1]} : vector<64x128xf32> to vector<1x64xf32>
    %28 = vector.extract_strided_slice %21 {offsets = [6, 58], sizes = [1, 64], strides = [1, 1]} : vector<64x128xf32> to vector<1x64xf32>
    %29 = vector.extract_strided_slice %21 {offsets = [7, 57], sizes = [1, 64], strides = [1, 1]} : vector<64x128xf32> to vector<1x64xf32>
    %30 = vector.extract_strided_slice %21 {offsets = [8, 56], sizes = [1, 64], strides = [1, 1]} : vector<64x128xf32> to vector<1x64xf32>
    %31 = vector.extract_strided_slice %21 {offsets = [9, 55], sizes = [1, 64], strides = [1, 1]} : vector<64x128xf32> to vector<1x64xf32>
    %32 = vector.extract_strided_slice %21 {offsets = [10, 54], sizes = [1, 64], strides = [1, 1]} : vector<64x128xf32> to vector<1x64xf32>
    %33 = vector.extract_strided_slice %21 {offsets = [11, 53], sizes = [1, 64], strides = [1, 1]} : vector<64x128xf32> to vector<1x64xf32>
    %34 = vector.extract_strided_slice %21 {offsets = [12, 52], sizes = [1, 64], strides = [1, 1]} : vector<64x128xf32> to vector<1x64xf32>
    %35 = vector.extract_strided_slice %21 {offsets = [13, 51], sizes = [1, 64], strides = [1, 1]} : vector<64x128xf32> to vector<1x64xf32>
    %36 = vector.extract_strided_slice %21 {offsets = [14, 50], sizes = [1, 64], strides = [1, 1]} : vector<64x128xf32> to vector<1x64xf32>
    %37 = vector.extract_strided_slice %21 {offsets = [15, 49], sizes = [1, 64], strides = [1, 1]} : vector<64x128xf32> to vector<1x64xf32>
    %38 = vector.extract_strided_slice %21 {offsets = [16, 48], sizes = [1, 64], strides = [1, 1]} : vector<64x128xf32> to vector<1x64xf32>
    %39 = vector.extract_strided_slice %21 {offsets = [17, 47], sizes = [1, 64], strides = [1, 1]} : vector<64x128xf32> to vector<1x64xf32>
    %40 = vector.extract_strided_slice %21 {offsets = [18, 46], sizes = [1, 64], strides = [1, 1]} : vector<64x128xf32> to vector<1x64xf32>
    %41 = vector.extract_strided_slice %21 {offsets = [19, 45], sizes = [1, 64], strides = [1, 1]} : vector<64x128xf32> to vector<1x64xf32>
    %42 = vector.extract_strided_slice %21 {offsets = [20, 44], sizes = [1, 64], strides = [1, 1]} : vector<64x128xf32> to vector<1x64xf32>
    %43 = vector.extract_strided_slice %21 {offsets = [21, 43], sizes = [1, 64], strides = [1, 1]} : vector<64x128xf32> to vector<1x64xf32>
    %44 = vector.extract_strided_slice %21 {offsets = [22, 42], sizes = [1, 64], strides = [1, 1]} : vector<64x128xf32> to vector<1x64xf32>
    %45 = vector.extract_strided_slice %21 {offsets = [23, 41], sizes = [1, 64], strides = [1, 1]} : vector<64x128xf32> to vector<1x64xf32>
    %46 = vector.extract_strided_slice %21 {offsets = [24, 40], sizes = [1, 64], strides = [1, 1]} : vector<64x128xf32> to vector<1x64xf32>
    %47 = vector.extract_strided_slice %21 {offsets = [25, 39], sizes = [1, 64], strides = [1, 1]} : vector<64x128xf32> to vector<1x64xf32>
    %48 = vector.extract_strided_slice %21 {offsets = [26, 38], sizes = [1, 64], strides = [1, 1]} : vector<64x128xf32> to vector<1x64xf32>
    %49 = vector.extract_strided_slice %21 {offsets = [27, 37], sizes = [1, 64], strides = [1, 1]} : vector<64x128xf32> to vector<1x64xf32>
    %50 = vector.extract_strided_slice %21 {offsets = [28, 36], sizes = [1, 64], strides = [1, 1]} : vector<64x128xf32> to vector<1x64xf32>
    %51 = vector.extract_strided_slice %21 {offsets = [29, 35], sizes = [1, 64], strides = [1, 1]} : vector<64x128xf32> to vector<1x64xf32>
    %52 = vector.extract_strided_slice %21 {offsets = [30, 34], sizes = [1, 64], strides = [1, 1]} : vector<64x128xf32> to vector<1x64xf32>
    %53 = vector.extract_strided_slice %21 {offsets = [31, 33], sizes = [1, 64], strides = [1, 1]} : vector<64x128xf32> to vector<1x64xf32>
    %54 = vector.extract_strided_slice %21 {offsets = [32, 32], sizes = [1, 64], strides = [1, 1]} : vector<64x128xf32> to vector<1x64xf32>
    %55 = vector.extract_strided_slice %21 {offsets = [33, 31], sizes = [1, 64], strides = [1, 1]} : vector<64x128xf32> to vector<1x64xf32>
    %56 = vector.extract_strided_slice %21 {offsets = [34, 30], sizes = [1, 64], strides = [1, 1]} : vector<64x128xf32> to vector<1x64xf32>
    %57 = vector.extract_strided_slice %21 {offsets = [35, 29], sizes = [1, 64], strides = [1, 1]} : vector<64x128xf32> to vector<1x64xf32>
    %58 = vector.extract_strided_slice %21 {offsets = [36, 28], sizes = [1, 64], strides = [1, 1]} : vector<64x128xf32> to vector<1x64xf32>
    %59 = vector.extract_strided_slice %21 {offsets = [37, 27], sizes = [1, 64], strides = [1, 1]} : vector<64x128xf32> to vector<1x64xf32>
    %60 = vector.extract_strided_slice %21 {offsets = [38, 26], sizes = [1, 64], strides = [1, 1]} : vector<64x128xf32> to vector<1x64xf32>
    %61 = vector.extract_strided_slice %21 {offsets = [39, 25], sizes = [1, 64], strides = [1, 1]} : vector<64x128xf32> to vector<1x64xf32>
    %62 = vector.extract_strided_slice %21 {offsets = [40, 24], sizes = [1, 64], strides = [1, 1]} : vector<64x128xf32> to vector<1x64xf32>
    %63 = vector.extract_strided_slice %21 {offsets = [41, 23], sizes = [1, 64], strides = [1, 1]} : vector<64x128xf32> to vector<1x64xf32>
    %64 = vector.extract_strided_slice %21 {offsets = [42, 22], sizes = [1, 64], strides = [1, 1]} : vector<64x128xf32> to vector<1x64xf32>
    %65 = vector.extract_strided_slice %21 {offsets = [43, 21], sizes = [1, 64], strides = [1, 1]} : vector<64x128xf32> to vector<1x64xf32>
    %66 = vector.extract_strided_slice %21 {offsets = [44, 20], sizes = [1, 64], strides = [1, 1]} : vector<64x128xf32> to vector<1x64xf32>
    %67 = vector.extract_strided_slice %21 {offsets = [45, 19], sizes = [1, 64], strides = [1, 1]} : vector<64x128xf32> to vector<1x64xf32>
    %68 = vector.extract_strided_slice %21 {offsets = [46, 18], sizes = [1, 64], strides = [1, 1]} : vector<64x128xf32> to vector<1x64xf32>
    %69 = vector.extract_strided_slice %21 {offsets = [47, 17], sizes = [1, 64], strides = [1, 1]} : vector<64x128xf32> to vector<1x64xf32>
    %70 = vector.extract_strided_slice %21 {offsets = [48, 16], sizes = [1, 64], strides = [1, 1]} : vector<64x128xf32> to vector<1x64xf32>
    %71 = vector.extract_strided_slice %21 {offsets = [49, 15], sizes = [1, 64], strides = [1, 1]} : vector<64x128xf32> to vector<1x64xf32>
    %72 = vector.extract_strided_slice %21 {offsets = [50, 14], sizes = [1, 64], strides = [1, 1]} : vector<64x128xf32> to vector<1x64xf32>
    %73 = vector.extract_strided_slice %21 {offsets = [51, 13], sizes = [1, 64], strides = [1, 1]} : vector<64x128xf32> to vector<1x64xf32>
    %74 = vector.extract_strided_slice %21 {offsets = [52, 12], sizes = [1, 64], strides = [1, 1]} : vector<64x128xf32> to vector<1x64xf32>
    %75 = vector.extract_strided_slice %21 {offsets = [53, 11], sizes = [1, 64], strides = [1, 1]} : vector<64x128xf32> to vector<1x64xf32>
    %76 = vector.extract_strided_slice %21 {offsets = [54, 10], sizes = [1, 64], strides = [1, 1]} : vector<64x128xf32> to vector<1x64xf32>
    %77 = vector.extract_strided_slice %21 {offsets = [55, 9], sizes = [1, 64], strides = [1, 1]} : vector<64x128xf32> to vector<1x64xf32>
    %78 = vector.extract_strided_slice %21 {offsets = [56, 8], sizes = [1, 64], strides = [1, 1]} : vector<64x128xf32> to vector<1x64xf32>
    %79 = vector.extract_strided_slice %21 {offsets = [57, 7], sizes = [1, 64], strides = [1, 1]} : vector<64x128xf32> to vector<1x64xf32>
    %80 = vector.extract_strided_slice %21 {offsets = [58, 6], sizes = [1, 64], strides = [1, 1]} : vector<64x128xf32> to vector<1x64xf32>
    %81 = vector.extract_strided_slice %21 {offsets = [59, 5], sizes = [1, 64], strides = [1, 1]} : vector<64x128xf32> to vector<1x64xf32>
    %82 = vector.extract_strided_slice %21 {offsets = [60, 4], sizes = [1, 64], strides = [1, 1]} : vector<64x128xf32> to vector<1x64xf32>
    %83 = vector.extract_strided_slice %21 {offsets = [61, 3], sizes = [1, 64], strides = [1, 1]} : vector<64x128xf32> to vector<1x64xf32>
    %84 = vector.extract_strided_slice %21 {offsets = [62, 2], sizes = [1, 64], strides = [1, 1]} : vector<64x128xf32> to vector<1x64xf32>
    %85 = vector.extract_strided_slice %21 {offsets = [63, 1], sizes = [1, 64], strides = [1, 1]} : vector<64x128xf32> to vector<1x64xf32>
    %86 = tpu.concatenate %22, %23, %24, %25, %26, %27, %28, %29, %30, %31, %32, %33, %34, %35, %36, %37 in 0 : vector<1x64xf32>, vector<1x64xf32>, vector<1x64xf32>, vector<1x64xf32>, vector<1x64xf32>, vector<1x64xf32>, vector<1x64xf32>, vector<1x64xf32>, vector<1x64xf32>, vector<1x64xf32>, vector<1x64xf32>, vector<1x64xf32>, vector<1x64xf32>, vector<1x64xf32>, vector<1x64xf32>, vector<1x64xf32> -> vector<16x64xf32>
    %87 = tpu.concatenate %38, %39, %40, %41, %42, %43, %44, %45, %46, %47, %48, %49, %50, %51, %52, %53 in 0 : vector<1x64xf32>, vector<1x64xf32>, vector<1x64xf32>, vector<1x64xf32>, vector<1x64xf32>, vector<1x64xf32>, vector<1x64xf32>, vector<1x64xf32>, vector<1x64xf32>, vector<1x64xf32>, vector<1x64xf32>, vector<1x64xf32>, vector<1x64xf32>, vector<1x64xf32>, vector<1x64xf32>, vector<1x64xf32> -> vector<16x64xf32>
    %88 = tpu.concatenate %54, %55, %56, %57, %58, %59, %60, %61, %62, %63, %64, %65, %66, %67, %68, %69 in 0 : vector<1x64xf32>, vector<1x64xf32>, vector<1x64xf32>, vector<1x64xf32>, vector<1x64xf32>, vector<1x64xf32>, vector<1x64xf32>, vector<1x64xf32>, vector<1x64xf32>, vector<1x64xf32>, vector<1x64xf32>, vector<1x64xf32>, vector<1x64xf32>, vector<1x64xf32>, vector<1x64xf32>, vector<1x64xf32> -> vector<16x64xf32>
    %89 = tpu.concatenate %70, %71, %72, %73, %74, %75, %76, %77, %78, %79, %80, %81, %82, %83, %84, %85 in 0 : vector<1x64xf32>, vector<1x64xf32>, vector<1x64xf32>, vector<1x64xf32>, vector<1x64xf32>, vector<1x64xf32>, vector<1x64xf32>, vector<1x64xf32>, vector<1x64xf32>, vector<1x64xf32>, vector<1x64xf32>, vector<1x64xf32>, vector<1x64xf32>, vector<1x64xf32>, vector<1x64xf32>, vector<1x64xf32> -> vector<16x64xf32>
    %90 = tpu.concatenate %86, %87, %88, %89 in 0 : vector<16x64xf32>, vector<16x64xf32>, vector<16x64xf32>, vector<16x64xf32> -> vector<64x64xf32>
    %91 = vector.extract_strided_slice %19 {offsets = [1, 0, 0], sizes = [1, 64, 128], strides = [1, 1, 1]} : vector<4x64x128xf32> to vector<1x64x128xf32>
    %92 = vector.shape_cast %91 : vector<1x64x128xf32> to vector<64x128xf32>
    %93 = vector.extract_strided_slice %92 {offsets = [0, 64], sizes = [1, 64], strides = [1, 1]} : vector<64x128xf32> to vector<1x64xf32>
    %94 = vector.extract_strided_slice %92 {offsets = [1, 63], sizes = [1, 64], strides = [1, 1]} : vector<64x128xf32> to vector<1x64xf32>
    %95 = vector.extract_strided_slice %92 {offsets = [2, 62], sizes = [1, 64], strides = [1, 1]} : vector<64x128xf32> to vector<1x64xf32>
    %96 = vector.extract_strided_slice %92 {offsets = [3, 61], sizes = [1, 64], strides = [1, 1]} : vector<64x128xf32> to vector<1x64xf32>
    %97 = vector.extract_strided_slice %92 {offsets = [4, 60], sizes = [1, 64], strides = [1, 1]} : vector<64x128xf32> to vector<1x64xf32>
    %98 = vector.extract_strided_slice %92 {offsets = [5, 59], sizes = [1, 64], strides = [1, 1]} : vector<64x128xf32> to vector<1x64xf32>
    %99 = vector.extract_strided_slice %92 {offsets = [6, 58], sizes = [1, 64], strides = [1, 1]} : vector<64x128xf32> to vector<1x64xf32>
    %100 = vector.extract_strided_slice %92 {offsets = [7, 57], sizes = [1, 64], strides = [1, 1]} : vector<64x128xf32> to vector<1x64xf32>
    %101 = vector.extract_strided_slice %92 {offsets = [8, 56], sizes = [1, 64], strides = [1, 1]} : vector<64x128xf32> to vector<1x64xf32>
    %102 = vector.extract_strided_slice %92 {offsets = [9, 55], sizes = [1, 64], strides = [1, 1]} : vector<64x128xf32> to vector<1x64xf32>
    %103 = vector.extract_strided_slice %92 {offsets = [10, 54], sizes = [1, 64], strides = [1, 1]} : vector<64x128xf32> to vector<1x64xf32>
    %104 = vector.extract_strided_slice %92 {offsets = [11, 53], sizes = [1, 64], strides = [1, 1]} : vector<64x128xf32> to vector<1x64xf32>
    %105 = vector.extract_strided_slice %92 {offsets = [12, 52], sizes = [1, 64], strides = [1, 1]} : vector<64x128xf32> to vector<1x64xf32>
    %106 = vector.extract_strided_slice %92 {offsets = [13, 51], sizes = [1, 64], strides = [1, 1]} : vector<64x128xf32> to vector<1x64xf32>
    %107 = vector.extract_strided_slice %92 {offsets = [14, 50], sizes = [1, 64], strides = [1, 1]} : vector<64x128xf32> to vector<1x64xf32>
    %108 = vector.extract_strided_slice %92 {offsets = [15, 49], sizes = [1, 64], strides = [1, 1]} : vector<64x128xf32> to vector<1x64xf32>
    %109 = vector.extract_strided_slice %92 {offsets = [16, 48], sizes = [1, 64], strides = [1, 1]} : vector<64x128xf32> to vector<1x64xf32>
    %110 = vector.extract_strided_slice %92 {offsets = [17, 47], sizes = [1, 64], strides = [1, 1]} : vector<64x128xf32> to vector<1x64xf32>
    %111 = vector.extract_strided_slice %92 {offsets = [18, 46], sizes = [1, 64], strides = [1, 1]} : vector<64x128xf32> to vector<1x64xf32>
    %112 = vector.extract_strided_slice %92 {offsets = [19, 45], sizes = [1, 64], strides = [1, 1]} : vector<64x128xf32> to vector<1x64xf32>
    %113 = vector.extract_strided_slice %92 {offsets = [20, 44], sizes = [1, 64], strides = [1, 1]} : vector<64x128xf32> to vector<1x64xf32>
    %114 = vector.extract_strided_slice %92 {offsets = [21, 43], sizes = [1, 64], strides = [1, 1]} : vector<64x128xf32> to vector<1x64xf32>
    %115 = vector.extract_strided_slice %92 {offsets = [22, 42], sizes = [1, 64], strides = [1, 1]} : vector<64x128xf32> to vector<1x64xf32>
    %116 = vector.extract_strided_slice %92 {offsets = [23, 41], sizes = [1, 64], strides = [1, 1]} : vector<64x128xf32> to vector<1x64xf32>
    %117 = vector.extract_strided_slice %92 {offsets = [24, 40], sizes = [1, 64], strides = [1, 1]} : vector<64x128xf32> to vector<1x64xf32>
    %118 = vector.extract_strided_slice %92 {offsets = [25, 39], sizes = [1, 64], strides = [1, 1]} : vector<64x128xf32> to vector<1x64xf32>
    %119 = vector.extract_strided_slice %92 {offsets = [26, 38], sizes = [1, 64], strides = [1, 1]} : vector<64x128xf32> to vector<1x64xf32>
    %120 = vector.extract_strided_slice %92 {offsets = [27, 37], sizes = [1, 64], strides = [1, 1]} : vector<64x128xf32> to vector<1x64xf32>
    %121 = vector.extract_strided_slice %92 {offsets = [28, 36], sizes = [1, 64], strides = [1, 1]} : vector<64x128xf32> to vector<1x64xf32>
    %122 = vector.extract_strided_slice %92 {offsets = [29, 35], sizes = [1, 64], strides = [1, 1]} : vector<64x128xf32> to vector<1x64xf32>
    %123 = vector.extract_strided_slice %92 {offsets = [30, 34], sizes = [1, 64], strides = [1, 1]} : vector<64x128xf32> to vector<1x64xf32>
    %124 = vector.extract_strided_slice %92 {offsets = [31, 33], sizes = [1, 64], strides = [1, 1]} : vector<64x128xf32> to vector<1x64xf32>
    %125 = vector.extract_strided_slice %92 {offsets = [32, 32], sizes = [1, 64], strides = [1, 1]} : vector<64x128xf32> to vector<1x64xf32>
    %126 = vector.extract_strided_slice %92 {offsets = [33, 31], sizes = [1, 64], strides = [1, 1]} : vector<64x128xf32> to vector<1x64xf32>
    %127 = vector.extract_strided_slice %92 {offsets = [34, 30], sizes = [1, 64], strides = [1, 1]} : vector<64x128xf32> to vector<1x64xf32>
    %128 = vector.extract_strided_slice %92 {offsets = [35, 29], sizes = [1, 64], strides = [1, 1]} : vector<64x128xf32> to vector<1x64xf32>
    %129 = vector.extract_strided_slice %92 {offsets = [36, 28], sizes = [1, 64], strides = [1, 1]} : vector<64x128xf32> to vector<1x64xf32>
    %130 = vector.extract_strided_slice %92 {offsets = [37, 27], sizes = [1, 64], strides = [1, 1]} : vector<64x128xf32> to vector<1x64xf32>
    %131 = vector.extract_strided_slice %92 {offsets = [38, 26], sizes = [1, 64], strides = [1, 1]} : vector<64x128xf32> to vector<1x64xf32>
    %132 = vector.extract_strided_slice %92 {offsets = [39, 25], sizes = [1, 64], strides = [1, 1]} : vector<64x128xf32> to vector<1x64xf32>
    %133 = vector.extract_strided_slice %92 {offsets = [40, 24], sizes = [1, 64], strides = [1, 1]} : vector<64x128xf32> to vector<1x64xf32>
    %134 = vector.extract_strided_slice %92 {offsets = [41, 23], sizes = [1, 64], strides = [1, 1]} : vector<64x128xf32> to vector<1x64xf32>
    %135 = vector.extract_strided_slice %92 {offsets = [42, 22], sizes = [1, 64], strides = [1, 1]} : vector<64x128xf32> to vector<1x64xf32>
    %136 = vector.extract_strided_slice %92 {offsets = [43, 21], sizes = [1, 64], strides = [1, 1]} : vector<64x128xf32> to vector<1x64xf32>
    %137 = vector.extract_strided_slice %92 {offsets = [44, 20], sizes = [1, 64], strides = [1, 1]} : vector<64x128xf32> to vector<1x64xf32>
    %138 = vector.extract_strided_slice %92 {offsets = [45, 19], sizes = [1, 64], strides = [1, 1]} : vector<64x128xf32> to vector<1x64xf32>
    %139 = vector.extract_strided_slice %92 {offsets = [46, 18], sizes = [1, 64], strides = [1, 1]} : vector<64x128xf32> to vector<1x64xf32>
    %140 = vector.extract_strided_slice %92 {offsets = [47, 17], sizes = [1, 64], strides = [1, 1]} : vector<64x128xf32> to vector<1x64xf32>
    %141 = vector.extract_strided_slice %92 {offsets = [48, 16], sizes = [1, 64], strides = [1, 1]} : vector<64x128xf32> to vector<1x64xf32>
    %142 = vector.extract_strided_slice %92 {offsets = [49, 15], sizes = [1, 64], strides = [1, 1]} : vector<64x128xf32> to vector<1x64xf32>
    %143 = vector.extract_strided_slice %92 {offsets = [50, 14], sizes = [1, 64], strides = [1, 1]} : vector<64x128xf32> to vector<1x64xf32>
    %144 = vector.extract_strided_slice %92 {offsets = [51, 13], sizes = [1, 64], strides = [1, 1]} : vector<64x128xf32> to vector<1x64xf32>
    %145 = vector.extract_strided_slice %92 {offsets = [52, 12], sizes = [1, 64], strides = [1, 1]} : vector<64x128xf32> to vector<1x64xf32>
    %146 = vector.extract_strided_slice %92 {offsets = [53, 11], sizes = [1, 64], strides = [1, 1]} : vector<64x128xf32> to vector<1x64xf32>
    %147 = vector.extract_strided_slice %92 {offsets = [54, 10], sizes = [1, 64], strides = [1, 1]} : vector<64x128xf32> to vector<1x64xf32>
    %148 = vector.extract_strided_slice %92 {offsets = [55, 9], sizes = [1, 64], strides = [1, 1]} : vector<64x128xf32> to vector<1x64xf32>
    %149 = vector.extract_strided_slice %92 {offsets = [56, 8], sizes = [1, 64], strides = [1, 1]} : vector<64x128xf32> to vector<1x64xf32>
    %150 = vector.extract_strided_slice %92 {offsets = [57, 7], sizes = [1, 64], strides = [1, 1]} : vector<64x128xf32> to vector<1x64xf32>
    %151 = vector.extract_strided_slice %92 {offsets = [58, 6], sizes = [1, 64], strides = [1, 1]} : vector<64x128xf32> to vector<1x64xf32>
    %152 = vector.extract_strided_slice %92 {offsets = [59, 5], sizes = [1, 64], strides = [1, 1]} : vector<64x128xf32> to vector<1x64xf32>
    %153 = vector.extract_strided_slice %92 {offsets = [60, 4], sizes = [1, 64], strides = [1, 1]} : vector<64x128xf32> to vector<1x64xf32>
    %154 = vector.extract_strided_slice %92 {offsets = [61, 3], sizes = [1, 64], strides = [1, 1]} : vector<64x128xf32> to vector<1x64xf32>
    %155 = vector.extract_strided_slice %92 {offsets = [62, 2], sizes = [1, 64], strides = [1, 1]} : vector<64x128xf32> to vector<1x64xf32>
    %156 = vector.extract_strided_slice %92 {offsets = [63, 1], sizes = [1, 64], strides = [1, 1]} : vector<64x128xf32> to vector<1x64xf32>
    %157 = tpu.concatenate %93, %94, %95, %96, %97, %98, %99, %100, %101, %102, %103, %104, %105, %106, %107, %108 in 0 : vector<1x64xf32>, vector<1x64xf32>, vector<1x64xf32>, vector<1x64xf32>, vector<1x64xf32>, vector<1x64xf32>, vector<1x64xf32>, vector<1x64xf32>, vector<1x64xf32>, vector<1x64xf32>, vector<1x64xf32>, vector<1x64xf32>, vector<1x64xf32>, vector<1x64xf32>, vector<1x64xf32>, vector<1x64xf32> -> vector<16x64xf32>
    %158 = tpu.concatenate %109, %110, %111, %112, %113, %114, %115, %116, %117, %118, %119, %120, %121, %122, %123, %124 in 0 : vector<1x64xf32>, vector<1x64xf32>, vector<1x64xf32>, vector<1x64xf32>, vector<1x64xf32>, vector<1x64xf32>, vector<1x64xf32>, vector<1x64xf32>, vector<1x64xf32>, vector<1x64xf32>, vector<1x64xf32>, vector<1x64xf32>, vector<1x64xf32>, vector<1x64xf32>, vector<1x64xf32>, vector<1x64xf32> -> vector<16x64xf32>
    %159 = tpu.concatenate %125, %126, %127, %128, %129, %130, %131, %132, %133, %134, %135, %136, %137, %138, %139, %140 in 0 : vector<1x64xf32>, vector<1x64xf32>, vector<1x64xf32>, vector<1x64xf32>, vector<1x64xf32>, vector<1x64xf32>, vector<1x64xf32>, vector<1x64xf32>, vector<1x64xf32>, vector<1x64xf32>, vector<1x64xf32>, vector<1x64xf32>, vector<1x64xf32>, vector<1x64xf32>, vector<1x64xf32>, vector<1x64xf32> -> vector<16x64xf32>
    %160 = tpu.concatenate %141, %142, %143, %144, %145, %146, %147, %148, %149, %150, %151, %152, %153, %154, %155, %156 in 0 : vector<1x64xf32>, vector<1x64xf32>, vector<1x64xf32>, vector<1x64xf32>, vector<1x64xf32>, vector<1x64xf32>, vector<1x64xf32>, vector<1x64xf32>, vector<1x64xf32>, vector<1x64xf32>, vector<1x64xf32>, vector<1x64xf32>, vector<1x64xf32>, vector<1x64xf32>, vector<1x64xf32>, vector<1x64xf32> -> vector<16x64xf32>
    %161 = tpu.concatenate %157, %158, %159, %160 in 0 : vector<16x64xf32>, vector<16x64xf32>, vector<16x64xf32>, vector<16x64xf32> -> vector<64x64xf32>
    %162 = vector.extract_strided_slice %19 {offsets = [2, 0, 0], sizes = [1, 64, 128], strides = [1, 1, 1]} : vector<4x64x128xf32> to vector<1x64x128xf32>
    %163 = vector.shape_cast %162 : vector<1x64x128xf32> to vector<64x128xf32>
    %164 = vector.extract_strided_slice %163 {offsets = [0, 64], sizes = [1, 64], strides = [1, 1]} : vector<64x128xf32> to vector<1x64xf32>
    %165 = vector.extract_strided_slice %163 {offsets = [1, 63], sizes = [1, 64], strides = [1, 1]} : vector<64x128xf32> to vector<1x64xf32>
    %166 = vector.extract_strided_slice %163 {offsets = [2, 62], sizes = [1, 64], strides = [1, 1]} : vector<64x128xf32> to vector<1x64xf32>
    %167 = vector.extract_strided_slice %163 {offsets = [3, 61], sizes = [1, 64], strides = [1, 1]} : vector<64x128xf32> to vector<1x64xf32>
    %168 = vector.extract_strided_slice %163 {offsets = [4, 60], sizes = [1, 64], strides = [1, 1]} : vector<64x128xf32> to vector<1x64xf32>
    %169 = vector.extract_strided_slice %163 {offsets = [5, 59], sizes = [1, 64], strides = [1, 1]} : vector<64x128xf32> to vector<1x64xf32>
    %170 = vector.extract_strided_slice %163 {offsets = [6, 58], sizes = [1, 64], strides = [1, 1]} : vector<64x128xf32> to vector<1x64xf32>
    %171 = vector.extract_strided_slice %163 {offsets = [7, 57], sizes = [1, 64], strides = [1, 1]} : vector<64x128xf32> to vector<1x64xf32>
    %172 = vector.extract_strided_slice %163 {offsets = [8, 56], sizes = [1, 64], strides = [1, 1]} : vector<64x128xf32> to vector<1x64xf32>
    %173 = vector.extract_strided_slice %163 {offsets = [9, 55], sizes = [1, 64], strides = [1, 1]} : vector<64x128xf32> to vector<1x64xf32>
    %174 = vector.extract_strided_slice %163 {offsets = [10, 54], sizes = [1, 64], strides = [1, 1]} : vector<64x128xf32> to vector<1x64xf32>
    %175 = vector.extract_strided_slice %163 {offsets = [11, 53], sizes = [1, 64], strides = [1, 1]} : vector<64x128xf32> to vector<1x64xf32>
    %176 = vector.extract_strided_slice %163 {offsets = [12, 52], sizes = [1, 64], strides = [1, 1]} : vector<64x128xf32> to vector<1x64xf32>
    %177 = vector.extract_strided_slice %163 {offsets = [13, 51], sizes = [1, 64], strides = [1, 1]} : vector<64x128xf32> to vector<1x64xf32>
    %178 = vector.extract_strided_slice %163 {offsets = [14, 50], sizes = [1, 64], strides = [1, 1]} : vector<64x128xf32> to vector<1x64xf32>
    %179 = vector.extract_strided_slice %163 {offsets = [15, 49], sizes = [1, 64], strides = [1, 1]} : vector<64x128xf32> to vector<1x64xf32>
    %180 = vector.extract_strided_slice %163 {offsets = [16, 48], sizes = [1, 64], strides = [1, 1]} : vector<64x128xf32> to vector<1x64xf32>
    %181 = vector.extract_strided_slice %163 {offsets = [17, 47], sizes = [1, 64], strides = [1, 1]} : vector<64x128xf32> to vector<1x64xf32>
    %182 = vector.extract_strided_slice %163 {offsets = [18, 46], sizes = [1, 64], strides = [1, 1]} : vector<64x128xf32> to vector<1x64xf32>
    %183 = vector.extract_strided_slice %163 {offsets = [19, 45], sizes = [1, 64], strides = [1, 1]} : vector<64x128xf32> to vector<1x64xf32>
    %184 = vector.extract_strided_slice %163 {offsets = [20, 44], sizes = [1, 64], strides = [1, 1]} : vector<64x128xf32> to vector<1x64xf32>
    %185 = vector.extract_strided_slice %163 {offsets = [21, 43], sizes = [1, 64], strides = [1, 1]} : vector<64x128xf32> to vector<1x64xf32>
    %186 = vector.extract_strided_slice %163 {offsets = [22, 42], sizes = [1, 64], strides = [1, 1]} : vector<64x128xf32> to vector<1x64xf32>
    %187 = vector.extract_strided_slice %163 {offsets = [23, 41], sizes = [1, 64], strides = [1, 1]} : vector<64x128xf32> to vector<1x64xf32>
    %188 = vector.extract_strided_slice %163 {offsets = [24, 40], sizes = [1, 64], strides = [1, 1]} : vector<64x128xf32> to vector<1x64xf32>
    %189 = vector.extract_strided_slice %163 {offsets = [25, 39], sizes = [1, 64], strides = [1, 1]} : vector<64x128xf32> to vector<1x64xf32>
    %190 = vector.extract_strided_slice %163 {offsets = [26, 38], sizes = [1, 64], strides = [1, 1]} : vector<64x128xf32> to vector<1x64xf32>
    %191 = vector.extract_strided_slice %163 {offsets = [27, 37], sizes = [1, 64], strides = [1, 1]} : vector<64x128xf32> to vector<1x64xf32>
    %192 = vector.extract_strided_slice %163 {offsets = [28, 36], sizes = [1, 64], strides = [1, 1]} : vector<64x128xf32> to vector<1x64xf32>
    %193 = vector.extract_strided_slice %163 {offsets = [29, 35], sizes = [1, 64], strides = [1, 1]} : vector<64x128xf32> to vector<1x64xf32>
    %194 = vector.extract_strided_slice %163 {offsets = [30, 34], sizes = [1, 64], strides = [1, 1]} : vector<64x128xf32> to vector<1x64xf32>
    %195 = vector.extract_strided_slice %163 {offsets = [31, 33], sizes = [1, 64], strides = [1, 1]} : vector<64x128xf32> to vector<1x64xf32>
    %196 = vector.extract_strided_slice %163 {offsets = [32, 32], sizes = [1, 64], strides = [1, 1]} : vector<64x128xf32> to vector<1x64xf32>
    %197 = vector.extract_strided_slice %163 {offsets = [33, 31], sizes = [1, 64], strides = [1, 1]} : vector<64x128xf32> to vector<1x64xf32>
    %198 = vector.extract_strided_slice %163 {offsets = [34, 30], sizes = [1, 64], strides = [1, 1]} : vector<64x128xf32> to vector<1x64xf32>
    %199 = vector.extract_strided_slice %163 {offsets = [35, 29], sizes = [1, 64], strides = [1, 1]} : vector<64x128xf32> to vector<1x64xf32>
    %200 = vector.extract_strided_slice %163 {offsets = [36, 28], sizes = [1, 64], strides = [1, 1]} : vector<64x128xf32> to vector<1x64xf32>
    %201 = vector.extract_strided_slice %163 {offsets = [37, 27], sizes = [1, 64], strides = [1, 1]} : vector<64x128xf32> to vector<1x64xf32>
    %202 = vector.extract_strided_slice %163 {offsets = [38, 26], sizes = [1, 64], strides = [1, 1]} : vector<64x128xf32> to vector<1x64xf32>
    %203 = vector.extract_strided_slice %163 {offsets = [39, 25], sizes = [1, 64], strides = [1, 1]} : vector<64x128xf32> to vector<1x64xf32>
    %204 = vector.extract_strided_slice %163 {offsets = [40, 24], sizes = [1, 64], strides = [1, 1]} : vector<64x128xf32> to vector<1x64xf32>
    %205 = vector.extract_strided_slice %163 {offsets = [41, 23], sizes = [1, 64], strides = [1, 1]} : vector<64x128xf32> to vector<1x64xf32>
    %206 = vector.extract_strided_slice %163 {offsets = [42, 22], sizes = [1, 64], strides = [1, 1]} : vector<64x128xf32> to vector<1x64xf32>
    %207 = vector.extract_strided_slice %163 {offsets = [43, 21], sizes = [1, 64], strides = [1, 1]} : vector<64x128xf32> to vector<1x64xf32>
    %208 = vector.extract_strided_slice %163 {offsets = [44, 20], sizes = [1, 64], strides = [1, 1]} : vector<64x128xf32> to vector<1x64xf32>
    %209 = vector.extract_strided_slice %163 {offsets = [45, 19], sizes = [1, 64], strides = [1, 1]} : vector<64x128xf32> to vector<1x64xf32>
    %210 = vector.extract_strided_slice %163 {offsets = [46, 18], sizes = [1, 64], strides = [1, 1]} : vector<64x128xf32> to vector<1x64xf32>
    %211 = vector.extract_strided_slice %163 {offsets = [47, 17], sizes = [1, 64], strides = [1, 1]} : vector<64x128xf32> to vector<1x64xf32>
    %212 = vector.extract_strided_slice %163 {offsets = [48, 16], sizes = [1, 64], strides = [1, 1]} : vector<64x128xf32> to vector<1x64xf32>
    %213 = vector.extract_strided_slice %163 {offsets = [49, 15], sizes = [1, 64], strides = [1, 1]} : vector<64x128xf32> to vector<1x64xf32>
    %214 = vector.extract_strided_slice %163 {offsets = [50, 14], sizes = [1, 64], strides = [1, 1]} : vector<64x128xf32> to vector<1x64xf32>
    %215 = vector.extract_strided_slice %163 {offsets = [51, 13], sizes = [1, 64], strides = [1, 1]} : vector<64x128xf32> to vector<1x64xf32>
    %216 = vector.extract_strided_slice %163 {offsets = [52, 12], sizes = [1, 64], strides = [1, 1]} : vector<64x128xf32> to vector<1x64xf32>
    %217 = vector.extract_strided_slice %163 {offsets = [53, 11], sizes = [1, 64], strides = [1, 1]} : vector<64x128xf32> to vector<1x64xf32>
    %218 = vector.extract_strided_slice %163 {offsets = [54, 10], sizes = [1, 64], strides = [1, 1]} : vector<64x128xf32> to vector<1x64xf32>
    %219 = vector.extract_strided_slice %163 {offsets = [55, 9], sizes = [1, 64], strides = [1, 1]} : vector<64x128xf32> to vector<1x64xf32>
    %220 = vector.extract_strided_slice %163 {offsets = [56, 8], sizes = [1, 64], strides = [1, 1]} : vector<64x128xf32> to vector<1x64xf32>
    %221 = vector.extract_strided_slice %163 {offsets = [57, 7], sizes = [1, 64], strides = [1, 1]} : vector<64x128xf32> to vector<1x64xf32>
    %222 = vector.extract_strided_slice %163 {offsets = [58, 6], sizes = [1, 64], strides = [1, 1]} : vector<64x128xf32> to vector<1x64xf32>
    %223 = vector.extract_strided_slice %163 {offsets = [59, 5], sizes = [1, 64], strides = [1, 1]} : vector<64x128xf32> to vector<1x64xf32>
    %224 = vector.extract_strided_slice %163 {offsets = [60, 4], sizes = [1, 64], strides = [1, 1]} : vector<64x128xf32> to vector<1x64xf32>
    %225 = vector.extract_strided_slice %163 {offsets = [61, 3], sizes = [1, 64], strides = [1, 1]} : vector<64x128xf32> to vector<1x64xf32>
    %226 = vector.extract_strided_slice %163 {offsets = [62, 2], sizes = [1, 64], strides = [1, 1]} : vector<64x128xf32> to vector<1x64xf32>
    %227 = vector.extract_strided_slice %163 {offsets = [63, 1], sizes = [1, 64], strides = [1, 1]} : vector<64x128xf32> to vector<1x64xf32>
    %228 = tpu.concatenate %164, %165, %166, %167, %168, %169, %170, %171, %172, %173, %174, %175, %176, %177, %178, %179 in 0 : vector<1x64xf32>, vector<1x64xf32>, vector<1x64xf32>, vector<1x64xf32>, vector<1x64xf32>, vector<1x64xf32>, vector<1x64xf32>, vector<1x64xf32>, vector<1x64xf32>, vector<1x64xf32>, vector<1x64xf32>, vector<1x64xf32>, vector<1x64xf32>, vector<1x64xf32>, vector<1x64xf32>, vector<1x64xf32> -> vector<16x64xf32>
    %229 = tpu.concatenate %180, %181, %182, %183, %184, %185, %186, %187, %188, %189, %190, %191, %192, %193, %194, %195 in 0 : vector<1x64xf32>, vector<1x64xf32>, vector<1x64xf32>, vector<1x64xf32>, vector<1x64xf32>, vector<1x64xf32>, vector<1x64xf32>, vector<1x64xf32>, vector<1x64xf32>, vector<1x64xf32>, vector<1x64xf32>, vector<1x64xf32>, vector<1x64xf32>, vector<1x64xf32>, vector<1x64xf32>, vector<1x64xf32> -> vector<16x64xf32>
    %230 = tpu.concatenate %196, %197, %198, %199, %200, %201, %202, %203, %204, %205, %206, %207, %208, %209, %210, %211 in 0 : vector<1x64xf32>, vector<1x64xf32>, vector<1x64xf32>, vector<1x64xf32>, vector<1x64xf32>, vector<1x64xf32>, vector<1x64xf32>, vector<1x64xf32>, vector<1x64xf32>, vector<1x64xf32>, vector<1x64xf32>, vector<1x64xf32>, vector<1x64xf32>, vector<1x64xf32>, vector<1x64xf32>, vector<1x64xf32> -> vector<16x64xf32>
    %231 = tpu.concatenate %212, %213, %214, %215, %216, %217, %218, %219, %220, %221, %222, %223, %224, %225, %226, %227 in 0 : vector<1x64xf32>, vector<1x64xf32>, vector<1x64xf32>, vector<1x64xf32>, vector<1x64xf32>, vector<1x64xf32>, vector<1x64xf32>, vector<1x64xf32>, vector<1x64xf32>, vector<1x64xf32>, vector<1x64xf32>, vector<1x64xf32>, vector<1x64xf32>, vector<1x64xf32>, vector<1x64xf32>, vector<1x64xf32> -> vector<16x64xf32>
    %232 = tpu.concatenate %228, %229, %230, %231 in 0 : vector<16x64xf32>, vector<16x64xf32>, vector<16x64xf32>, vector<16x64xf32> -> vector<64x64xf32>
    %233 = vector.extract_strided_slice %19 {offsets = [3, 0, 0], sizes = [1, 64, 128], strides = [1, 1, 1]} : vector<4x64x128xf32> to vector<1x64x128xf32>
    %234 = vector.shape_cast %233 : vector<1x64x128xf32> to vector<64x128xf32>
    %235 = vector.extract_strided_slice %234 {offsets = [0, 64], sizes = [1, 64], strides = [1, 1]} : vector<64x128xf32> to vector<1x64xf32>
    %236 = vector.extract_strided_slice %234 {offsets = [1, 63], sizes = [1, 64], strides = [1, 1]} : vector<64x128xf32> to vector<1x64xf32>
    %237 = vector.extract_strided_slice %234 {offsets = [2, 62], sizes = [1, 64], strides = [1, 1]} : vector<64x128xf32> to vector<1x64xf32>
    %238 = vector.extract_strided_slice %234 {offsets = [3, 61], sizes = [1, 64], strides = [1, 1]} : vector<64x128xf32> to vector<1x64xf32>
    %239 = vector.extract_strided_slice %234 {offsets = [4, 60], sizes = [1, 64], strides = [1, 1]} : vector<64x128xf32> to vector<1x64xf32>
    %240 = vector.extract_strided_slice %234 {offsets = [5, 59], sizes = [1, 64], strides = [1, 1]} : vector<64x128xf32> to vector<1x64xf32>
    %241 = vector.extract_strided_slice %234 {offsets = [6, 58], sizes = [1, 64], strides = [1, 1]} : vector<64x128xf32> to vector<1x64xf32>
    %242 = vector.extract_strided_slice %234 {offsets = [7, 57], sizes = [1, 64], strides = [1, 1]} : vector<64x128xf32> to vector<1x64xf32>
    %243 = vector.extract_strided_slice %234 {offsets = [8, 56], sizes = [1, 64], strides = [1, 1]} : vector<64x128xf32> to vector<1x64xf32>
    %244 = vector.extract_strided_slice %234 {offsets = [9, 55], sizes = [1, 64], strides = [1, 1]} : vector<64x128xf32> to vector<1x64xf32>
    %245 = vector.extract_strided_slice %234 {offsets = [10, 54], sizes = [1, 64], strides = [1, 1]} : vector<64x128xf32> to vector<1x64xf32>
    %246 = vector.extract_strided_slice %234 {offsets = [11, 53], sizes = [1, 64], strides = [1, 1]} : vector<64x128xf32> to vector<1x64xf32>
    %247 = vector.extract_strided_slice %234 {offsets = [12, 52], sizes = [1, 64], strides = [1, 1]} : vector<64x128xf32> to vector<1x64xf32>
    %248 = vector.extract_strided_slice %234 {offsets = [13, 51], sizes = [1, 64], strides = [1, 1]} : vector<64x128xf32> to vector<1x64xf32>
    %249 = vector.extract_strided_slice %234 {offsets = [14, 50], sizes = [1, 64], strides = [1, 1]} : vector<64x128xf32> to vector<1x64xf32>
    %250 = vector.extract_strided_slice %234 {offsets = [15, 49], sizes = [1, 64], strides = [1, 1]} : vector<64x128xf32> to vector<1x64xf32>
    %251 = vector.extract_strided_slice %234 {offsets = [16, 48], sizes = [1, 64], strides = [1, 1]} : vector<64x128xf32> to vector<1x64xf32>
    %252 = vector.extract_strided_slice %234 {offsets = [17, 47], sizes = [1, 64], strides = [1, 1]} : vector<64x128xf32> to vector<1x64xf32>
    %253 = vector.extract_strided_slice %234 {offsets = [18, 46], sizes = [1, 64], strides = [1, 1]} : vector<64x128xf32> to vector<1x64xf32>
    %254 = vector.extract_strided_slice %234 {offsets = [19, 45], sizes = [1, 64], strides = [1, 1]} : vector<64x128xf32> to vector<1x64xf32>
    %255 = vector.extract_strided_slice %234 {offsets = [20, 44], sizes = [1, 64], strides = [1, 1]} : vector<64x128xf32> to vector<1x64xf32>
    %256 = vector.extract_strided_slice %234 {offsets = [21, 43], sizes = [1, 64], strides = [1, 1]} : vector<64x128xf32> to vector<1x64xf32>
    %257 = vector.extract_strided_slice %234 {offsets = [22, 42], sizes = [1, 64], strides = [1, 1]} : vector<64x128xf32> to vector<1x64xf32>
    %258 = vector.extract_strided_slice %234 {offsets = [23, 41], sizes = [1, 64], strides = [1, 1]} : vector<64x128xf32> to vector<1x64xf32>
    %259 = vector.extract_strided_slice %234 {offsets = [24, 40], sizes = [1, 64], strides = [1, 1]} : vector<64x128xf32> to vector<1x64xf32>
    %260 = vector.extract_strided_slice %234 {offsets = [25, 39], sizes = [1, 64], strides = [1, 1]} : vector<64x128xf32> to vector<1x64xf32>
    %261 = vector.extract_strided_slice %234 {offsets = [26, 38], sizes = [1, 64], strides = [1, 1]} : vector<64x128xf32> to vector<1x64xf32>
    %262 = vector.extract_strided_slice %234 {offsets = [27, 37], sizes = [1, 64], strides = [1, 1]} : vector<64x128xf32> to vector<1x64xf32>
    %263 = vector.extract_strided_slice %234 {offsets = [28, 36], sizes = [1, 64], strides = [1, 1]} : vector<64x128xf32> to vector<1x64xf32>
    %264 = vector.extract_strided_slice %234 {offsets = [29, 35], sizes = [1, 64], strides = [1, 1]} : vector<64x128xf32> to vector<1x64xf32>
    %265 = vector.extract_strided_slice %234 {offsets = [30, 34], sizes = [1, 64], strides = [1, 1]} : vector<64x128xf32> to vector<1x64xf32>
    %266 = vector.extract_strided_slice %234 {offsets = [31, 33], sizes = [1, 64], strides = [1, 1]} : vector<64x128xf32> to vector<1x64xf32>
    %267 = vector.extract_strided_slice %234 {offsets = [32, 32], sizes = [1, 64], strides = [1, 1]} : vector<64x128xf32> to vector<1x64xf32>
    %268 = vector.extract_strided_slice %234 {offsets = [33, 31], sizes = [1, 64], strides = [1, 1]} : vector<64x128xf32> to vector<1x64xf32>
    %269 = vector.extract_strided_slice %234 {offsets = [34, 30], sizes = [1, 64], strides = [1, 1]} : vector<64x128xf32> to vector<1x64xf32>
    %270 = vector.extract_strided_slice %234 {offsets = [35, 29], sizes = [1, 64], strides = [1, 1]} : vector<64x128xf32> to vector<1x64xf32>
    %271 = vector.extract_strided_slice %234 {offsets = [36, 28], sizes = [1, 64], strides = [1, 1]} : vector<64x128xf32> to vector<1x64xf32>
    %272 = vector.extract_strided_slice %234 {offsets = [37, 27], sizes = [1, 64], strides = [1, 1]} : vector<64x128xf32> to vector<1x64xf32>
    %273 = vector.extract_strided_slice %234 {offsets = [38, 26], sizes = [1, 64], strides = [1, 1]} : vector<64x128xf32> to vector<1x64xf32>
    %274 = vector.extract_strided_slice %234 {offsets = [39, 25], sizes = [1, 64], strides = [1, 1]} : vector<64x128xf32> to vector<1x64xf32>
    %275 = vector.extract_strided_slice %234 {offsets = [40, 24], sizes = [1, 64], strides = [1, 1]} : vector<64x128xf32> to vector<1x64xf32>
    %276 = vector.extract_strided_slice %234 {offsets = [41, 23], sizes = [1, 64], strides = [1, 1]} : vector<64x128xf32> to vector<1x64xf32>
    %277 = vector.extract_strided_slice %234 {offsets = [42, 22], sizes = [1, 64], strides = [1, 1]} : vector<64x128xf32> to vector<1x64xf32>
    %278 = vector.extract_strided_slice %234 {offsets = [43, 21], sizes = [1, 64], strides = [1, 1]} : vector<64x128xf32> to vector<1x64xf32>
    %279 = vector.extract_strided_slice %234 {offsets = [44, 20], sizes = [1, 64], strides = [1, 1]} : vector<64x128xf32> to vector<1x64xf32>
    %280 = vector.extract_strided_slice %234 {offsets = [45, 19], sizes = [1, 64], strides = [1, 1]} : vector<64x128xf32> to vector<1x64xf32>
    %281 = vector.extract_strided_slice %234 {offsets = [46, 18], sizes = [1, 64], strides = [1, 1]} : vector<64x128xf32> to vector<1x64xf32>
    %282 = vector.extract_strided_slice %234 {offsets = [47, 17], sizes = [1, 64], strides = [1, 1]} : vector<64x128xf32> to vector<1x64xf32>
    %283 = vector.extract_strided_slice %234 {offsets = [48, 16], sizes = [1, 64], strides = [1, 1]} : vector<64x128xf32> to vector<1x64xf32>
    %284 = vector.extract_strided_slice %234 {offsets = [49, 15], sizes = [1, 64], strides = [1, 1]} : vector<64x128xf32> to vector<1x64xf32>
    %285 = vector.extract_strided_slice %234 {offsets = [50, 14], sizes = [1, 64], strides = [1, 1]} : vector<64x128xf32> to vector<1x64xf32>
    %286 = vector.extract_strided_slice %234 {offsets = [51, 13], sizes = [1, 64], strides = [1, 1]} : vector<64x128xf32> to vector<1x64xf32>
    %287 = vector.extract_strided_slice %234 {offsets = [52, 12], sizes = [1, 64], strides = [1, 1]} : vector<64x128xf32> to vector<1x64xf32>
    %288 = vector.extract_strided_slice %234 {offsets = [53, 11], sizes = [1, 64], strides = [1, 1]} : vector<64x128xf32> to vector<1x64xf32>
    %289 = vector.extract_strided_slice %234 {offsets = [54, 10], sizes = [1, 64], strides = [1, 1]} : vector<64x128xf32> to vector<1x64xf32>
    %290 = vector.extract_strided_slice %234 {offsets = [55, 9], sizes = [1, 64], strides = [1, 1]} : vector<64x128xf32> to vector<1x64xf32>
    %291 = vector.extract_strided_slice %234 {offsets = [56, 8], sizes = [1, 64], strides = [1, 1]} : vector<64x128xf32> to vector<1x64xf32>
    %292 = vector.extract_strided_slice %234 {offsets = [57, 7], sizes = [1, 64], strides = [1, 1]} : vector<64x128xf32> to vector<1x64xf32>
    %293 = vector.extract_strided_slice %234 {offsets = [58, 6], sizes = [1, 64], strides = [1, 1]} : vector<64x128xf32> to vector<1x64xf32>
    %294 = vector.extract_strided_slice %234 {offsets = [59, 5], sizes = [1, 64], strides = [1, 1]} : vector<64x128xf32> to vector<1x64xf32>
    %295 = vector.extract_strided_slice %234 {offsets = [60, 4], sizes = [1, 64], strides = [1, 1]} : vector<64x128xf32> to vector<1x64xf32>
    %296 = vector.extract_strided_slice %234 {offsets = [61, 3], sizes = [1, 64], strides = [1, 1]} : vector<64x128xf32> to vector<1x64xf32>
    %297 = vector.extract_strided_slice %234 {offsets = [62, 2], sizes = [1, 64], strides = [1, 1]} : vector<64x128xf32> to vector<1x64xf32>
    %298 = vector.extract_strided_slice %234 {offsets = [63, 1], sizes = [1, 64], strides = [1, 1]} : vector<64x128xf32> to vector<1x64xf32>
    %299 = tpu.concatenate %235, %236, %237, %238, %239, %240, %241, %242, %243, %244, %245, %246, %247, %248, %249, %250 in 0 : vector<1x64xf32>, vector<1x64xf32>, vector<1x64xf32>, vector<1x64xf32>, vector<1x64xf32>, vector<1x64xf32>, vector<1x64xf32>, vector<1x64xf32>, vector<1x64xf32>, vector<1x64xf32>, vector<1x64xf32>, vector<1x64xf32>, vector<1x64xf32>, vector<1x64xf32>, vector<1x64xf32>, vector<1x64xf32> -> vector<16x64xf32>
    %300 = tpu.concatenate %251, %252, %253, %254, %255, %256, %257, %258, %259, %260, %261, %262, %263, %264, %265, %266 in 0 : vector<1x64xf32>, vector<1x64xf32>, vector<1x64xf32>, vector<1x64xf32>, vector<1x64xf32>, vector<1x64xf32>, vector<1x64xf32>, vector<1x64xf32>, vector<1x64xf32>, vector<1x64xf32>, vector<1x64xf32>, vector<1x64xf32>, vector<1x64xf32>, vector<1x64xf32>, vector<1x64xf32>, vector<1x64xf32> -> vector<16x64xf32>
    %301 = tpu.concatenate %267, %268, %269, %270, %271, %272, %273, %274, %275, %276, %277, %278, %279, %280, %281, %282 in 0 : vector<1x64xf32>, vector<1x64xf32>, vector<1x64xf32>, vector<1x64xf32>, vector<1x64xf32>, vector<1x64xf32>, vector<1x64xf32>, vector<1x64xf32>, vector<1x64xf32>, vector<1x64xf32>, vector<1x64xf32>, vector<1x64xf32>, vector<1x64xf32>, vector<1x64xf32>, vector<1x64xf32>, vector<1x64xf32> -> vector<16x64xf32>
    %302 = tpu.concatenate %283, %284, %285, %286, %287, %288, %289, %290, %291, %292, %293, %294, %295, %296, %297, %298 in 0 : vector<1x64xf32>, vector<1x64xf32>, vector<1x64xf32>, vector<1x64xf32>, vector<1x64xf32>, vector<1x64xf32>, vector<1x64xf32>, vector<1x64xf32>, vector<1x64xf32>, vector<1x64xf32>, vector<1x64xf32>, vector<1x64xf32>, vector<1x64xf32>, vector<1x64xf32>, vector<1x64xf32>, vector<1x64xf32> -> vector<16x64xf32>
    %303 = tpu.concatenate %299, %300, %301, %302 in 0 : vector<16x64xf32>, vector<16x64xf32>, vector<16x64xf32>, vector<16x64xf32> -> vector<64x64xf32>
    %304 = vector.shape_cast %90 : vector<64x64xf32> to vector<1x64x64xf32>
    %305 = vector.shape_cast %161 : vector<64x64xf32> to vector<1x64x64xf32>
    %306 = vector.shape_cast %232 : vector<64x64xf32> to vector<1x64x64xf32>
    %307 = vector.shape_cast %303 : vector<64x64xf32> to vector<1x64x64xf32>
    %308 = tpu.concatenate %304, %305, %306, %307 in 0 : vector<1x64x64xf32>, vector<1x64x64xf32>, vector<1x64x64xf32>, vector<1x64x64xf32> -> vector<4x64x64xf32>
    %309 = arith.addf %15, %308 : vector<4x64x64xf32>
    %cst_17 = arith.constant dense<0xFF800000> : vector<4x64xf32>
    %310 = vector.multi_reduction <maximumf>, %309, %cst_17 [2] : vector<4x64x64xf32> to vector<4x64xf32>
    %311 = vector.shape_cast %310 : vector<4x64xf32> to vector<4x64x1xf32>
    %312 = vector.broadcast %311 : vector<4x64x1xf32> to vector<4x64x64xf32>
    %313 = arith.subf %309, %312 : vector<4x64x64xf32>
    %314 = math.exp %313 : vector<4x64x64xf32>
    %cst_18 = arith.constant dense<0.000000e+00> : vector<4x64xf32>
    %315 = vector.multi_reduction <add>, %314, %cst_18 [2] : vector<4x64x64xf32> to vector<4x64xf32>
    %316 = vector.shape_cast %315 : vector<4x64xf32> to vector<4x64x1xf32>
    %317 = tpu.reciprocal %316 {approx = true} : vector<4x64x1xf32> -> vector<4x64x1xf32>
    %318 = vector.broadcast %317 : vector<4x64x1xf32> to vector<4x64x64xf32>
    %319 = arith.mulf %314, %318 : vector<4x64x64xf32>
    %320 = arith.truncf %319 : vector<4x64x64xf32> to vector<4x64x64xbf16>
    %c0_19 = arith.constant 0 : index
    %c0_20 = arith.constant 0 : index
    %c0_21 = arith.constant 0 : index
    %c0_22 = arith.constant 0 : index
    %321 = vector.load %arg4[%c0_19, %c0_20, %c0_21, %c0_22] : memref<1x4x64x32xbf16, #tpu.memory_space<vmem>>, vector<1x4x64x32xbf16>
    %322 = vector.shape_cast %321 : vector<1x4x64x32xbf16> to vector<4x64x32xbf16>
    %cst_23 = arith.constant dense<0.000000e+00> : vector<4x64x32xf32>
    %323 = tpu.matmul %320, %322, %cst_23 {dimension_numbers = #tpu.dot_dimension_numbers<[2], [1], [1], [2], [0, 0, 0, 1, 1, 2], [0], [0]>} : vector<4x64x64xbf16>, vector<4x64x32xbf16>, vector<4x64x32xf32> -> vector<4x64x32xf32>
    %324 = arith.truncf %323 : vector<4x64x32xf32> to vector<4x64x32xbf16>
    %c0_24 = arith.constant 0 : index
    %c0_25 = arith.constant 0 : index
    %c0_26 = arith.constant 0 : index
    %325 = vector.load %arg9[%c0_24, %c0_25, %c0_26] : memref<4x32x128xbf16, #tpu.memory_space<vmem>>, vector<4x32x128xbf16>
    %cst_27 = arith.constant 0.000000e+00 : f32
    %326 = vector.broadcast %cst_27 : f32 to vector<64x128xf32>
    %327 = vector.extract_strided_slice %324 {offsets = [0, 0, 0], sizes = [1, 64, 32], strides = [1, 1, 1]} : vector<4x64x32xbf16> to vector<1x64x32xbf16>
    %328 = vector.shape_cast %327 : vector<1x64x32xbf16> to vector<64x32xbf16>
    %329 = vector.extract_strided_slice %325 {offsets = [0, 0, 0], sizes = [1, 32, 128], strides = [1, 1, 1]} : vector<4x32x128xbf16> to vector<1x32x128xbf16>
    %330 = vector.shape_cast %329 : vector<1x32x128xbf16> to vector<32x128xbf16>
    %cst_28 = arith.constant dense<0.000000e+00> : vector<64x128xf32>
    %331 = tpu.matmul %328, %330, %cst_28 {dimension_numbers = #tpu.dot_dimension_numbers<[1], [0], [0], [1], [0, 0, 1, 1], [], []>} : vector<64x32xbf16>, vector<32x128xbf16>, vector<64x128xf32> -> vector<64x128xf32>
    %332 = arith.addf %326, %331 : vector<64x128xf32>
    %333 = vector.extract_strided_slice %324 {offsets = [1, 0, 0], sizes = [1, 64, 32], strides = [1, 1, 1]} : vector<4x64x32xbf16> to vector<1x64x32xbf16>
    %334 = vector.shape_cast %333 : vector<1x64x32xbf16> to vector<64x32xbf16>
    %335 = vector.extract_strided_slice %325 {offsets = [1, 0, 0], sizes = [1, 32, 128], strides = [1, 1, 1]} : vector<4x32x128xbf16> to vector<1x32x128xbf16>
    %336 = vector.shape_cast %335 : vector<1x32x128xbf16> to vector<32x128xbf16>
    %cst_29 = arith.constant dense<0.000000e+00> : vector<64x128xf32>
    %337 = tpu.matmul %334, %336, %cst_29 {dimension_numbers = #tpu.dot_dimension_numbers<[1], [0], [0], [1], [0, 0, 1, 1], [], []>} : vector<64x32xbf16>, vector<32x128xbf16>, vector<64x128xf32> -> vector<64x128xf32>
    %338 = arith.addf %332, %337 : vector<64x128xf32>
    %339 = vector.extract_strided_slice %324 {offsets = [2, 0, 0], sizes = [1, 64, 32], strides = [1, 1, 1]} : vector<4x64x32xbf16> to vector<1x64x32xbf16>
    %340 = vector.shape_cast %339 : vector<1x64x32xbf16> to vector<64x32xbf16>
    %341 = vector.extract_strided_slice %325 {offsets = [2, 0, 0], sizes = [1, 32, 128], strides = [1, 1, 1]} : vector<4x32x128xbf16> to vector<1x32x128xbf16>
    %342 = vector.shape_cast %341 : vector<1x32x128xbf16> to vector<32x128xbf16>
    %cst_30 = arith.constant dense<0.000000e+00> : vector<64x128xf32>
    %343 = tpu.matmul %340, %342, %cst_30 {dimension_numbers = #tpu.dot_dimension_numbers<[1], [0], [0], [1], [0, 0, 1, 1], [], []>} : vector<64x32xbf16>, vector<32x128xbf16>, vector<64x128xf32> -> vector<64x128xf32>
    %344 = arith.addf %338, %343 : vector<64x128xf32>
    %345 = vector.extract_strided_slice %324 {offsets = [3, 0, 0], sizes = [1, 64, 32], strides = [1, 1, 1]} : vector<4x64x32xbf16> to vector<1x64x32xbf16>
    %346 = vector.shape_cast %345 : vector<1x64x32xbf16> to vector<64x32xbf16>
    %347 = vector.extract_strided_slice %325 {offsets = [3, 0, 0], sizes = [1, 32, 128], strides = [1, 1, 1]} : vector<4x32x128xbf16> to vector<1x32x128xbf16>
    %348 = vector.shape_cast %347 : vector<1x32x128xbf16> to vector<32x128xbf16>
    %cst_31 = arith.constant dense<0.000000e+00> : vector<64x128xf32>
    %349 = tpu.matmul %346, %348, %cst_31 {dimension_numbers = #tpu.dot_dimension_numbers<[1], [0], [0], [1], [0, 0, 1, 1], [], []>} : vector<64x32xbf16>, vector<32x128xbf16>, vector<64x128xf32> -> vector<64x128xf32>
    %350 = arith.addf %344, %349 : vector<64x128xf32>
    %c0_32 = arith.constant 0 : index
    %c0_33 = arith.constant 0 : index
    %c0_34 = arith.constant 0 : index
    %351 = vector.load %arg8[%c0_32, %c0_33, %c0_34] : memref<1x64x128xf32, #tpu.memory_space<vmem>>, vector<1x64x128xf32>
    %352 = vector.shape_cast %351 : vector<1x64x128xf32> to vector<64x128xf32>
    %353 = arith.addf %350, %352 : vector<64x128xf32>
    %cst_35 = arith.constant dense<0.000000e+00> : vector<64xf32>
    %354 = vector.multi_reduction <add>, %353, %cst_35 [1] : vector<64x128xf32> to vector<64xf32>
    %355 = vector.shape_cast %354 : vector<64xf32> to vector<64x1xf32>
    %cst_36 = arith.constant 1.280000e+02 : f32
    %356 = vector.broadcast %cst_36 : f32 to vector<64x1xf32>
    %357 = arith.divf %355, %356 : vector<64x1xf32>
    %358 = vector.broadcast %357 : vector<64x1xf32> to vector<64x128xf32>
    %359 = arith.subf %353, %358 : vector<64x128xf32>
    %360 = arith.mulf %359, %359 : vector<64x128xf32>
    %cst_37 = arith.constant dense<0.000000e+00> : vector<64xf32>
    %361 = vector.multi_reduction <add>, %360, %cst_37 [1] : vector<64x128xf32> to vector<64xf32>
    %362 = vector.shape_cast %361 : vector<64xf32> to vector<64x1xf32>
    %cst_38 = arith.constant 1.280000e+02 : f32
    %363 = vector.broadcast %cst_38 : f32 to vector<64x1xf32>
    %364 = arith.divf %362, %363 : vector<64x1xf32>
    %365 = vector.broadcast %357 : vector<64x1xf32> to vector<64x128xf32>
    %366 = arith.subf %353, %365 : vector<64x128xf32>
    %cst_39 = arith.constant 9.99999974E-6 : f32
    %367 = vector.broadcast %cst_39 : f32 to vector<64x1xf32>
    %368 = arith.addf %364, %367 : vector<64x1xf32>
    %369 = math.rsqrt %368 : vector<64x1xf32>
    %370 = vector.broadcast %369 : vector<64x1xf32> to vector<64x128xf32>
    %371 = arith.mulf %366, %370 : vector<64x128xf32>
    %c0_40 = arith.constant 0 : index
    %c0_41 = arith.constant 0 : index
    %372 = vector.load %arg10[%c0_40, %c0_41] : memref<1x128xf32, #tpu.memory_space<vmem>>, vector<1x128xf32>
    %373 = vector.broadcast %372 : vector<1x128xf32> to vector<64x128xf32>
    %374 = arith.mulf %371, %373 : vector<64x128xf32>
    %c0_42 = arith.constant 0 : index
    %c0_43 = arith.constant 0 : index
    %375 = vector.load %arg11[%c0_42, %c0_43] : memref<1x128xf32, #tpu.memory_space<vmem>>, vector<1x128xf32>
    %376 = vector.broadcast %375 : vector<1x128xf32> to vector<64x128xf32>
    %377 = arith.addf %374, %376 : vector<64x128xf32>
    %c0_44 = arith.constant 0 : index
    %c0_45 = arith.constant 0 : index
    %c0_46 = arith.constant 0 : index
    %378 = vector.load %arg12[%c0_44, %c0_45, %c0_46] : memref<1x64x128xf32, #tpu.memory_space<vmem>>, vector<1x64x128xf32>
    %379 = vector.shape_cast %378 : vector<1x64x128xf32> to vector<64x128xf32>
    %380 = vector.shape_cast %377 : vector<64x128xf32> to vector<1x64x128xf32>
    tpu.vector_store %arg12[%c0_44, %c0_45, %c0_46], %380 {strides = array<i32>} : memref<1x64x128xf32, #tpu.memory_space<vmem>>, vector<1x64x128xf32>,
    return
  }
  func.func @transform_0(%arg0: i32, %arg1: i32) -> (i32, i32, i32, i32) {
    %c0_i32 = arith.constant 0 : i32
    %c0_i32_0 = arith.constant 0 : i32
    %c0_i32_1 = arith.constant 0 : i32
    return %arg0, %c0_i32, %arg1, %c0_i32_0 : i32, i32, i32, i32
  }
  func.func @transform_1(%arg0: i32, %arg1: i32) -> (i32, i32, i32, i32) {
    %c0_i32 = arith.constant 0 : i32
    %c0_i32_0 = arith.constant 0 : i32
    %c0_i32_1 = arith.constant 0 : i32
    %c0_i32_2 = arith.constant 0 : i32
    return %arg0, %c0_i32, %c0_i32_0, %c0_i32_1 : i32, i32, i32, i32
  }
  func.func @transform_2(%arg0: i32, %arg1: i32) -> (i32, i32, i32, i32) {
    %c0_i32 = arith.constant 0 : i32
    %c0_i32_0 = arith.constant 0 : i32
    %c0_i32_1 = arith.constant 0 : i32
    %c0_i32_2 = arith.constant 0 : i32
    return %arg0, %c0_i32, %c0_i32_0, %c0_i32_1 : i32, i32, i32, i32
  }
  func.func @transform_3(%arg0: i32, %arg1: i32) -> (i32, i32, i32, i32) {
    %c0_i32 = arith.constant 0 : i32
    %c0_i32_0 = arith.constant 0 : i32
    %c0_i32_1 = arith.constant 0 : i32
    %c0_i32_2 = arith.constant 0 : i32
    return %arg0, %c0_i32, %c0_i32_0, %c0_i32_1 : i32, i32, i32, i32
  }
  func.func @transform_4(%arg0: i32, %arg1: i32) -> (i32, i32, i32) {
    %c0_i32 = arith.constant 0 : i32
    %c0_i32_0 = arith.constant 0 : i32
    %c0_i32_1 = arith.constant 0 : i32
    %c0_i32_2 = arith.constant 0 : i32
    return %c0_i32, %c0_i32_0, %c0_i32_1 : i32, i32, i32
  }
  func.func @transform_5(%arg0: i32, %arg1: i32) -> (i32, i32, i32) {
    %c0_i32 = arith.constant 0 : i32
    %c0_i32_0 = arith.constant 0 : i32
    %c0_i32_1 = arith.constant 0 : i32
    %c0_i32_2 = arith.constant 0 : i32
    return %c0_i32, %c0_i32_0, %c0_i32_1 : i32, i32, i32
  }
  func.func @transform_6(%arg0: i32, %arg1: i32) -> (i32, i32, i32) {
    %c0_i32 = arith.constant 0 : i32
    %c0_i32_0 = arith.constant 0 : i32
    return %arg0, %arg1, %c0_i32 : i32, i32, i32
  }
  func.func @transform_7(%arg0: i32, %arg1: i32) -> (i32, i32, i32) {
    %c0_i32 = arith.constant 0 : i32
    %c0_i32_0 = arith.constant 0 : i32
    %c0_i32_1 = arith.constant 0 : i32
    %c0_i32_2 = arith.constant 0 : i32
    return %c0_i32, %c0_i32_0, %c0_i32_1 : i32, i32, i32
  }
  func.func @transform_8(%arg0: i32, %arg1: i32) -> (i32, i32) {
    %c0_i32 = arith.constant 0 : i32
    %c0_i32_0 = arith.constant 0 : i32
    %c0_i32_1 = arith.constant 0 : i32
    return %c0_i32, %c0_i32_0 : i32, i32
  }
  func.func @transform_9(%arg0: i32, %arg1: i32) -> (i32, i32) {
    %c0_i32 = arith.constant 0 : i32
    %c0_i32_0 = arith.constant 0 : i32
    %c0_i32_1 = arith.constant 0 : i32
    return %c0_i32, %c0_i32_0 : i32, i32
  }
  func.func @transform_10(%arg0: i32, %arg1: i32) -> (i32, i32, i32) {
    %c0_i32 = arith.constant 0 : i32
    %c0_i32_0 = arith.constant 0 : i32
    return %arg0, %arg1, %c0_i32 : i32, i32, i32
  }
}

</mosaic_0001>

<bundles_post_ra>
// kernel: tpu_custom_call.1
= control target key start
LH: loop header
LB: loop body
LE: loop exit
PB: predicated region body
PF: predicated region fallthrough
CT: control target
= control target key end

     0   :  { %6 = vsyncpa [#allocation3], 0  ;;  %s130_s0 = inlined_call_operand.hbm [shape: f32[8,128], index: 0, kind: input, shape index: {}]   ;;  %s131_s1 = inlined_call_operand.hbm [shape: f32[8,128], index: 1, kind: output, shape index: {}]  }
   0x1   :  { %7 = vsyncpa [#allocation4], 0  ;;  %s93_s6 = smov [#allocation2]   ;;  %s45_s10 = scalar_lea.hbm %s130_s0, 128 }
   0x2   :  { %s14_s7 = sshll.u32 %s93_s6, 4  ;;  %p46_p0 = scmp.ne.s32.totalorder %s130_s0, %s45_s10  ;;  %s15_s7 = int_to_ptr.vmem [resolvable:$true] %s14_s7 }
   0x3   :  { %p49_p1 = scmp.lt.u32.totalorder %s45_s10, %s130_s0 }
   0x5   :  { %p51_p2 = pnand %p49_p1, %p46_p0 }
   0x7   :  { %54 = shalt.err (!%p51_p2)
}
   0x8   :  { %s55_s15 = scalar_lea.vmem %s15_s7, 128  ;;  %p60_p4 = scmp.lt.s32.totalorder %s15_s7, %s15_s7 }
   0x9   :  { %p56_p3 = scmp.ne.s32.totalorder %s15_s7, %s55_s15  ;;  %p61_p5 = scmp.lt.s32.totalorder %s55_s15, %s55_s15 }
   0xb   :  { %p62_p6 = por %p61_p5, %p60_p4 }
   0xd   :  { %p63_p7 = pnand %p62_p6, %p56_p3 }
   0xf   :  { %66 = shalt.err (!%p63_p7)
}
  0x10   :  { %17 = dma.hbm_to_vmem [thread:$0]  %s130_s0, 128, %s15_s7, [#allocation3]  }
  0x11   :  { %89 = dma.done.wait [#allocation3], 128  }
  0x12   :  { %90 = vsyncadd [#allocation3], 4294967168  ;;  %v21_v0 = vld [vmem:[#allocation2] sm:$0xff]  ;;  %s94_s18 = smov 376   ;;  %s95_s19 = smov [#allocation5]  }
  0x13   :  { %24 = vrot.lane.b32.xlu0 %v21_v0, %s94_s18  ;;  %s33_s20 = sshll.u32 %s95_s19, 4  ;;  %s34_s20 = int_to_ptr.vmem [resolvable:$true] %s33_s20 }
  0x14   :  { %s67_s21 = scalar_lea.vmem %s34_s20, 128  ;;  %p72_p9 = scmp.lt.s32.totalorder %s34_s20, %s34_s20 }
  0x15   :  { %p68_p8 = scmp.ne.s32.totalorder %s34_s20, %s67_s21  ;;  %p73_p10 = scmp.lt.s32.totalorder %s67_s21, %s67_s21 }
  0x17   :  { %p74_p11 = por %p73_p10, %p72_p9 }
  0x19   :  { %p75_p12 = pnand %p74_p11, %p68_p8 }
  0x85   :  { %v25_v1 = vpop.permute.xlu0 %24 }
  0x86   :  { %26 = vst [vmem:[#allocation5] sm:$0xff] %v25_v1 }
  0x87   :  { %78 = shalt.err (!%p75_p12)
}
  0x88   :  { %s79_s0 = scalar_lea.hbm %s131_s1, 128 }
  0x89   :  { %p80_p13 = scmp.ne.s32.totalorder %s131_s1, %s79_s0  ;;  %p83_p0 = scmp.lt.u32.totalorder %s79_s0, %s131_s1 }
  0x8b   :  { %p85_p1 = pnand %p83_p0, %p80_p13 }
  0x8d   :  { %88 = shalt.err (!%p85_p1)
}
  0x8e   :  { %36 = dma.vmem_to_hbm [thread:$0]  %s34_s20, 128, %s131_s1, [#allocation4]  }
  0x8f   :  { %91 = dma.done.wait [#allocation4], 128  }
  0x90   :  { %92 = vsyncadd [#allocation4], 4294967168 }
  0x91   :  { %40 = vsyncpa [#allocation3], 1 }
  0x92   :  { %41 = vsyncpa [#allocation4], 1 }

// kernel: tpu_custom_call.1
= control target key start
LH: loop header
LB: loop body
LE: loop exit
PB: predicated region body
PF: predicated region fallthrough
CT: control target
= control target key end

     0   :  { %s8035_s0 = inlined_call_operand.vmem [shape: f32[2,4,64,32], index: 0, kind: input, shape index: {}]   ;;  %s8036_s1 = inlined_call_operand.vmem [shape: bf16[2,4,64,32], index: 1, kind: input, shape index: {}]   ;;  %s8037_s2 = inlined_call_operand.vmem [shape: bf16[2,4,64,32], index: 2, kind: input, shape index: {}]   ;;  %s8038_s3 = inlined_call_operand.vmem [shape: bf16[2,4,128,32], index: 3, kind: input, shape index: {}]   ;;  %s8039_s4 = inlined_call_operand.vmem [shape: f32[4,1,32], index: 4, kind: input, shape index: {}]   ;;  %s8040_s5 = inlined_call_operand.vmem [shape: f32[4,1,32], index: 5, kind: input, shape index: {}]   ;;  %s8041_s6 = inlined_call_operand.vmem [shape: f32[2,64,128], index: 6, kind: input, shape index: {}]   ;;  %s8042_s7 = inlined_call_operand.vmem [shape: bf16[4,32,128], index: 7, kind: input, shape index: {}]   ;;  %s8043_s8 = inlined_call_operand.vmem [shape: f32[1,128], index: 8, kind: input, shape index: {}]   ;;  %s8044_s9 = inlined_call_operand.vmem [shape: f32[1,128], index: 9, kind: input, shape index: {}]   ;;  %s8045_s10 = inlined_call_operand.hbm [shape: f32[2,64,128], index: 10, kind: output, shape index: {}]  }
   0x1   :  { %8097 = sst [smem:[#allocation120_spill]] %s8035_s0 }
   0x2   :  { %8098 = sst [smem:[#allocation121_spill]] %s8038_s3 }
   0x3   :  { %8099 = sst [smem:[#allocation122_spill]] %s8040_s5 }
   0x4   :  { %8100 = sst [smem:[#allocation123_spill]] %s8045_s10 }
   0x5   :  { %15 = vsyncpa [#allocation3], 0 }
   0x6   :  { %17 = vsyncpa [#allocation3 + $0x1], 0  ;;  %s5558_s13 = smov 0   ;;  %s5560_s14 = smov 0  }
   0x7   :  { %s5562_s15 = smov 0   ;;  %s5564_s16 = smov 0  }
   0x8   :  { %s5566_s17 = smov 0   ;;  %s5568_s18 = smov 0  }
   0x9 LB: > { %8101 = sst [smem:[#allocation5_spill]] %s5460_s13  ;;  %s4435_s19 = sadd.s32 4294967295, %s5480_s18   ;;  %s5480_s18 = sphi %s5568_s18, %s23_s18   ;;  %s5476_s17 = sphi %s5566_s17, %s8353_s17   ;;  %s5472_s16 = sphi %s5564_s16, %s8352_s16   ;;  %s5468_s15 = sphi %s5562_s15, %s8351_s15   ;;  %s5464_s14 = sphi %s5560_s14, %s8355_s14   ;;  %s5460_s13 = sphi %s5558_s13, %s8354_s13  }
   0xa   : > { %8102 = sst [smem:[#allocation6_spill]] %s5468_s15  ;;  %s4436_s20 = sadd.s32 4294967294, %s5480_s18  }
   0xb   : > { %8103 = sst [smem:[#allocation7_spill]] %s5476_s17  ;;  %s35_s21 = sadd.s32 1, %s5476_s17 }
   0xc   : > { %8104 = sst [smem:[#allocation8_spill]] %s5480_s18  ;;  %s283_s22 = sadd.s32 1, %s5468_s15 }
   0xd   : > { %p37_p0 = scmp.ge.s32.totalorder %s35_s21, 2  ;;  %p293_p1 = scmp.ne.s32.totalorder %s5468_s15, %s5464_s14 }
   0xe   : > { %p294_p2 = scmp.eq.s32.totalorder %s4435_s19, 1  ;;  %p299_p3 = scmp.ne.s32.totalorder %s5464_s14, %s5460_s13 }
   0xf   : > { %s8357_s21 = smov (%p37_p0, %s35_s21), 0  ;;  %p300_p5 = scmp.eq.s32.totalorder %s4436_s20, 1 }
  0x10   : > { %8105 = sst [smem:[#allocation9_spill]] %s8357_s21  ;;  %p5598_p4 = por %p294_p2, %p293_p1 }
  0x11   : > { %s278_s24 = ssub.s32 %s5476_s17, %s8357_s21  ;;  %p4439_p6 = scmp.ge.s32.totalorder %s5480_s18, 1 }
  0x12   : > { %p281_p7 = scmp.eq.s32.totalorder %s278_s24, 0  ;;  %p5605_p8 = por %p300_p5, %p299_p3 }
  0x13   : > { %p383_p9 = scmp.lt.s32.totalorder %s5480_s18, 3 }
  0x14   : > { %s8107_s25 = scalar_select %p5605_p8, 1, 0 }
  0x15   : > { %s5611_s26 = scalar_select %p281_p7, %s5468_s15, %s283_s22  }
  0x16   : > { %8108 = sst [smem:[#allocation10_spill]] %s8107_s25  ;;  %p384_p10 = pnand %p4439_p6, %p383_p9 }
  0x17   : > { %8109 = sst [smem:[#allocation11_spill]] %s5611_s26 }
  0x18   : > { %387 = sbr.rel (%p384_p10) target bundleno = 2182 (0x886), region = 60 }
  0x1f   : > { %p450_p11 = scmp.lt.s32.totalorder %s5472_s16, 1  ;;  %vm812_vm0 = vcmask 261120   ;;  %s8110_s3 = sld [smem:[#allocation121_spill]]  ;;  %v4452_v11 = vld [vmem:[%s8039_s4 + $0x1] ss:$0 sm:$0xff]  ;;  %vm1384_vm1 = vcmask 1040384  }
  0x20   : > { %s8111_s0 = sld [smem:[#allocation120_spill]]  ;;  %s8112_s5 = sld [smem:[#allocation122_spill]]  ;;  %v4451_v22 = vld [vmem:[%s8039_s4] ss:$0 sm:$0xff]  ;;  %vm1386_vm2 = vcmask 1041408   ;;  %vm1388_vm3 = vcmask 1042432  }
  0x21   : > { %s5615_s27 = scalar_select %p450_p11, %s5472_s16, 1  ;;  %vm1390_vm4 = vcmask 1043456   ;;  %vm1392_vm5 = vcmask 1044480   ;;  %vm1394_vm6 = vcmask 1045504   ;;  %vm1396_vm7 = vcmask 1046528  }
  0x22   : > { %s8053_s24 = smov 1   ;;  %s8067_s29 = smov 3   ;;  %vm2932_vm8 = vcmask 523264  }
  0x23   : > { %s4602_s28 = sshll.u32 %s5615_s27, 8  ;;  %s8055_s30 = smov 4  }
  0x24   : > { %s8049_s12 = smov 6   ;;  %s8073_s21 = smov 8  }
  0x25   : > { %s5621_s11 = scalar_lea.vmem %s8110_s3, %s4602_s28  ;;  %s8047_s3 = smov 7  }
  0x26   : > { %v5163_v0 = vld [vmem:[%s5621_s11 + $0x40] sm:$0xff]   ;;  %v5165_v3 = vld [vmem:[%s5621_s11 + $0x48] sm:$0xff]   ;;  %v5167_v7 = vld [vmem:[%s5621_s11 + $0x50] sm:$0xff]   ;;  %s5642_s20 = scalar_lea.vmem %s8111_s0, %s4602_s28  ;;  %s8051_s28 = smov 5  }
  0x27   : > { %v5164_v1 = vld [vmem:[%s5621_s11] sm:$0xff]   ;;  %5048 = vmatprep.subr.msk.bf16.mxu1 %vm812_vm0, %v5163_v0  ;;  %v967_v2 = vsel %vm812_vm0, %v5163_v0, 0  ;;  %v5166_v5 = vld [vmem:[%s5621_s11 + $0x8] sm:$0xff]   ;;  %v970_v6 = vsel %vm812_vm0, %v5165_v3, 0  ;;  %v5168_v9 = vld [vmem:[%s5621_s11 + $0x10] sm:$0xff]   ;;  %v973_v14 = vsel %vm812_vm0, %v5167_v7, 0 }
  0x28   : > { %5040 = vmatprep.subr.msk.bf16.mxu0 %vm812_vm0, %v5164_v1  ;;  %4769 = vmatpush3.bf16.xpose.msra.mxu1 %v967_v2  ;;  %v826_v4 = vsel %vm812_vm0, %v5164_v1, 0  ;;  %v829_v8 = vsel %vm812_vm0, %v5166_v5, 0  ;;  %v5647_v10 = vld [vmem:[%s8112_s5 + $0x1] ss:$0 sm:$0xff]  ;;  %v5655_v12 = vld [vmem:[%s8112_s5] ss:$0 sm:$0xff] }
  0x29   : > { %4745 = vmatpush3.bf16.xpose.msra.mxu0 %v826_v4  ;;  %5049 = vmatprep.subr.msk.bf16.mxu1 %vm812_vm0, %v5165_v3  ;;  %v5169_v13 = vld [vmem:[%s5621_s11 + $0x58] sm:$0xff]   ;;  %v496_v15 = vld [vmem:[%s5642_s20 + $0x40] sm:$0xff]  ;;  %v497_v16 = vld [vmem:[%s5642_s20 + $0x48] sm:$0xff]  ;;  %v832_v18 = vsel %vm812_vm0, %v5168_v9, 0  ;;  %s8071_s19 = smov 10   ;;  %s8063_s22 = smov 11  }
  0x2a   : > { %5041 = vmatprep.subr.msk.bf16.mxu0 %vm812_vm0, %v5166_v5  ;;  %v488_v17 = vld [vmem:[%s5642_s20] sm:$0xff]  ;;  %v5170_v19 = vld [vmem:[%s5621_s11 + $0x18] sm:$0xff]   ;;  %v632_v20 = vadd.f32 %v5647_v10, %v496_v15  ;;  %v489_v21 = vld [vmem:[%s5642_s20 + $0x8] sm:$0xff]  ;;  %v633_v23 = vadd.f32 %v5647_v10, %v497_v16  ;;  %v976_v38 = vsel %vm812_vm0, %v5169_v13, 0  ;;  %s8148_s0 = smov 9   ;;  %s8151_s17 = smov 10  }
  0x2b   : > { %v624_v24 = vadd.f32 %v5655_v12, %v488_v17  ;;  %v498_v25 = vld [vmem:[%s5642_s20 + $0x50] sm:$0xff]  ;;  %v499_v26 = vld [vmem:[%s5642_s20 + $0x58] sm:$0xff]  ;;  %v625_v27 = vadd.f32 %v5655_v12, %v489_v21  ;;  %v5171_v39 = vld [vmem:[%s5621_s11 + $0x60] sm:$0xff]   ;;  %v835_v40 = vsel %vm812_vm0, %v5170_v19, 0  ;;  %s8162_s26 = smov 2   ;;  %s8164_s15 = smov 3  }
  0x2c   : > { %v5674_v28 = vadd.f32 %v4452_v11, %v498_v25  ;;  %v5676_v29 = vadd.f32 %v4452_v11, %v499_v26  ;;  %v490_v30 = vld [vmem:[%s5642_s20 + $0x10] sm:$0xff]  ;;  %v660_v31 = vpack.c.bf16 %v633_v23, %v632_v20  ;;  %v491_v32 = vld [vmem:[%s5642_s20 + $0x18] sm:$0xff]  ;;  %v5172_v41 = vld [vmem:[%s5621_s11 + $0x20] sm:$0xff]   ;;  %v979_v42 = vsel %vm812_vm0, %v5171_v39, 0  ;;  %s4603_s25 = sshll.u32 %s5615_s27, 7  ;;  %s5497_s18 = smov 16  }
  0x2d   : > { %v5681_v33 = vadd.f32 %v4451_v22, %v490_v30  ;;  %v656_v34 = vpack.c.bf16 %v625_v27, %v624_v24  ;;  %v5686_v36 = vadd.f32 %v4451_v22, %v491_v32  ;;  %v5173_v43 = vld [vmem:[%s5621_s11 + $0x68] sm:$0xff]   ;;  %v838_v44 = vsel %vm812_vm0, %v5172_v41, 0  ;;  %v5175_v48 = vld [vmem:[%s5621_s11 + $0x70] sm:$0xff]   ;;  %v5177_v51 = vld [vmem:[%s5621_s11 + $0x78] sm:$0xff]   ;;  %s6269_s10 = scalar_lea.vmem %s8036_s1, %s4603_s25  ;;  %s5499_s13 = smov 48  }
  0x2e   : > { %4784 = vmatprep.mubr.msk.bf16.mxu1 %vm812_vm0, %v660_v31  ;;  %v5174_v45 = vld [vmem:[%s5621_s11 + $0x28] sm:$0xff]   ;;  %v982_v46 = vsel %vm812_vm0, %v5173_v43, 0  ;;  %v5176_v49 = vld [vmem:[%s5621_s11 + $0x30] sm:$0xff]   ;;  %v985_v50 = vsel %vm812_vm0, %v5175_v48, 0  ;;  %v5178_v53 = vld [vmem:[%s5621_s11 + $0x38] sm:$0xff]   ;;  %v988_v54 = vsel %vm812_vm0, %v5177_v51, 0  ;;  %v634_v62 = vadd.f32 %v5647_v10, %v498_v25 }
  0x2f   : > { %4760 = vmatprep.mubr.msk.bf16.mxu0 %vm812_vm0, %v656_v34  ;;  %v841_v47 = vsel %vm812_vm0, %v5174_v45, 0  ;;  %v844_v52 = vsel %vm812_vm0, %v5176_v49, 0  ;;  %v500_v55 = vld [vmem:[%s5642_s20 + $0x60] sm:$0xff]  ;;  %v501_v56 = vld [vmem:[%s5642_s20 + $0x68] sm:$0xff]  ;;  %v847_v58 = vsel %vm812_vm0, %v5178_v53, 0  ;;  %v635_v63 = vadd.f32 %v5647_v10, %v499_v26  ;;  %v5742_v11 = vld [vmem:[%s5642_s20 + $0x78] sm:$0xff] }
  0x30   : > { %4771 = vmatpush3.bf16.xpose.msra.mxu1 %v970_v6  ;;  %v5181_v57 = vld [vmem:[%s5621_s11 + $0xc0] sm:$0xff]   ;;  %v5725_v60 = vld [vmem:[%s5642_s20 + $0x28] sm:$0xff]  ;;  %v626_v0 = vadd.f32 %v5655_v12, %v490_v30  ;;  %v627_v1 = vadd.f32 %v5655_v12, %v491_v32  ;;  %v636_v2 = vadd.f32 %v5647_v10, %v500_v55  ;;  %v637_v3 = vadd.f32 %v5647_v10, %v501_v56 }
  0x31   : > { %4747 = vmatpush3.bf16.xpose.msra.mxu0 %v829_v8  ;;  %5050 = vmatprep.subr.msk.bf16.mxu1 %vm812_vm0, %v5167_v7  ;;  %v5722_v59 = vld [vmem:[%s5642_s20 + $0x20] sm:$0xff]  ;;  %v629_v5 = vadd.f32 %v5655_v12, %v5725_v60  ;;  %v661_v6 = vpack.c.bf16 %v635_v63, %v634_v62  ;;  %v502_v7 = vld [vmem:[%s5642_s20 + $0x70] sm:$0xff]  ;;  %v5180_v21 = vld [vmem:[%s5621_s11 + $0x88] sm:$0xff]   ;;  %v639_v25 = vadd.f32 %v5647_v10, %v5742_v11  ;;  %v1249_v27 = vsel %vm812_vm0, %v5181_v57, 0 }
  0x32   : > { %5042 = vmatprep.subr.msk.bf16.mxu0 %vm812_vm0, %v5168_v9  ;;  %v5179_v61 = vld [vmem:[%s5621_s11 + $0x80] sm:$0xff]   ;;  %v628_v4 = vadd.f32 %v5655_v12, %v5722_v59  ;;  %v657_v8 = vpack.c.bf16 %v627_v1, %v626_v0  ;;  %v662_v9 = vpack.c.bf16 %v637_v3, %v636_v2  ;;  %v505_v23 = vld [vmem:[%s5642_s20 + $0x88] sm:$0xff]  ;;  %v638_v24 = vadd.f32 %v5647_v10, %v502_v7  ;;  %v5193_v63 = vld [vmem:[%s5621_s11 + $0xf0] sm:$0xff]  }
  0x33   : > { %v5753_v15 = vld [vmem:[%s8112_s5 + $0x2] ss:$0 sm:$0xff]  ;;  %v1108_v20 = vsel %vm812_vm0, %v5179_v61, 0  ;;  %v5183_v30 = vld [vmem:[%s5621_s11 + $0xc8] sm:$0xff]   ;;  %v5192_v1 = vld [vmem:[%s5621_s11 + $0xb8] sm:$0xff]   ;;  %v1267_v2 = vsel %vm812_vm0, %v5193_v63, 0 }
  0x34   : > { %v658_v16 = vpack.c.bf16 %v629_v5, %v628_v4  ;;  %v512_v17 = vld [vmem:[%s5642_s20 + $0xc0] sm:$0xff]  ;;  %v5188_v55 = vld [vmem:[%s5621_s11 + $0xa8] sm:$0xff]   ;;  %v5194_v3 = vld [vmem:[%s5621_s11 + $0xf8] sm:$0xff]  }
  0x35   : > { %v504_v22 = vld [vmem:[%s5642_s20 + $0x80] sm:$0xff]  ;;  %v5826_v4 = vld [vmem:[%s5642_s20 + $0x90] sm:$0xff]  ;;  %v5829_v5 = vld [vmem:[%s5642_s20 + $0x98] sm:$0xff] }
  0x36   : > { %v640_v10 = vadd.f32 %v5753_v15, %v504_v22  ;;  %v514_v7 = vld [vmem:[%s5642_s20 + $0xd0] sm:$0xff] }
  0x38   : > { %4773 = vmatpush3.bf16.xpose.msra.mxu1 %v973_v14  ;;  %v5748_v14 = vld [vmem:[%s5642_s20 + $0x38] sm:$0xff] }
  0x39   : > { %4749 = vmatpush3.bf16.xpose.msra.mxu0 %v832_v18  ;;  %5051 = vmatprep.subr.msk.bf16.mxu1 %vm812_vm0, %v5169_v13  ;;  %v5745_v13 = vld [vmem:[%s5642_s20 + $0x30] sm:$0xff]  ;;  %v513_v18 = vld [vmem:[%s5642_s20 + $0xc8] sm:$0xff]  ;;  %v631_v31 = vadd.f32 %v5655_v12, %v5748_v14 }
  0x3a   : > { %5043 = vmatprep.subr.msk.bf16.mxu0 %vm812_vm0, %v5170_v19  ;;  %v5760_v19 = vld [vmem:[%s8112_s5 + $0x3] ss:$0 sm:$0xff]  ;;  %v630_v26 = vadd.f32 %v5655_v12, %v5745_v13  ;;  %s8149_s5 = smov 8  }
  0x3b   : > { %v648_v32 = vadd.f32 %v5760_v19, %v512_v17  ;;  %v649_v34 = vadd.f32 %v5760_v19, %v513_v18  ;;  %v643_v17 = vadd.f32 %v5753_v15, %v5829_v5  ;;  %v650_v18 = vadd.f32 %v5760_v19, %v514_v7 }
  0x3d   : > { %v668_v12 = vpack.c.bf16 %v649_v34, %v648_v32 }
  0x40   : > { %4775 = vmatpush3.bf16.xpose.msra.mxu1 %v976_v38  ;;  %v641_v38 = vadd.f32 %v5753_v15, %v505_v23  ;;  %v508_v23 = vld [vmem:[%s5642_s20 + $0xa0] sm:$0xff] }
  0x41   : > { %4751 = vmatpush3.bf16.xpose.msra.mxu0 %v835_v40  ;;  %5052 = vmatprep.subr.msk.bf16.mxu1 %vm812_vm0, %v5171_v39  ;;  %v663_v39 = vpack.c.bf16 %v639_v25, %v638_v24  ;;  %v659_v40 = vpack.c.bf16 %v631_v31, %v630_v26  ;;  %v509_v24 = vld [vmem:[%s5642_s20 + $0xa8] sm:$0xff]  ;;  %v644_v25 = vadd.f32 %v5753_v15, %v508_v23 }
  0x42   : > { %5044 = vmatprep.subr.msk.bf16.mxu0 %vm812_vm0, %v5172_v41  ;;  %v664_v41 = vpack.c.bf16 %v641_v38, %v640_v10  ;;  %v645_v26 = vadd.f32 %v5753_v15, %v509_v24  ;;  %v516_v38 = vld [vmem:[%s5642_s20 + $0xe0] sm:$0xff] }
  0x44   : > { %v666_v34 = vpack.c.bf16 %v645_v26, %v644_v25 }
  0x48   : > { %4777 = vmatpush3.bf16.xpose.msra.mxu1 %v979_v42  ;;  %v1111_v42 = vsel %vm812_vm0, %v5180_v21, 0 }
  0x49   : > { %4753 = vmatpush3.bf16.xpose.msra.mxu0 %v838_v44  ;;  %5053 = vmatprep.subr.msk.bf16.mxu1 %vm812_vm0, %v5173_v43  ;;  %v5182_v43 = vld [vmem:[%s5621_s11 + $0x90] sm:$0xff]   ;;  %v1252_v44 = vsel %vm812_vm0, %v5183_v30, 0 }
  0x4a   : > { %5045 = vmatprep.subr.msk.bf16.mxu0 %vm812_vm0, %v5174_v45  ;;  %v5185_v45 = vld [vmem:[%s5621_s11 + $0xd0] sm:$0xff]  }
  0x50   : > { %4779 = vmatpush3.bf16.xpose.msra.mxu1 %v982_v46  ;;  %v1114_v46 = vsel %vm812_vm0, %v5182_v43, 0 }
  0x51   : > { %4755 = vmatpush3.bf16.xpose.msra.mxu0 %v841_v47  ;;  %5054 = vmatprep.subr.msk.bf16.mxu1 %vm812_vm0, %v5175_v48  ;;  %v5184_v47 = vld [vmem:[%s5621_s11 + $0x98] sm:$0xff]   ;;  %v1255_v48 = vsel %vm812_vm0, %v5185_v45, 0 }
  0x52   : > { %5046 = vmatprep.subr.msk.bf16.mxu0 %vm812_vm0, %v5176_v49  ;;  %v5187_v49 = vld [vmem:[%s5621_s11 + $0xd8] sm:$0xff]  }
  0x58   : > { %4781 = vmatpush3.bf16.xpose.msra.mxu1 %v985_v50  ;;  %v1117_v50 = vsel %vm812_vm0, %v5184_v47, 0 }
  0x59   : > { %4757 = vmatpush3.bf16.xpose.msra.mxu0 %v844_v52  ;;  %5055 = vmatprep.subr.msk.bf16.mxu1 %vm812_vm0, %v5177_v51  ;;  %v5186_v51 = vld [vmem:[%s5621_s11 + $0xa0] sm:$0xff]   ;;  %v1258_v52 = vsel %vm812_vm0, %v5187_v49, 0 }
  0x5a   : > { %5047 = vmatprep.subr.msk.bf16.mxu0 %vm812_vm0, %v5178_v53  ;;  %v5189_v53 = vld [vmem:[%s5621_s11 + $0xe0] sm:$0xff]  }
  0x5b   : > { %v1261_v56 = vsel %vm812_vm0, %v5189_v53, 0 }
  0x60   : > { %4783 = vmatpush3.bf16.xpose.msra.mxu1 %v988_v54  ;;  %v1120_v54 = vsel %vm812_vm0, %v5186_v51, 0 }
  0x61   : > { %4759 = vmatpush3.bf16.xpose.msra.mxu0 %v847_v58  ;;  %5064 = vmatprep.subr.msk.bf16.mxu1 %vm812_vm0, %v5181_v57  ;;  %v5191_v57 = vld [vmem:[%s5621_s11 + $0xe8] sm:$0xff]   ;;  %v1123_v58 = vsel %vm812_vm0, %v5188_v55, 0 }
  0x62   : > { %5056 = vmatprep.subr.msk.bf16.mxu0 %vm812_vm0, %v5179_v61  ;;  %v5190_v61 = vld [vmem:[%s5621_s11 + $0xb0] sm:$0xff]   ;;  %v1264_v62 = vsel %vm812_vm0, %v5191_v57, 0  ;;  %s8069_s11 = smov 2  }
  0x63   : > { %v1126_v0 = vsel %vm812_vm0, %v5190_v61, 0 }
  0x67   : > { %4785 = vmatmul.mubr.msk.bf16.vlgmr.msra.gmra.mrb[0].mxu1 %vm812_vm0, %v661_v6  ;;  %v1129_v6 = vsel %vm812_vm0, %v5192_v1, 0 }
  0x68   : > { %4761 = vmatmul.mubr.msk.bf16.vlgmr.msra.gmra.mrb[0].mxu0 %vm812_vm0, %v657_v8  ;;  %4788 = vmatprep.mubr.msk.bf16.mxu1 %vm812_vm0, %v662_v9  ;;  %v515_v8 = vld [vmem:[%s5642_s20 + $0xd8] sm:$0xff]  ;;  %v1270_v9 = vsel %vm812_vm0, %v5194_v3, 0 }
  0x69   : > { %4764 = vmatprep.mubr.msk.bf16.mxu0 %vm812_vm0, %v658_v16  ;;  %4793 = vmatpush3.bf16.xpose.msra.mxu0 %v1108_v20  ;;  %v642_v16 = vadd.f32 %v5753_v15, %v5826_v4  ;;  %v651_v20 = vadd.f32 %v5760_v19, %v515_v8 }
  0x6a   : > { %5057 = vmatprep.subr.msk.bf16.mxu0 %vm812_vm0, %v5180_v21  ;;  %4817 = vmatpush3.bf16.xpose.msra.mxu1 %v1249_v27  ;;  %v510_v27 = vld [vmem:[%s5642_s20 + $0xb0] sm:$0xff] }
  0x6b   : > { %5065 = vmatprep.subr.msk.bf16.mxu1 %vm812_vm0, %v5183_v30  ;;  %v665_v21 = vpack.c.bf16 %v643_v17, %v642_v16  ;;  %v669_v22 = vpack.c.bf16 %v651_v20, %v650_v18  ;;  %v511_v30 = vld [vmem:[%s5642_s20 + $0xb8] sm:$0xff]  ;;  %v646_v31 = vadd.f32 %v5753_v15, %v510_v27 }
  0x6c   : > { %v647_v32 = vadd.f32 %v5753_v15, %v511_v30 }
  0x6e   : > { %v667_v10 = vpack.c.bf16 %v647_v32, %v646_v31 }
  0x6f   : > { %4789 = vmatmul.mubr.msk.bf16.gmra.mrb[4].mxu1 %vm812_vm0, %v663_v39  ;;  %v517_v39 = vld [vmem:[%s5642_s20 + $0xe8] sm:$0xff] }
  0x70   : > { %4765 = vmatmul.mubr.msk.bf16.gmra.mrb[4].mxu0 %vm812_vm0, %v659_v40  ;;  %4832 = vmatprep.mubr.msk.bf16.mxu1 %vm812_vm0, %v668_v12  ;;  %v652_v40 = vadd.f32 %v5760_v19, %v516_v38  ;;  %v653_v12 = vadd.f32 %v5760_v19, %v517_v39 }
  0x71   : > { %4795 = vmatpush3.bf16.xpose.msra.mxu0 %v1111_v42  ;;  %4808 = vmatprep.mubr.msk.bf16.mxu0 %vm812_vm0, %v664_v41  ;;  %v518_v41 = vld [vmem:[%s5642_s20 + $0xf0] sm:$0xff]  ;;  %v519_v42 = vld [vmem:[%s5642_s20 + $0xf8] sm:$0xff] }
  0x72   : > { %5058 = vmatprep.subr.msk.bf16.mxu0 %vm812_vm0, %v5182_v43  ;;  %4819 = vmatpush3.bf16.xpose.msra.mxu1 %v1252_v44  ;;  %v654_v43 = vadd.f32 %v5760_v19, %v518_v41  ;;  %v655_v44 = vadd.f32 %v5760_v19, %v519_v42 }
  0x73   : > { %5066 = vmatprep.subr.msk.bf16.mxu1 %vm812_vm0, %v5185_v45  ;;  %v670_v45 = vpack.c.bf16 %v653_v12, %v652_v40 }
  0x74   : > { %v671_v15 = vpack.c.bf16 %v655_v44, %v654_v43 }
  0x79   : > { %4797 = vmatpush3.bf16.xpose.msra.mxu0 %v1114_v46 }
  0x7a   : > { %5059 = vmatprep.subr.msk.bf16.mxu0 %vm812_vm0, %v5184_v47  ;;  %4821 = vmatpush3.bf16.xpose.msra.mxu1 %v1255_v48 }
  0x7b   : > { %5067 = vmatprep.subr.msk.bf16.mxu1 %vm812_vm0, %v5187_v49 }
  0x81   : > { %4799 = vmatpush3.bf16.xpose.msra.mxu0 %v1117_v50 }
  0x82   : > { %5060 = vmatprep.subr.msk.bf16.mxu0 %vm812_vm0, %v5186_v51  ;;  %4823 = vmatpush3.bf16.xpose.msra.mxu1 %v1258_v52 }
  0x83   : > { %5068 = vmatprep.subr.msk.bf16.mxu1 %vm812_vm0, %v5189_v53 }
  0x89   : > { %4801 = vmatpush3.bf16.xpose.msra.mxu0 %v1120_v54 }
  0x8a   : > { %5061 = vmatprep.subr.msk.bf16.mxu0 %vm812_vm0, %v5188_v55  ;;  %4825 = vmatpush3.bf16.xpose.msra.mxu1 %v1261_v56 }
  0x8b   : > { %5069 = vmatprep.subr.msk.bf16.mxu1 %vm812_vm0, %v5191_v57 }
  0x91   : > { %4803 = vmatpush3.bf16.xpose.msra.mxu0 %v1123_v58 }
  0x92   : > { %5062 = vmatprep.subr.msk.bf16.mxu0 %vm812_vm0, %v5190_v61  ;;  %4827 = vmatpush3.bf16.xpose.msra.mxu1 %v1264_v62 }
  0x93   : > { %5070 = vmatprep.subr.msk.bf16.mxu1 %vm812_vm0, %v5193_v63 }
  0x99   : > { %4805 = vmatpush3.bf16.xpose.msra.mxu0 %v1126_v0 }
  0x9a   : > { %5063 = vmatprep.subr.msk.bf16.mxu0 %vm812_vm0, %v5192_v1  ;;  %4829 = vmatpush3.bf16.xpose.msra.mxu1 %v1267_v2 }
  0x9b   : > { %5071 = vmatprep.subr.msk.bf16.mxu1 %vm812_vm0, %v5194_v3 }
  0xa1   : > { %4807 = vmatpush3.bf16.xpose.msra.mxu0 %v1129_v6 }
  0xa2   : > { %4831 = vmatpush3.bf16.xpose.msra.mxu1 %v1270_v9 }
  0xa8   : > { %4809 = vmatmul.mubr.msk.bf16.vlgmr.msra.gmra.mrb[8].mxu0 %vm812_vm0, %v665_v21 }
  0xa9   : > { %4833 = vmatmul.mubr.msk.bf16.vlgmr.msra.gmra.mrb[8].mxu1 %vm812_vm0, %v669_v22  ;;  %4812 = vmatprep.mubr.msk.bf16.mxu0 %vm812_vm0, %v666_v34 }
  0xaa   : > { %4836 = vmatprep.mubr.msk.bf16.mxu1 %vm812_vm0, %v670_v45 }
  0xb0   : > { %4813 = vmatmul.mubr.msk.bf16.gmra.mrb[12].mxu0 %vm812_vm0, %v667_v10 }
  0xb1   : > { %4837 = vmatmul.mubr.msk.bf16.gmra.mrb[12].mxu1 %vm812_vm0, %v671_v15 }
 0x13a   : > { %v5863_v46 = vpop.f32.mrb[0].mxu1 }
 0x13b   : > { %1671 = vrot.lane.b32.xlu1 %v5863_v46, %s8069_s11  ;;  %1668 = vrot.lane.b32.xlu0 %v5863_v46, %s8053_s24  ;;  %v5869_v47 = vpop.f32.mrb[0].mxu0  ;;  %v5871_v48 = vpop.f32.mrb[1].mxu1 }
 0x13c   : > { %8113 = vst [vmem:[#allocation12_spill] sm:$0xff] %v5871_v48  ;;  %v5873_v19 = vpop.f32.mrb[1].mxu0  ;;  %v4787_v49 = vpop.f32.mrb[2].mxu1 }
 0x13d   : > { %v4763_v50 = vpop.f32.mrb[2].mxu0  ;;  %v5875_v51 = vpop.f32.mrb[3].mxu1 }
 0x13e   : > { %v5877_v52 = vpop.f32.mrb[3].mxu0 }
 0x13f   : > { %1674 = vrot.lane.b32.xlu1 %v5863_v46, %s8067_s29  ;;  %1409 = vrot.lane.b32.xlu0 %v5869_v47, %s8069_s11 }
 0x142   : > { %v5883_v53 = vpop.f32.mrb[4].mxu1 }
 0x143   : > { %1677 = vrot.lane.b32.xlu1 %v5863_v46, %s8055_s30  ;;  %1412 = vrot.lane.b32.xlu0 %v5869_v47, %s8067_s29  ;;  %v5889_v54 = vpop.f32.mrb[5].mxu1  ;;  %v5891_v55 = vpop.f32.mrb[4].mxu0 }
 0x144   : > { %8114 = vst [vmem:[#allocation13_spill] sm:$0xff] %v5891_v55  ;;  %v5893_v56 = vpop.f32.mrb[6].mxu1  ;;  %v5895_v57 = vpop.f32.mrb[5].mxu0 }
 0x145   : > { %8115 = vst [vmem:[#allocation14_spill] sm:$0xff] %v5895_v57  ;;  %v5897_v58 = vpop.f32.mrb[7].mxu1  ;;  %v5899_v61 = vpop.f32.mrb[6].mxu0 }
 0x146   : > { %v5901_v62 = vpop.f32.mrb[7].mxu0 }
 0x147   : > { %1680 = vrot.lane.b32.xlu1 %v5863_v46, %s8051_s28  ;;  %1415 = vrot.lane.b32.xlu0 %v5869_v47, %s8055_s30 }
 0x14b   : > { %1683 = vrot.lane.b32.xlu1 %v5863_v46, %s8049_s12  ;;  %1418 = vrot.lane.b32.xlu0 %v5869_v47, %s8051_s28  ;;  %s8061_s28 = smov 13  }
 0x14f   : > { %1686 = vrot.lane.b32.xlu1 %v5863_v46, %s8047_s3  ;;  %1421 = vrot.lane.b32.xlu0 %v5869_v47, %s8049_s12  ;;  %s8065_s12 = smov 12  }
 0x153   : > { %1424 = vrot.lane.b32.xlu0 %v5869_v47, %s8047_s3  ;;  %1406 = vrot.lane.b32.xlu1 %v5869_v47, %s8053_s24  ;;  %s8075_s3 = smov 9  }
 0x157   : > { %1607 = vrot.lane.b32.xlu0 %v5871_v48, %s8053_s24  ;;  %1610 = vrot.lane.b32.xlu1 %v5871_v48, %s8069_s11  ;;  %s8059_s24 = smov 14  }
 0x15b   : > { %1690 = vrot.lane.b32.xlu0 %v4787_v49, %s8073_s21  ;;  %1613 = vrot.lane.b32.xlu1 %v5871_v48, %s8067_s29 }
 0x15f   : > { %1696 = vrot.lane.b32.xlu0 %v4787_v49, %s8071_s19  ;;  %1616 = vrot.lane.b32.xlu1 %v5871_v48, %s8055_s30  ;;  %s8057_s30 = smov 15  }
 0x163   : > { %1699 = vrot.lane.b32.xlu0 %v4787_v49, %s8063_s22  ;;  %1693 = vrot.lane.b32.xlu1 %v4787_v49, %s8075_s3 }
 0x167   : > { %1702 = vrot.lane.b32.xlu0 %v4787_v49, %s8065_s12  ;;  %1431 = vrot.lane.b32.xlu1 %v4763_v50, %s8075_s3 }
 0x16b   : > { %1705 = vrot.lane.b32.xlu0 %v4787_v49, %s8061_s28  ;;  %1434 = vrot.lane.b32.xlu1 %v4763_v50, %s8071_s19 }
 0x16f   : > { %1708 = vrot.lane.b32.xlu0 %v4787_v49, %s8059_s24  ;;  %1437 = vrot.lane.b32.xlu1 %v4763_v50, %s8063_s22 }
 0x173   : > { %1711 = vrot.lane.b32.xlu0 %v4787_v49, %s8057_s30  ;;  %1440 = vrot.lane.b32.xlu1 %v4763_v50, %s8065_s12 }
 0x177   : > { %1443 = vrot.lane.b32.xlu1 %v4763_v50, %s8061_s28  ;;  %1428 = vrot.lane.b32.xlu0 %v4763_v50, %s8073_s21  ;;  %s8124_s28 = smov 5  }
 0x17b   : > { %1446 = vrot.lane.b32.xlu1 %v4763_v50, %s8059_s24  ;;  %1632 = vrot.lane.b32.xlu0 %v5875_v51, %s8075_s3  ;;  %v5944_v63 = vpop.f32.mrb[8].mxu0  ;;  %s8123_s24 = smov 4  }
 0x17c   : > { %8116 = vst [vmem:[#allocation15_spill] sm:$0xff] %v5944_v63  ;;  %v5946_v0 = vpop.f32.mrb[9].mxu0  ;;  %v5955_v3 = vpop.f32.mrb[8].mxu1 }
 0x17d   : > { %8117 = vst [vmem:[#allocation16_spill] sm:$0xff] %v5946_v0  ;;  %v5948_v1 = vpop.f32.mrb[10].mxu0  ;;  %8119 = vst [vmem:[#allocation18_spill] sm:$0xff] %v5955_v3  ;;  %v5961_v6 = vpop.f32.mrb[9].mxu1 }
 0x17e   : > { %v5950_v2 = vpop.f32.mrb[11].mxu0  ;;  %8120 = vst [vmem:[#allocation19_spill] sm:$0xff] %v5961_v6  ;;  %v5963_v7 = vpop.f32.mrb[10].mxu1 }
 0x17f   : > { %8118 = vst [vmem:[#allocation17_spill] sm:$0xff] %v5950_v2  ;;  %1449 = vrot.lane.b32.xlu1 %v4763_v50, %s8057_s30  ;;  %1635 = vrot.lane.b32.xlu0 %v5875_v51, %s8071_s19  ;;  %v5965_v8 = vpop.f32.mrb[11].mxu1  ;;  %s8122_s30 = smov 1  }
 0x180   : > { %8121 = vst [vmem:[#allocation20_spill] sm:$0xff] %v5965_v8 }
 0x183   : > { %1629 = vrot.lane.b32.xlu1 %v5875_v51, %s8073_s21  ;;  %1638 = vrot.lane.b32.xlu0 %v5875_v51, %s8063_s22  ;;  %s8125_s22 = smov 6   ;;  %v6031_v22 = vpop.f32.mrb[12].mxu0 }
 0x184   : > { %8129 = vst [vmem:[#allocation23_spill] sm:$0xff] %v6031_v22  ;;  %v6033_v23 = vpop.f32.mrb[13].mxu0  ;;  %v6059_v10 = vpop.f32.mrb[12].mxu1 }
 0x185   : > { %8130 = vst [vmem:[#allocation24_spill] sm:$0xff] %v6033_v23  ;;  %v6039_v26 = vpop.f32.mrb[14].mxu0  ;;  %8134 = vst [vmem:[#allocation28_spill] sm:$0xff] %v6059_v10  ;;  %v6065_v38 = vpop.f32.mrb[13].mxu1 }
 0x186   : > { %v6045_v27 = vpop.f32.mrb[15].mxu0  ;;  %8135 = vst [vmem:[#allocation29_spill] sm:$0xff] %v6065_v38  ;;  %v6067_v39 = vpop.f32.mrb[14].mxu1 }
 0x187   : > { %1793 = vrot.lane.b32.xlu1 %v5883_v53, %s8069_s11  ;;  %1641 = vrot.lane.b32.xlu0 %v5875_v51, %s8065_s12  ;;  %s8126_s12 = smov 7   ;;  %v6073_v41 = vpop.f32.mrb[15].mxu1 }
 0x18b   : > { %1796 = vrot.lane.b32.xlu1 %v5883_v53, %s8067_s29  ;;  %1790 = vrot.lane.b32.xlu0 %v5883_v53, %s8122_s30 }
 0x18f   : > { %1799 = vrot.lane.b32.xlu1 %v5883_v53, %s8123_s24  ;;  %1531 = vrot.lane.b32.xlu0 %v5891_v55, %s8069_s11 }
 0x193   : > { %1802 = vrot.lane.b32.xlu1 %v5883_v53, %s8124_s28  ;;  %1534 = vrot.lane.b32.xlu0 %v5891_v55, %s8067_s29 }
 0x197   : > { %1805 = vrot.lane.b32.xlu1 %v5883_v53, %s8125_s22  ;;  %1537 = vrot.lane.b32.xlu0 %v5891_v55, %s8123_s24 }
 0x19b   : > { %1808 = vrot.lane.b32.xlu1 %v5883_v53, %s8126_s12  ;;  %1540 = vrot.lane.b32.xlu0 %v5891_v55, %s8124_s28 }
 0x19f   : > { %1543 = vrot.lane.b32.xlu0 %v5891_v55, %s8125_s22  ;;  %1528 = vrot.lane.b32.xlu1 %v5891_v55, %s8122_s30 }
 0x1a3   : > { %1546 = vrot.lane.b32.xlu0 %v5891_v55, %s8126_s12  ;;  %1729 = vrot.lane.b32.xlu1 %v5889_v54, %s8122_s30 }
 0x1a7   : > { %1732 = vrot.lane.b32.xlu0 %v5889_v54, %s8069_s11  ;;  %1735 = vrot.lane.b32.xlu1 %v5889_v54, %s8067_s29 }
 0x1ab   : > { %1738 = vrot.lane.b32.xlu1 %v5889_v54, %s8123_s24  ;;  %1467 = vrot.lane.b32.xlu0 %v5895_v57, %s8122_s30 }
 0x1ad   : > { %v6007_v9 = vpop.permute.xlu1 %1671  ;;  %v6009_v16 = vpop.permute.xlu0 %1668 }
 0x1af   : > { %1741 = vrot.lane.b32.xlu1 %v5889_v54, %s8124_s28  ;;  %1473 = vrot.lane.b32.xlu0 %v5895_v57, %s8067_s29  ;;  %s8139_s29 = smov 11  }
 0x1b1   : > { %v6015_v17 = vpop.permute.xlu1 %1674  ;;  %v6017_v18 = vpop.permute.xlu0 %1409 }
 0x1b2   : > { %8127 = vst [vmem:[#allocation21_spill] sm:$0xff] %v6017_v18 }
 0x1b3   : > { %1744 = vrot.lane.b32.xlu1 %v5889_v54, %s8125_s22  ;;  %1476 = vrot.lane.b32.xlu0 %v5895_v57, %s8123_s24 }
 0x1b5   : > { %v6023_v20 = vpop.permute.xlu1 %1677  ;;  %v6025_v21 = vpop.permute.xlu0 %1412 }
 0x1b6   : > { %8128 = vst [vmem:[#allocation22_spill] sm:$0xff] %v6025_v21 }
 0x1b7   : > { %1747 = vrot.lane.b32.xlu1 %v5889_v54, %s8126_s12  ;;  %1479 = vrot.lane.b32.xlu0 %v5895_v57, %s8124_s28 }
 0x1b9   : > { %v6035_v24 = vpop.permute.xlu1 %1680  ;;  %v6037_v25 = vpop.permute.xlu0 %1415 }
 0x1ba   : > { %8131 = vst [vmem:[#allocation25_spill] sm:$0xff] %v6037_v25 }
 0x1bb   : > { %1470 = vrot.lane.b32.xlu1 %v5895_v57, %s8069_s11  ;;  %1482 = vrot.lane.b32.xlu0 %v5895_v57, %s8125_s22  ;;  %s8141_s11 = smov 12  }
 0x1bd   : > { %v6047_v30 = vpop.permute.xlu1 %1683  ;;  %v6049_v31 = vpop.permute.xlu0 %1418 }
 0x1be   : > { %8132 = vst [vmem:[#allocation26_spill] sm:$0xff] %v6049_v31 }
 0x1bf   : > { %1812 = vrot.lane.b32.xlu1 %v5893_v56, %s8073_s21  ;;  %1485 = vrot.lane.b32.xlu0 %v5895_v57, %s8126_s12  ;;  %s8144_s21 = smov 14  }
 0x1c1   : > { %v6055_v32 = vpop.permute.xlu1 %1686  ;;  %v6057_v34 = vpop.permute.xlu0 %1421 }
 0x1c2   : > { %8133 = vst [vmem:[#allocation27_spill] sm:$0xff] %v6057_v34 }
 0x1c3   : > { %1815 = vrot.lane.b32.xlu0 %v5893_v56, %s8075_s3  ;;  %1553 = vrot.lane.b32.xlu1 %v5899_v61, %s8075_s3  ;;  %s8146_s3 = smov 15  }
 0x1c5   : > { %v6069_v40 = vpop.permute.xlu0 %1424  ;;  %v6071_v12 = vpop.permute.xlu1 %1406 }
 0x1c6   : > { %8136 = vst [vmem:[#allocation30_spill] sm:$0xff] %v6069_v40 }
 0x1c7   : > { %1818 = vrot.lane.b32.xlu0 %v5893_v56, %s8071_s19  ;;  %1556 = vrot.lane.b32.xlu1 %v5899_v61, %s8071_s19  ;;  %s8143_s19 = smov 13  }
 0x1c9   : > { %v6079_v42 = vpop.permute.xlu0 %1607  ;;  %v6081_v43 = vpop.permute.xlu1 %1610 }
 0x1ca   : > { %8137 = vst [vmem:[#allocation31_spill] sm:$0xff] %v6079_v42  ;;  %8138 = vst [vmem:[#allocation32_spill] sm:$0xff] %v6081_v43 }
 0x1cb   : > { %1821 = vrot.lane.b32.xlu0 %v5893_v56, %s8139_s29  ;;  %1559 = vrot.lane.b32.xlu1 %v5899_v61, %s8139_s29 }
 0x1cd   : > { %v6087_v44 = vpop.permute.xlu0 %1690  ;;  %v6089_v45 = vpop.permute.xlu1 %1613 }
 0x1ce   : > { %8140 = vst [vmem:[#allocation33_spill] sm:$0xff] %v6089_v45 }
 0x1cf   : > { %1824 = vrot.lane.b32.xlu0 %v5893_v56, %s8141_s11  ;;  %1562 = vrot.lane.b32.xlu1 %v5899_v61, %s8141_s11 }
 0x1d1   : > { %v6095_v15 = vpop.permute.xlu0 %1696  ;;  %v6097_v49 = vpop.permute.xlu1 %1616 }
 0x1d2   : > { %8142 = vst [vmem:[#allocation34_spill] sm:$0xff] %v6097_v49 }
 0x1d3   : > { %1827 = vrot.lane.b32.xlu0 %v5893_v56, %s8143_s19  ;;  %1565 = vrot.lane.b32.xlu1 %v5899_v61, %s8143_s19 }
 0x1d5   : > { %v6103_v50 = vpop.permute.xlu0 %1699  ;;  %v6105_v35 = vpop.permute.xlu1 %1693 }
 0x1d7   : > { %1830 = vrot.lane.b32.xlu0 %v5893_v56, %s8144_s21  ;;  %1568 = vrot.lane.b32.xlu1 %v5899_v61, %s8144_s21 }
 0x1d9   : > { %v6111_v37 = vpop.permute.xlu0 %1702  ;;  %v6113_v45 = vpop.permute.xlu1 %1431 }
 0x1da   : > { %8145 = vst [vmem:[#allocation35_spill] sm:$0xff] %v6113_v45 }
 0x1db   : > { %1833 = vrot.lane.b32.xlu0 %v5893_v56, %s8146_s3  ;;  %1571 = vrot.lane.b32.xlu1 %v5899_v61, %s8146_s3 }
 0x1dd   : > { %v6119_v49 = vpop.permute.xlu0 %1705  ;;  %v6121_v43 = vpop.permute.xlu1 %1434 }
 0x1de   : > { %8147 = vst [vmem:[#allocation36_spill] sm:$0xff] %v6121_v43 }
 0x1df   : > { %1754 = vrot.lane.b32.xlu1 %v5897_v58, %s8148_s0  ;;  %1550 = vrot.lane.b32.xlu0 %v5899_v61, %s8149_s5 }
 0x1e1   : > { %v6127_v42 = vpop.permute.xlu0 %1708  ;;  %v6129_v8 = vpop.permute.xlu1 %1437 }
 0x1e2   : > { %8150 = vst [vmem:[#allocation37_spill] sm:$0xff] %v6129_v8 }
 0x1e3   : > { %1757 = vrot.lane.b32.xlu1 %v5897_v58, %s8151_s17  ;;  %1751 = vrot.lane.b32.xlu0 %v5897_v58, %s8149_s5 }
 0x1e5   : > { %v6135_v56 = vpop.permute.xlu0 %1711  ;;  %v6137_v6 = vpop.permute.xlu1 %1440 }
 0x1e6   : > { %8152 = vst [vmem:[#allocation38_spill] sm:$0xff] %v6137_v6 }
 0x1e7   : > { %1760 = vrot.lane.b32.xlu0 %v5897_v58, %s8139_s29  ;;  %1489 = vrot.lane.b32.xlu1 %v5901_v62, %s8149_s5 }
 0x1e9   : > { %v6143_v61 = vpop.permute.xlu1 %1443  ;;  %v6145_v0 = vpop.permute.xlu0 %1428 }
 0x1ea   : > { %8153 = vst [vmem:[#allocation39_spill] sm:$0xff] %v6143_v61  ;;  %8154 = vst [vmem:[#allocation40_spill] sm:$0xff] %v6145_v0 }
 0x1eb   : > { %1763 = vrot.lane.b32.xlu0 %v5897_v58, %s8141_s11  ;;  %1498 = vrot.lane.b32.xlu1 %v5901_v62, %s8139_s29 }
 0x1ed   : > { %v6151_v2 = vpop.permute.xlu1 %1446  ;;  %v6153_v40 = vpop.permute.xlu0 %1632 }
 0x1ee   : > { %8155 = vst [vmem:[#allocation41_spill] sm:$0xff] %v6151_v2  ;;  %8156 = vst [vmem:[#allocation42_spill] sm:$0xff] %v6153_v40 }
 0x1ef   : > { %1766 = vrot.lane.b32.xlu0 %v5897_v58, %s8143_s19  ;;  %1501 = vrot.lane.b32.xlu1 %v5901_v62, %s8141_s11 }
 0x1f1   : > { %v6159_v34 = vpop.permute.xlu1 %1449  ;;  %v6161_v61 = vpop.permute.xlu0 %1635 }
 0x1f2   : > { %8157 = vst [vmem:[#allocation43_spill] sm:$0xff] %v6159_v34  ;;  %8158 = vst [vmem:[#allocation44_spill] sm:$0xff] %v6161_v61 }
 0x1f3   : > { %1769 = vrot.lane.b32.xlu0 %v5897_v58, %s8144_s21  ;;  %1504 = vrot.lane.b32.xlu1 %v5901_v62, %s8143_s19 }
 0x1f5   : > { %v6167_v31 = vpop.permute.xlu1 %1629  ;;  %v6169_v2 = vpop.permute.xlu0 %1638 }
 0x1f6   : > { %8159 = vst [vmem:[#allocation45_spill] sm:$0xff] %v6167_v31  ;;  %8160 = vst [vmem:[#allocation46_spill] sm:$0xff] %v6169_v2 }
 0x1f7   : > { %1772 = vrot.lane.b32.xlu0 %v5897_v58, %s8146_s3  ;;  %1507 = vrot.lane.b32.xlu1 %v5901_v62, %s8144_s21 }
 0x1f9   : > { %v6175_v40 = vpop.permute.xlu1 %1793  ;;  %v6177_v34 = vpop.permute.xlu0 %1641 }
 0x1fa   : > { %8161 = vst [vmem:[#allocation47_spill] sm:$0xff] %v6177_v34 }
 0x1fb   : > { %1492 = vrot.lane.b32.xlu0 %v5901_v62, %s8148_s0  ;;  %1510 = vrot.lane.b32.xlu1 %v5901_v62, %s8146_s3 }
 0x1fd   : > { %v6183_v61 = vpop.permute.xlu1 %1796  ;;  %v6185_v31 = vpop.permute.xlu0 %1790 }
 0x1ff   : > { %1495 = vrot.lane.b32.xlu0 %v5901_v62, %s8151_s17  ;;  %1933 = vrot.lane.b32.xlu1 %v5944_v63, %s8162_s26 }
 0x201   : > { %v6191_v58 = vpop.permute.xlu1 %1799  ;;  %v6193_v2 = vpop.permute.xlu0 %1531 }
 0x202   : > { %8163 = vst [vmem:[#allocation48_spill] sm:$0xff] %v6193_v2 }
 0x203   : > { %1936 = vrot.lane.b32.xlu1 %v5944_v63, %s8164_s15  ;;  %1930 = vrot.lane.b32.xlu0 %v5944_v63, %s8122_s30 }
 0x205   : > { %v6199_v34 = vpop.permute.xlu1 %1802  ;;  %v6201_v6 = vpop.permute.xlu0 %1534 }
 0x206   : > { %8165 = vst [vmem:[#allocation49_spill] sm:$0xff] %v6201_v6 }
 0x207   : > { %1939 = vrot.lane.b32.xlu1 %v5944_v63, %s8123_s24  ;;  %2195 = vrot.lane.b32.xlu0 %v5955_v3, %s8162_s26 }
 0x209   : > { %v6207_v62 = vpop.permute.xlu1 %1805  ;;  %v6209_v25 = vpop.permute.xlu0 %1537 }
 0x20a   : > { %8166 = vst [vmem:[#allocation50_spill] sm:$0xff] %v6209_v25 }
 0x20b   : > { %1942 = vrot.lane.b32.xlu1 %v5944_v63, %s8124_s28  ;;  %2198 = vrot.lane.b32.xlu0 %v5955_v3, %s8164_s15 }
 0x20d   : > { %v6215_v2 = vpop.permute.xlu1 %1808  ;;  %v6217_v55 = vpop.permute.xlu0 %1540 }
 0x20e   : > { %8167 = vst [vmem:[#allocation51_spill] sm:$0xff] %v6217_v55 }
 0x20f   : > { %1945 = vrot.lane.b32.xlu1 %v5944_v63, %s8125_s22  ;;  %2201 = vrot.lane.b32.xlu0 %v5955_v3, %s8123_s24 }
 0x211   : > { %v6223_v6 = vpop.permute.xlu0 %1543  ;;  %v6225_v8 = vpop.permute.xlu1 %1528 }
 0x212   : > { %8168 = vst [vmem:[#allocation52_spill] sm:$0xff] %v6223_v6  ;;  %8169 = vst [vmem:[#allocation53_spill] sm:$0xff] %v6225_v8 }
 0x213   : > { %1948 = vrot.lane.b32.xlu1 %v5944_v63, %s8126_s12  ;;  %2204 = vrot.lane.b32.xlu0 %v5955_v3, %s8124_s28 }
 0x215   : > { %v6231_v25 = vpop.permute.xlu0 %1546  ;;  %v6233_v55 = vpop.permute.xlu1 %1729 }
 0x216   : > { %8170 = vst [vmem:[#allocation54_spill] sm:$0xff] %v6231_v25 }
 0x217   : > { %2192 = vrot.lane.b32.xlu1 %v5955_v3, %s8122_s30  ;;  %2207 = vrot.lane.b32.xlu0 %v5955_v3, %s8125_s22 }
 0x219   : > { %v6239_v6 = vpop.permute.xlu0 %1732  ;;  %v6241_v8 = vpop.permute.xlu1 %1735 }
 0x21b   : > { %2210 = vrot.lane.b32.xlu0 %v5955_v3, %s8126_s12  ;;  %1952 = vrot.lane.b32.xlu1 %v5948_v1, %s8149_s5 }
 0x21d   : > { %v6247_v63 = vpop.permute.xlu1 %1738  ;;  %v6249_v25 = vpop.permute.xlu0 %1467 }
 0x21e   : > { %8171 = vst [vmem:[#allocation55_spill] sm:$0xff] %v6247_v63  ;;  %8172 = vst [vmem:[#allocation56_spill] sm:$0xff] %v6249_v25  ;;  %v5199_v63 = vld [vmem:[%s6269_s10 + $0x20] sm:$0xff]  }
 0x21f   : > { %1955 = vrot.lane.b32.xlu0 %v5948_v1, %s8148_s0  ;;  %2217 = vrot.lane.b32.xlu1 %v5963_v7, %s8148_s0 }
 0x221   : > { %v6255_v57 = vpop.permute.xlu1 %1741  ;;  %v6257_v21 = vpop.permute.xlu0 %1473 }
 0x222   : > { %8173 = vst [vmem:[#allocation57_spill] sm:$0xff] %v6255_v57  ;;  %8174 = vst [vmem:[#allocation58_spill] sm:$0xff] %v6257_v21  ;;  %v5195_v21 = vld [vmem:[%s6269_s10] sm:$0xff]   ;;  %v5198_v57 = vld [vmem:[%s6269_s10 + $0x18] sm:$0xff]  }
 0x223   : > { %1958 = vrot.lane.b32.xlu0 %v5948_v1, %s8151_s17  ;;  %2220 = vrot.lane.b32.xlu1 %v5963_v7, %s8151_s17  ;;  %v2451_v43 = vsel %vm812_vm0, %v5195_v21, 0 }
 0x224   : > { %5072 = vmatprep.subr.msk.bf16.mxu1 %vm812_vm0, %v5195_v21 }
 0x225   : > { %v6271_v3 = vpop.permute.xlu1 %1744  ;;  %v6273_v25 = vpop.permute.xlu0 %1476  ;;  %4841 = vmatpush3.bf16.xpose.msra.mxu1 %v2451_v43 }
 0x226   : > { %8175 = vst [vmem:[#allocation59_spill] sm:$0xff] %v6271_v3  ;;  %8176 = vst [vmem:[#allocation60_spill] sm:$0xff] %v6273_v25  ;;  %v5196_v3 = vld [vmem:[%s6269_s10 + $0x8] sm:$0xff]  }
 0x227   : > { %1961 = vrot.lane.b32.xlu0 %v5948_v1, %s8139_s29  ;;  %2223 = vrot.lane.b32.xlu1 %v5963_v7, %s8139_s29  ;;  %v2454_v21 = vsel %vm812_vm0, %v5196_v3, 0 }
 0x228   : > { %5073 = vmatprep.subr.msk.bf16.mxu1 %vm812_vm0, %v5196_v3 }
 0x229   : > { %v6282_v18 = vpop.permute.xlu1 %1747  ;;  %v6284_v0 = vpop.permute.xlu0 %1479 }
 0x22a   : > { %8177 = vst [vmem:[#allocation61_spill] sm:$0xff] %v6282_v18  ;;  %8178 = vst [vmem:[#allocation62_spill] sm:$0xff] %v6284_v0  ;;  %v5197_v18 = vld [vmem:[%s6269_s10 + $0x10] sm:$0xff]  }
 0x22b   : > { %1964 = vrot.lane.b32.xlu0 %v5948_v1, %s8141_s11  ;;  %2226 = vrot.lane.b32.xlu1 %v5963_v7, %s8141_s11  ;;  %v2457_v3 = vsel %vm812_vm0, %v5197_v18, 0 }
 0x22d   : > { %v6290_v25 = vpop.permute.xlu1 %1470  ;;  %v6292_v45 = vpop.permute.xlu0 %1482  ;;  %4843 = vmatpush3.bf16.xpose.msra.mxu1 %v2454_v21 }
 0x22e   : > { %8179 = vst [vmem:[#allocation63_spill] sm:$0xff] %v6290_v25  ;;  %8180 = vst [vmem:[#allocation64_spill] sm:$0xff] %v6292_v45  ;;  %5074 = vmatprep.subr.msk.bf16.mxu1 %vm812_vm0, %v5197_v18  ;;  %v2460_v18 = vsel %vm812_vm0, %v5198_v57, 0 }
 0x22f   : > { %1967 = vrot.lane.b32.xlu0 %v5948_v1, %s8143_s19  ;;  %2229 = vrot.lane.b32.xlu1 %v5963_v7, %s8143_s19 }
 0x231   : > { %v6301_v43 = vpop.permute.xlu1 %1812  ;;  %v6303_v0 = vpop.permute.xlu0 %1485 }
 0x232   : > { %8181 = vst [vmem:[#allocation65_spill] sm:$0xff] %v6301_v43  ;;  %8182 = vst [vmem:[#allocation66_spill] sm:$0xff] %v6303_v0 }
 0x233   : > { %1970 = vrot.lane.b32.xlu0 %v5948_v1, %s8144_s21  ;;  %2232 = vrot.lane.b32.xlu1 %v5963_v7, %s8144_s21 }
 0x235   : > { %v6309_v45 = vpop.permute.xlu0 %1815  ;;  %v6311_v25 = vpop.permute.xlu1 %1553  ;;  %4845 = vmatpush3.bf16.xpose.msra.mxu1 %v2457_v3  ;;  %v5380_v3 = vld [vmem:[%s8039_s4] ss:$0 sm:$0xff] }
 0x236   : > { %8183 = vst [vmem:[#allocation67_spill] sm:$0xff] %v6309_v45  ;;  %8184 = vst [vmem:[#allocation68_spill] sm:$0xff] %v6311_v25  ;;  %5075 = vmatprep.subr.msk.bf16.mxu1 %vm812_vm0, %v5198_v57 }
 0x237   : > { %1973 = vrot.lane.b32.xlu0 %v5948_v1, %s8146_s3  ;;  %2235 = vrot.lane.b32.xlu1 %v5963_v7, %s8146_s3 }
 0x239   : > { %v6320_v21 = vpop.permute.xlu0 %1818  ;;  %v6322_v0 = vpop.permute.xlu1 %1556 }
 0x23a   : > { %8185 = vst [vmem:[#allocation69_spill] sm:$0xff] %v6320_v21  ;;  %8186 = vst [vmem:[#allocation70_spill] sm:$0xff] %v6322_v0 }
 0x23b   : > { %2214 = vrot.lane.b32.xlu0 %v5963_v7, %s8149_s5  ;;  %2055 = vrot.lane.b32.xlu1 %v6031_v22, %s8162_s26  ;;  %v5379_v7 = vld [vmem:[%s5642_s20] sm:$0xff] }
 0x23c   : > { %v548_v0 = vadd.f32 %v5380_v3, %v5379_v7 }
 0x23d   : > { %v6328_v1 = vpop.permute.xlu0 %1821  ;;  %v6330_v25 = vpop.permute.xlu1 %1559  ;;  %4847 = vmatpush3.bf16.xpose.msra.mxu1 %v2460_v18 }
 0x23e   : > { %8187 = vst [vmem:[#allocation71_spill] sm:$0xff] %v6328_v1  ;;  %8188 = vst [vmem:[#allocation72_spill] sm:$0xff] %v6330_v25  ;;  %v5381_v1 = vld [vmem:[%s5642_s20 + $0x8] sm:$0xff]  ;;  %5076 = vmatprep.subr.msk.bf16.mxu1 %vm812_vm0, %v5199_v63 }
 0x23f   : > { %2058 = vrot.lane.b32.xlu1 %v6031_v22, %s8164_s15  ;;  %2052 = vrot.lane.b32.xlu0 %v6031_v22, %s8122_s30  ;;  %v549_v25 = vadd.f32 %v5381_v1, %v5380_v3  ;;  %v2586_v1 = vsel %vm812_vm0, %v5199_v63, 0 }
 0x241   : > { %v6344_v21 = vpop.permute.xlu0 %1824  ;;  %v6346_v43 = vpop.permute.xlu1 %1562  ;;  %v580_v7 = vpack.c.bf16 %v549_v25, %v548_v0  ;;  %v5200_v25 = vld [vmem:[%s6269_s10 + $0x28] sm:$0xff]  }
 0x242   : > { %8189 = vst [vmem:[#allocation73_spill] sm:$0xff] %v6346_v43 }
 0x243   : > { %2061 = vrot.lane.b32.xlu1 %v6031_v22, %s8123_s24  ;;  %1994 = vrot.lane.b32.xlu0 %v6033_v23, %s8162_s26 }
 0x244   : > { %4848 = vmatprep.mubr.msk.bf16.mxu1 %vm812_vm0, %v580_v7 }
 0x245   : > { %v6352_v57 = vpop.permute.xlu0 %1827  ;;  %v6354_v45 = vpop.permute.xlu1 %1565 }
 0x246   : > { %8190 = vst [vmem:[#allocation74_spill] sm:$0xff] %v6352_v57  ;;  %8191 = vst [vmem:[#allocation75_spill] sm:$0xff] %v6354_v45  ;;  %v8194_v45 = vpack.c.bf16 %v5686_v36, %v5681_v33  ;;  %v2589_v33 = vsel %vm812_vm0, %v5200_v25, 0 }
 0x247   : > { %2064 = vrot.lane.b32.xlu1 %v6031_v22, %s8124_s28  ;;  %2253 = vrot.lane.b32.xlu0 %v6065_v38, %s8122_s30 }
 0x248   : > { %4849 = vmatmul.mubr.msk.bf16.vlgmr.msra.gmra.mrb[16].mxu1 %vm812_vm0, %v8194_v45 }
 0x249   : > { %v6364_v18 = vpop.permute.xlu0 %1830  ;;  %v6366_v43 = vpop.permute.xlu1 %1568  ;;  %4857 = vmatpush3.bf16.xpose.msra.mxu1 %v2586_v1 }
 0x24a   : > { %8192 = vst [vmem:[#allocation76_spill] sm:$0xff] %v6364_v18  ;;  %8193 = vst [vmem:[#allocation77_spill] sm:$0xff] %v6366_v43  ;;  %5077 = vmatprep.subr.msk.bf16.mxu1 %vm812_vm0, %v5200_v25  ;;  %v552_v43 = vadd.f32 %v5380_v3, %v5722_v59 }
 0x24b   : > { %2067 = vrot.lane.b32.xlu1 %v6031_v22, %s8125_s22  ;;  %2077 = vrot.lane.b32.xlu0 %v6039_v26, %s8148_s0 }
 0x24d   : > { %v6376_v63 = vpop.permute.xlu0 %1833  ;;  %v6378_v0 = vpop.permute.xlu1 %1571 }
 0x24e   : > { %8195 = vst [vmem:[#allocation78_spill] sm:$0xff] %v6376_v63  ;;  %8196 = vst [vmem:[#allocation79_spill] sm:$0xff] %v6378_v0  ;;  %v554_v63 = vadd.f32 %v5380_v3, %v5745_v13  ;;  %v5382_v13 = vld [vmem:[%s8039_s4 + $0x1] ss:$0 sm:$0xff] }
 0x24f   : > { %2070 = vrot.lane.b32.xlu1 %v6031_v22, %s8126_s12  ;;  %2080 = vrot.lane.b32.xlu0 %v6039_v26, %s8151_s17  ;;  %v5201_v22 = vld [vmem:[%s6269_s10 + $0x30] sm:$0xff]  }
 0x250   : > { %v2592_v25 = vsel %vm812_vm0, %v5201_v22, 0 }
 0x251   : > { %v6387_v36 = vpop.permute.xlu1 %1754  ;;  %v6389_v45 = vpop.permute.xlu0 %1550  ;;  %4859 = vmatpush3.bf16.xpose.msra.mxu1 %v2589_v33 }
 0x252   : > { %8197 = vst [vmem:[#allocation80_spill] sm:$0xff] %v6389_v45  ;;  %5078 = vmatprep.subr.msk.bf16.mxu1 %vm812_vm0, %v5201_v22  ;;  %v553_v45 = vadd.f32 %v5380_v3, %v5725_v60  ;;  %v555_v22 = vadd.f32 %v5380_v3, %v5748_v14  ;;  %v5383_v14 = vld [vmem:[%s5642_s20 + $0x40] sm:$0xff]  ;;  %v5384_v3 = vld [vmem:[%s5642_s20 + $0x48] sm:$0xff] }
 0x253   : > { %2314 = vrot.lane.b32.xlu1 %v6059_v10, %s8122_s30  ;;  %2083 = vrot.lane.b32.xlu0 %v6039_v26, %s8139_s29 }
 0x254   : > { %v582_v18 = vpack.c.bf16 %v553_v45, %v552_v43  ;;  %v583_v59 = vpack.c.bf16 %v555_v22, %v554_v63  ;;  %v556_v43 = vadd.f32 %v5383_v14, %v5382_v13  ;;  %v557_v45 = vadd.f32 %v5384_v3, %v5382_v13 }
 0x255   : > { %v6395_v7 = vpop.permute.xlu1 %1757  ;;  %v6397_v1 = vpop.permute.xlu0 %1751  ;;  %v8205_v3 = vpack.c.bf16 %v5676_v29, %v5674_v28 }
 0x256   : > { %4852 = vmatprep.mubr.msk.bf16.mxu1 %vm812_vm0, %v582_v18  ;;  %v584_v22 = vpack.c.bf16 %v557_v45, %v556_v43  ;;  %v5385_v43 = vld [vmem:[%s5642_s20 + $0x60] sm:$0xff] }
 0x257   : > { %2317 = vrot.lane.b32.xlu1 %v6059_v10, %s8162_s26  ;;  %2086 = vrot.lane.b32.xlu0 %v6039_v26, %s8141_s11  ;;  %v560_v45 = vadd.f32 %v5385_v43, %v5382_v13  ;;  %v5203_v43 = vld [vmem:[%s6269_s10 + $0x40] sm:$0xff]  }
 0x258   : > { %4853 = vmatmul.mubr.msk.bf16.gmra.mrb[20].mxu1 %vm812_vm0, %v583_v59  ;;  %5080 = vmatprep.subr.msk.bf16.mxu0 %vm812_vm0, %v5203_v43 }
 0x259   : > { %v6406_v33 = vpop.permute.xlu0 %1760  ;;  %v6408_v0 = vpop.permute.xlu1 %1489  ;;  %4861 = vmatpush3.bf16.xpose.msra.mxu1 %v2592_v25  ;;  %4864 = vmatprep.mubr.msk.bf16.mxu1 %vm812_vm0, %v584_v22  ;;  %v5387_v22 = vld [vmem:[%s5642_s20 + $0x70] sm:$0xff] }
 0x25a   : > { %8198 = vst [vmem:[#allocation81_spill] sm:$0xff] %v6408_v0  ;;  %v5202_v0 = vld [vmem:[%s6269_s10 + $0x38] sm:$0xff]  }
 0x25b   : > { %2320 = vrot.lane.b32.xlu1 %v6059_v10, %s8164_s15  ;;  %2089 = vrot.lane.b32.xlu0 %v6039_v26, %s8143_s19  ;;  %v2595_v60 = vsel %vm812_vm0, %v5202_v0, 0 }
 0x25c   : > { %5079 = vmatprep.subr.msk.bf16.mxu1 %vm812_vm0, %v5202_v0 }
 0x25d   : > { %v6418_v57 = vpop.permute.xlu0 %1763  ;;  %v6420_v25 = vpop.permute.xlu1 %1498 }
 0x25e   : > { %8199 = vst [vmem:[#allocation82_spill] sm:$0xff] %v6420_v25  ;;  %v562_v25 = vadd.f32 %v5387_v22, %v5382_v13 }
 0x25f   : > { %2323 = vrot.lane.b32.xlu1 %v6059_v10, %s8123_s24  ;;  %2092 = vrot.lane.b32.xlu0 %v6039_v26, %s8144_s21 }
 0x261   : > { %v6436_v18 = vpop.permute.xlu0 %1766  ;;  %v6438_v63 = vpop.permute.xlu1 %1501  ;;  %4863 = vmatpush3.bf16.xpose.msra.mxu1 %v2595_v60 }
 0x262   : > { %8200 = vst [vmem:[#allocation83_spill] sm:$0xff] %v6438_v63 }
 0x263   : > { %2326 = vrot.lane.b32.xlu1 %v6059_v10, %s8124_s28  ;;  %2095 = vrot.lane.b32.xlu0 %v6039_v26, %s8146_s3 }
 0x265   : > { %v6444_v14 = vpop.permute.xlu0 %1769  ;;  %v6446_v59 = vpop.permute.xlu1 %1504 }
 0x266   : > { %8201 = vst [vmem:[#allocation84_spill] sm:$0xff] %v6444_v14  ;;  %8202 = vst [vmem:[#allocation85_spill] sm:$0xff] %v6446_v59  ;;  %v5386_v59 = vld [vmem:[%s5642_s20 + $0x68] sm:$0xff] }
 0x267   : > { %1991 = vrot.lane.b32.xlu1 %v6033_v23, %s8122_s30  ;;  %2336 = vrot.lane.b32.xlu0 %v6067_v39, %s8149_s5  ;;  %v561_v63 = vadd.f32 %v5386_v59, %v5382_v13 }
 0x268   : > { %4865 = vmatmul.mubr.msk.bf16.vlgmr.msra.gmra.mrb[24].mxu1 %vm812_vm0, %v8205_v3 }
 0x269   : > { %v6453_v0 = vpop.permute.xlu0 %1772  ;;  %v6455_v60 = vpop.permute.xlu1 %1507 }
 0x26a   : > { %8203 = vst [vmem:[#allocation86_spill] sm:$0xff] %v6453_v0  ;;  %8204 = vst [vmem:[#allocation87_spill] sm:$0xff] %v6455_v60  ;;  %v563_v0 = vadd.f32 %v5382_v13, %v5742_v11  ;;  %v586_v60 = vpack.c.bf16 %v561_v63, %v560_v45 }
 0x26b   : > { %1997 = vrot.lane.b32.xlu1 %v6033_v23, %s8164_s15  ;;  %2342 = vrot.lane.b32.xlu0 %v6067_v39, %s8151_s17 }
 0x26c   : > { %v587_v29 = vpack.c.bf16 %v563_v0, %v562_v25  ;;  %4868 = vmatprep.mubr.msk.bf16.mxu1 %vm812_vm0, %v586_v60 }
 0x26d   : > { %v6469_v14 = vpop.permute.xlu0 %1492  ;;  %v6471_v28 = vpop.permute.xlu1 %1510 }
 0x26f   : > { %2000 = vrot.lane.b32.xlu1 %v6033_v23, %s8123_s24  ;;  %2345 = vrot.lane.b32.xlu0 %v6067_v39, %s8139_s29 }
 0x270   : > { %4869 = vmatmul.mubr.msk.bf16.gmra.mrb[28].mxu1 %vm812_vm0, %v587_v29  ;;  %v2721_v29 = vsel %vm812_vm0, %v5203_v43, 0 }
 0x271   : > { %v6478_v59 = vpop.permute.xlu0 %1495  ;;  %v6480_v3 = vpop.permute.xlu1 %1933  ;;  %4873 = vmatpush3.bf16.xpose.msra.mxu0 %v2721_v29 }
 0x273   : > { %2003 = vrot.lane.b32.xlu1 %v6033_v23, %s8124_s28  ;;  %2348 = vrot.lane.b32.xlu0 %v6067_v39, %s8141_s11 }
 0x275   : > { %v6487_v11 = vpop.permute.xlu1 %1936  ;;  %v6489_v25 = vpop.permute.xlu0 %1930 }
 0x277   : > { %2006 = vrot.lane.b32.xlu1 %v6033_v23, %s8125_s22  ;;  %2013 = vrot.lane.b32.xlu0 %v6045_v27, %s8149_s5 }
 0x279   : > { %v6495_v13 = vpop.permute.xlu1 %1939  ;;  %v6497_v63 = vpop.permute.xlu0 %2195 }
 0x27a   : > { %8206 = vst [vmem:[#allocation88_spill] sm:$0xff] %v6495_v13  ;;  %8207 = vst [vmem:[#allocation89_spill] sm:$0xff] %v6497_v63 }
 0x27b   : > { %2009 = vrot.lane.b32.xlu1 %v6033_v23, %s8126_s12  ;;  %2022 = vrot.lane.b32.xlu0 %v6045_v27, %s8139_s29 }
 0x27d   : > { %v6503_v0 = vpop.permute.xlu1 %1942  ;;  %v6505_v60 = vpop.permute.xlu0 %2198 }
 0x27e   : > { %8208 = vst [vmem:[#allocation90_spill] sm:$0xff] %v6503_v0  ;;  %8209 = vst [vmem:[#allocation91_spill] sm:$0xff] %v6505_v60 }
 0x27f   : > { %2256 = vrot.lane.b32.xlu1 %v6065_v38, %s8162_s26  ;;  %2025 = vrot.lane.b32.xlu0 %v6045_v27, %s8141_s11 }
 0x281   : > { %v6512_v45 = vpop.permute.xlu1 %1945  ;;  %v6514_v22 = vpop.permute.xlu0 %2201 }
 0x282   : > { %8210 = vst [vmem:[#allocation92_spill] sm:$0xff] %v6512_v45  ;;  %8211 = vst [vmem:[#allocation93_spill] sm:$0xff] %v6514_v22  ;;  %v5204_v22 = vld [vmem:[%s6269_s10 + $0x48] sm:$0xff]  }
 0x283   : > { %2259 = vrot.lane.b32.xlu1 %v6065_v38, %s8164_s15  ;;  %2028 = vrot.lane.b32.xlu0 %v6045_v27, %s8143_s19  ;;  %v2724_v23 = vsel %vm812_vm0, %v5204_v22, 0 }
 0x284   : > { %5081 = vmatprep.subr.msk.bf16.mxu0 %vm812_vm0, %v5204_v22 }
 0x285   : > { %v6522_v60 = vpop.permute.xlu1 %1948  ;;  %v6524_v63 = vpop.permute.xlu0 %2204  ;;  %4875 = vmatpush3.bf16.xpose.msra.mxu0 %v2724_v23 }
 0x286   : > { %8212 = vst [vmem:[#allocation94_spill] sm:$0xff] %v6522_v60  ;;  %8213 = vst [vmem:[#allocation95_spill] sm:$0xff] %v6524_v63 }
 0x287   : > { %2262 = vrot.lane.b32.xlu1 %v6065_v38, %s8123_s24  ;;  %2031 = vrot.lane.b32.xlu0 %v6045_v27, %s8144_s21 }
 0x289   : > { %v6531_v43 = vpop.permute.xlu1 %2192  ;;  %v6533_v29 = vpop.permute.xlu0 %2207 }
 0x28a   : > { %8214 = vst [vmem:[#allocation96_spill] sm:$0xff] %v6531_v43  ;;  %8215 = vst [vmem:[#allocation97_spill] sm:$0xff] %v6533_v29  ;;  %v5205_v29 = vld [vmem:[%s6269_s10 + $0x50] sm:$0xff]  }
 0x28b   : > { %2265 = vrot.lane.b32.xlu1 %v6065_v38, %s8124_s28  ;;  %2034 = vrot.lane.b32.xlu0 %v6045_v27, %s8146_s3  ;;  %v2727_v43 = vsel %vm812_vm0, %v5205_v29, 0 }
 0x28c   : > { %5082 = vmatprep.subr.msk.bf16.mxu0 %vm812_vm0, %v5205_v29  ;;  %v5206_v29 = vld [vmem:[%s6269_s10 + $0x58] sm:$0xff]  }
 0x28d   : > { %v6541_v63 = vpop.permute.xlu0 %2210  ;;  %v6543_v60 = vpop.permute.xlu1 %1952  ;;  %4877 = vmatpush3.bf16.xpose.msra.mxu0 %v2727_v43 }
 0x28e   : > { %8216 = vst [vmem:[#allocation98_spill] sm:$0xff] %v6541_v63  ;;  %8217 = vst [vmem:[#allocation99_spill] sm:$0xff] %v6543_v60  ;;  %5083 = vmatprep.subr.msk.bf16.mxu0 %vm812_vm0, %v5206_v29 }
 0x28f   : > { %2268 = vrot.lane.b32.xlu1 %v6065_v38, %s8125_s22  ;;  %2278 = vrot.lane.b32.xlu0 %v6073_v41, %s8148_s0 }
 0x291   : > { %v6550_v22 = vpop.permute.xlu0 %1955  ;;  %v6552_v23 = vpop.permute.xlu1 %2217 }
 0x292   : > { %8218 = vst [vmem:[#allocation100_spill] sm:$0xff] %v6550_v22  ;;  %8219 = vst [vmem:[#allocation101_spill] sm:$0xff] %v6552_v23 }
 0x293   : > { %2074 = vrot.lane.b32.xlu1 %v6039_v26, %s8149_s5  ;;  %2281 = vrot.lane.b32.xlu0 %v6073_v41, %s8151_s17  ;;  %v2730_v26 = vsel %vm812_vm0, %v5206_v29, 0 }
 0x295   : > { %v6560_v63 = vpop.permute.xlu0 %1958  ;;  %v6562_v45 = vpop.permute.xlu1 %2220  ;;  %4879 = vmatpush3.bf16.xpose.msra.mxu0 %v2730_v26 }
 0x296   : > { %8220 = vst [vmem:[#allocation102_spill] sm:$0xff] %v6560_v63  ;;  %8221 = vst [vmem:[#allocation103_spill] sm:$0xff] %v6562_v45  ;;  %v6582_v45 = vld [vmem:[%s8039_s4 + $0x2] ss:$0 sm:$0xff] }
 0x297   : > { %2339 = vrot.lane.b32.xlu1 %v6067_v39, %s8148_s0  ;;  %2284 = vrot.lane.b32.xlu0 %v6073_v41, %s8139_s29  ;;  %v5388_v63 = vld [vmem:[%s5642_s20 + $0x80] sm:$0xff]  ;;  %v566_v26 = vadd.f32 %v6582_v45, %v5826_v4  ;;  %v567_v0 = vadd.f32 %v6582_v45, %v5829_v5 }
 0x299   : > { %v6569_v43 = vpop.permute.xlu0 %1961  ;;  %v6571_v23 = vpop.permute.xlu1 %2223 }
 0x29a   : > { %8222 = vst [vmem:[#allocation104_spill] sm:$0xff] %v6569_v43  ;;  %8223 = vst [vmem:[#allocation105_spill] sm:$0xff] %v6571_v23  ;;  %v564_v43 = vadd.f32 %v5388_v63, %v6582_v45  ;;  %v5389_v23 = vld [vmem:[%s5642_s20 + $0x88] sm:$0xff]  ;;  %v589_v63 = vpack.c.bf16 %v567_v0, %v566_v26  ;;  %v5207_v0 = vld [vmem:[%s6269_s10 + $0x60] sm:$0xff]  }
 0x29b   : > { %2016 = vrot.lane.b32.xlu1 %v6045_v27, %s8148_s0  ;;  %2287 = vrot.lane.b32.xlu0 %v6073_v41, %s8141_s11  ;;  %v565_v60 = vadd.f32 %v5389_v23, %v6582_v45 }
 0x29c   : > { %5084 = vmatprep.subr.msk.bf16.mxu1 %vm812_vm0, %v5207_v0 }
 0x29d   : > { %v6588_v22 = vpop.permute.xlu0 %1964  ;;  %v6590_v29 = vpop.permute.xlu1 %2226  ;;  %v588_v13 = vpack.c.bf16 %v565_v60, %v564_v43  ;;  %v2856_v60 = vsel %vm812_vm0, %v5207_v0, 0 }
 0x29e   : > { %8224 = vst [vmem:[#allocation106_spill] sm:$0xff] %v6590_v29  ;;  %4889 = vmatpush3.bf16.xpose.msra.mxu1 %v2856_v60 }
 0x29f   : > { %2019 = vrot.lane.b32.xlu1 %v6045_v27, %s8151_s17  ;;  %2290 = vrot.lane.b32.xlu0 %v6073_v41, %s8143_s19 }
 0x2a0   : > { %4880 = vmatprep.mubr.msk.bf16.mxu0 %vm812_vm0, %v588_v13 }
 0x2a1   : > { %v6601_v23 = vpop.permute.xlu0 %1967  ;;  %v6603_v29 = vpop.permute.xlu1 %2229  ;;  %4881 = vmatmul.mubr.msk.bf16.vlgmr.msra.gmra.mrb[16].mxu0 %vm812_vm0, %v589_v63 }
 0x2a2   : > { %8225 = vst [vmem:[#allocation107_spill] sm:$0xff] %v6603_v29 }
 0x2a3   : > { %2275 = vrot.lane.b32.xlu1 %v6073_v41, %s8149_s5  ;;  %2293 = vrot.lane.b32.xlu0 %v6073_v41, %s8144_s21 }
 0x2a5   : > { %v6610_v4 = vpop.permute.xlu0 %1970  ;;  %v6612_v5 = vpop.permute.xlu1 %2232 }
 0x2a6   : > { %8226 = vst [vmem:[#allocation108_spill] sm:$0xff] %v6610_v4  ;;  %8227 = vst [vmem:[#allocation109_spill] sm:$0xff] %v6612_v5 }
 0x2a7   : > { %1619 = vrot.lane.b32.xlu1 %v5871_v48, %s8124_s28  ;;  %2351 = vrot.lane.b32.xlu0 %v6067_v39, %s8143_s19 }
 0x2a9   : > { %v6618_v27 = vpop.permute.xlu0 %1973  ;;  %v6620_v13 = vpop.permute.xlu1 %2235 }
 0x2aa   : > { %8228 = vst [vmem:[#allocation110_spill] sm:$0xff] %v6618_v27  ;;  %8229 = vst [vmem:[#allocation111_spill] sm:$0xff] %v6620_v13  ;;  %v6696_v27 = vld [vmem:[%s8039_s4 + $0x3] ss:$0 sm:$0xff] }
 0x2ab   : > { %2271 = vrot.lane.b32.xlu1 %v6065_v38, %s8126_s12  ;;  %1644 = vrot.lane.b32.xlu0 %v5875_v51, %s8143_s19  ;;  %v5208_v38 = vld [vmem:[%s6269_s10 + $0x68] sm:$0xff]  }
 0x2ac   : > { %v2859_v0 = vsel %vm812_vm0, %v5208_v38, 0  ;;  %5085 = vmatprep.subr.msk.bf16.mxu1 %vm812_vm0, %v5208_v38 }
 0x2ad   : > { %v6629_v43 = vpop.permute.xlu0 %2214  ;;  %v6631_v26 = vpop.permute.xlu1 %2055  ;;  %4891 = vmatpush3.bf16.xpose.msra.mxu1 %v2859_v0 }
 0x2ae   : > { %8230 = vst [vmem:[#allocation112_spill] sm:$0xff] %v6629_v43  ;;  %v5209_v43 = vld [vmem:[%s6269_s10 + $0x70] sm:$0xff]  }
 0x2af   : > { %2329 = vrot.lane.b32.xlu1 %v6059_v10, %s8125_s22  ;;  %2296 = vrot.lane.b32.xlu0 %v6073_v41, %s8146_s3  ;;  %v2862_v38 = vsel %vm812_vm0, %v5209_v43, 0 }
 0x2b0   : > { %5086 = vmatprep.subr.msk.bf16.mxu1 %vm812_vm0, %v5209_v43 }
 0x2b1   : > { %v6637_v63 = vpop.permute.xlu1 %2058  ;;  %v6639_v13 = vpop.permute.xlu0 %2052 }
 0x2b3   : > { %1622 = vrot.lane.b32.xlu1 %v5871_v48, %s8125_s22  ;;  %2354 = vrot.lane.b32.xlu0 %v6067_v39, %s8144_s21 }
 0x2b5   : > { %v6648_v60 = vpop.permute.xlu1 %2061  ;;  %v6650_v5 = vpop.permute.xlu0 %1994  ;;  %4893 = vmatpush3.bf16.xpose.msra.mxu1 %v2862_v38 }
 0x2b6   : > { %8231 = vst [vmem:[#allocation113_spill] sm:$0xff] %v6648_v60  ;;  %8232 = vst [vmem:[#allocation114_spill] sm:$0xff] %v6650_v5 }
 0x2b7   : > { %2332 = vrot.lane.b32.xlu1 %v6059_v10, %s8126_s12  ;;  %1647 = vrot.lane.b32.xlu0 %v5875_v51, %s8144_s21 }
 0x2b9   : > { %v6656_v41 = vpop.permute.xlu1 %2064  ;;  %v6658_v29 = vpop.permute.xlu0 %2253 }
 0x2ba   : > { %8233 = vst [vmem:[#allocation115_spill] sm:$0xff] %v6656_v41  ;;  %8234 = vst [vmem:[#allocation116_spill] sm:$0xff] %v6658_v29 }
 0x2bb   : > { %1625 = vrot.lane.b32.xlu1 %v5871_v48, %s8126_s12  ;;  %2357 = vrot.lane.b32.xlu0 %v6067_v39, %s8146_s3  ;;  %v5210_v39 = vld [vmem:[%s6269_s10 + $0x78] sm:$0xff]   ;;  %s5498_s10 = smov 32  }
 0x2bc   : > { %v2865_v43 = vsel %vm812_vm0, %v5210_v39, 0  ;;  %5087 = vmatprep.subr.msk.bf16.mxu1 %vm812_vm0, %v5210_v39  ;;  %v1721_v39 = vsel %vm1384_vm1, %v6087_v44, %v6105_v35  ;;  %v5393_v44 = vld [vmem:[%s5642_s20 + $0xd8] sm:$0xff] }
 0x2bd   : > { %v6667_v0 = vpop.permute.xlu1 %2067  ;;  %v6669_v10 = vpop.permute.xlu0 %2077  ;;  %4895 = vmatpush3.bf16.xpose.msra.mxu1 %v2865_v43  ;;  %v5392_v43 = vld [vmem:[%s5642_s20 + $0xd0] sm:$0xff]  ;;  %v575_v41 = vadd.f32 %v5393_v44, %v6696_v27 }
 0x2be   : > { %8235 = vst [vmem:[#allocation117_spill] sm:$0xff] %v6667_v0  ;;  %v574_v35 = vadd.f32 %v5392_v43, %v6696_v27 }
 0x2bf   : > { %1338 = vrot.lane.b32.xlu1 %v5873_v19, %s8122_s30  ;;  %1650 = vrot.lane.b32.xlu0 %v5875_v51, %s8146_s3  ;;  %v1714_v51 = vsel %vm1384_vm1, %v5863_v46, %v6009_v16  ;;  %v1836_v46 = vsel %vm1384_vm1, %v5883_v53, %v6185_v31  ;;  %v5390_v16 = vld [vmem:[%s5642_s20 + $0xc0] sm:$0xff] }
 0x2c0   : > { %v572_v5 = vadd.f32 %v5390_v16, %v6696_v27  ;;  %v1715_v31 = vsel %vm1386_vm2, %v1714_v51, %v6007_v9  ;;  %v1837_v16 = vsel %vm1386_vm2, %v1836_v46, %v6175_v40  ;;  %v593_v43 = vpack.c.bf16 %v575_v41, %v574_v35 }
 0x2c1   : > { %v6675_v29 = vpop.permute.xlu1 %2070  ;;  %v6677_v48 = vpop.permute.xlu0 %2080  ;;  %v1716_v44 = vsel %vm1388_vm3, %v1715_v31, %v6015_v17  ;;  %v1838_v17 = vsel %vm1388_vm3, %v1837_v16, %v6183_v61  ;;  %v8241_v31 = vld [vmem:[#allocation57_spill] sm:$0xff] }
 0x2c2   : > { %8236 = vst [vmem:[#allocation118_spill] sm:$0xff] %v6675_v29  ;;  %v1717_v9 = vsel %vm1390_vm4, %v1716_v44, %v6023_v20  ;;  %v8242_v16 = vld [vmem:[#allocation69_spill] sm:$0xff]  ;;  %v5397_v44 = vld [vmem:[%s5642_s20 + $0xb8] sm:$0xff] }
 0x2c3   : > { %1363 = vrot.lane.b32.xlu1 %v5877_v52, %s8148_s0  ;;  %1360 = vrot.lane.b32.xlu0 %v5877_v52, %s8149_s5  ;;  %v1718_v40 = vsel %vm1392_vm5, %v1717_v9, %v6035_v24  ;;  %v571_v9 = vadd.f32 %v5397_v44, %v6582_v45 }
 0x2c4   : > { %v1719_v20 = vsel %vm1394_vm6, %v1718_v40, %v6047_v30  ;;  %v1839_v30 = vsel %vm1390_vm4, %v1838_v17, %v6191_v58  ;;  %v8243_v40 = vld [vmem:[#allocation59_spill] sm:$0xff] }
 0x2c5   : > { %v6689_v38 = vpop.permute.xlu1 %2314  ;;  %v6691_v29 = vpop.permute.xlu0 %2083  ;;  %v1720_v24 = vsel %vm1396_vm7, %v1719_v20, %v6055_v32  ;;  %v8244_v17 = vld [vmem:[#allocation71_spill] sm:$0xff] }
 0x2c6   : > { %8237 = vst [vmem:[#allocation119_spill] sm:$0xff] %v6689_v38  ;;  %v5391_v38 = vld [vmem:[%s5642_s20 + $0xc8] sm:$0xff] }
 0x2c7   : > { %v573_v0 = vadd.f32 %v5391_v38, %v6696_v27  ;;  %1366 = vrot.lane.b32.xlu1 %v5877_v52, %s8151_s17  ;;  %1341 = vrot.lane.b32.xlu0 %v5873_v19, %s8162_s26  ;;  %v1722_v38 = vsel %vm1386_vm2, %v1721_v39, %v6095_v15  ;;  %v8240_v39 = vld [vmem:[#allocation65_spill] sm:$0xff] }
 0x2c8   : > { %v1723_v15 = vsel %vm1388_vm3, %v1722_v38, %v6103_v50 }
 0x2c9   : > { %v592_v53 = vpack.c.bf16 %v573_v0, %v572_v5  ;;  %v6722_v4 = vpop.permute.xlu1 %2317  ;;  %v6724_v60 = vpop.permute.xlu0 %2086  ;;  %v1775_v5 = vsel %vm1384_vm1, %v5889_v54, %v6233_v55  ;;  %v1724_v61 = vsel %vm1390_vm4, %v1723_v15, %v6111_v37  ;;  %v1840_v55 = vsel %vm1392_vm5, %v1839_v30, %v6199_v34  ;;  %v8245_v30 = vld [vmem:[#allocation61_spill] sm:$0xff] }
 0x2ca   : > { %v1776_v50 = vsel %vm1386_vm2, %v1775_v5, %v6239_v6  ;;  %v1725_v54 = vsel %vm1392_vm5, %v1724_v61, %v6119_v49  ;;  %v1452_v37 = vsel %vm1384_vm1, %v5869_v47, %v6071_v12  ;;  %v1841_v32 = vsel %vm1394_vm6, %v1840_v55, %v6207_v62  ;;  %v8238_v12 = vld [vmem:[#allocation55_spill] sm:$0xff] }
 0x2cb   : > { %4896 = vmatprep.mubr.msk.bf16.mxu1 %vm812_vm0, %v592_v53  ;;  %1369 = vrot.lane.b32.xlu1 %v5877_v52, %s8139_s29  ;;  %v1726_v6 = vsel %vm1394_vm6, %v1725_v54, %v6127_v42  ;;  %v1777_v58 = vsel %vm1388_vm3, %v1776_v50, %v6241_v8  ;;  %v1842_v47 = vsel %vm1396_vm7, %v1841_v32, %v6215_v2  ;;  %v8239_v8 = vld [vmem:[#allocation67_spill] sm:$0xff]  ;;  %v5395_v2 = vld [vmem:[%s5642_s20 + $0xa8] sm:$0xff]  ;;  %v5398_v32 = vld [vmem:[%s5642_s20 + $0xe0] sm:$0xff] }
 0x2cc   : > { %1344 = vrot.lane.b32.xlu0 %v5873_v19, %s8164_s15  ;;  %4897 = vmatmul.mubr.msk.bf16.vlgmr.msra.gmra.mrb[32].mxu1 %vm812_vm0, %v593_v43  ;;  %v1727_v34 = vsel %vm1396_vm7, %v1726_v6, %v6135_v56  ;;  %v1778_v42 = vsel %vm1390_vm4, %v1777_v58, %v8238_v12  ;;  %v1782_v62 = vsel %vm1384_vm1, %v6397_v1, %v6387_v36  ;;  %v5394_v56 = vld [vmem:[%s5642_s20 + $0xa0] sm:$0xff]  ;;  %v5396_v1 = vld [vmem:[%s5642_s20 + $0xb0] sm:$0xff] }
 0x2cd   : > { %v6747_v41 = vpop.permute.xlu1 %2320  ;;  %v6749_v0 = vpop.permute.xlu0 %2089  ;;  %v1843_v46 = vsel %vm1384_vm1, %v8240_v39, %v8239_v8  ;;  %v568_v35 = vadd.f32 %v5394_v56, %v6582_v45  ;;  %v569_v53 = vadd.f32 %v5395_v2, %v6582_v45  ;;  %v1779_v38 = vsel %vm1392_vm5, %v1778_v42, %v8241_v31  ;;  %v8246_v12 = vld [vmem:[#allocation74_spill] sm:$0xff]  ;;  %v5401_v8 = vld [vmem:[%s5642_s20 + $0xf8] sm:$0xff]  ;;  %v8247_v39 = vld [vmem:[#allocation76_spill] sm:$0xff] }
 0x2ce   : > { %v1844_v36 = vsel %vm1386_vm2, %v1843_v46, %v8242_v16  ;;  %v570_v43 = vadd.f32 %v5396_v1, %v6582_v45  ;;  %v1780_v15 = vsel %vm1394_vm6, %v1779_v38, %v8243_v40  ;;  %v1783_v5 = vsel %vm1386_vm2, %v1782_v62, %v6395_v7  ;;  %v8248_v56 = vld [vmem:[#allocation84_spill] sm:$0xff]  ;;  %v8249_v31 = vld [vmem:[#allocation35_spill] sm:$0xff]  ;;  %v8252_v1 = vld [vmem:[#allocation86_spill] sm:$0xff] }
 0x2cf   : > { %1852 = vrot.lane.b32.xlu1 %v1720_v24, %s5497_s18  ;;  %v1845_v20 = vsel %vm1388_vm3, %v1844_v36, %v8244_v17  ;;  %v590_v61 = vpack.c.bf16 %v569_v53, %v568_v35  ;;  %v1781_v54 = vsel %vm1396_vm7, %v1780_v15, %v8245_v30  ;;  %v1784_v55 = vsel %vm1388_vm3, %v1783_v5, %v6406_v33  ;;  %v8250_v38 = vld [vmem:[#allocation40_spill] sm:$0xff]  ;;  %v8251_v36 = vld [vmem:[#allocation78_spill] sm:$0xff] }
 0x2d0   : > { %1347 = vrot.lane.b32.xlu0 %v5873_v19, %s8123_s24  ;;  %v1846_v45 = vsel %vm1390_vm4, %v1845_v20, %v6344_v21  ;;  %v591_v6 = vpack.c.bf16 %v571_v9, %v570_v43  ;;  %v1785_v7 = vsel %vm1390_vm4, %v1784_v55, %v6418_v57  ;;  %v576_v58 = vadd.f32 %v5398_v32, %v6696_v27  ;;  %v5400_v57 = vld [vmem:[%s5642_s20 + $0xf0] sm:$0xff]  ;;  %v8253_v9 = vld [vmem:[#allocation21_spill] sm:$0xff]  ;;  %v8254_v15 = vld [vmem:[#allocation36_spill] sm:$0xff] }
 0x2d1   : > { %v6775_v51 = vpop.permute.xlu1 %2323  ;;  %v6777_v49 = vpop.permute.xlu0 %2092  ;;  %v1847_v33 = vsel %vm1392_vm5, %v1846_v45, %v8246_v12  ;;  %v1786_v42 = vsel %vm1392_vm5, %v1785_v7, %v6436_v18  ;;  %4884 = vmatprep.mubr.msk.bf16.mxu0 %vm812_vm0, %v590_v61  ;;  %v578_v62 = vadd.f32 %v5400_v57, %v6696_v27  ;;  %v1459_v16 = vsel %vm1384_vm1, %v8250_v38, %v8249_v31  ;;  %v8255_v61 = vld [vmem:[#allocation22_spill] sm:$0xff]  ;;  %v8258_v55 = vld [vmem:[#allocation81_spill] sm:$0xff]  ;;  %v8259_v7 = vld [vmem:[#allocation63_spill] sm:$0xff] }
 0x2d2   : > { %v1848_v46 = vsel %vm1394_vm6, %v1847_v33, %v8247_v39  ;;  %v1787_v35 = vsel %vm1394_vm6, %v1786_v42, %v8248_v56  ;;  %4885 = vmatmul.mubr.msk.bf16.gmra.mrb[20].mxu0 %vm812_vm0, %v591_v6  ;;  %v1453_v40 = vsel %vm1386_vm2, %v1452_v37, %v8253_v9  ;;  %v1460_v17 = vsel %vm1386_vm2, %v1459_v16, %v8254_v15  ;;  %v8257_v37 = vld [vmem:[#allocation14_spill] sm:$0xff]  ;;  %v8261_v12 = vld [vmem:[#allocation53_spill] sm:$0xff]  ;;  %v8264_v57 = vld [vmem:[#allocation80_spill] sm:$0xff] }
 0x2d3   : > { %1372 = vrot.lane.b32.xlu1 %v5877_v52, %s8141_s11  ;;  %v1788_v43 = vsel %vm1396_vm7, %v1787_v35, %v8252_v1  ;;  %v1454_v30 = vsel %vm1388_vm3, %v1453_v40, %v8255_v61  ;;  %v1520_v6 = vsel %vm1384_vm1, %v8258_v55, %v6469_v14  ;;  %v8262_v33 = vld [vmem:[#allocation13_spill] sm:$0xff]  ;;  %v8263_v14 = vld [vmem:[#allocation68_spill] sm:$0xff]  ;;  %v8267_v35 = vld [vmem:[#allocation82_spill] sm:$0xff] }
 0x2d4   : > { %1854 = vrot.lane.b32.xlu0 %v1727_v34, %s5497_s18  ;;  %v5399_v34 = vld [vmem:[%s5642_s20 + $0xe8] sm:$0xff]  ;;  %v1574_v42 = vsel %vm1384_vm1, %v8262_v33, %v8261_v12  ;;  %v8268_v31 = vld [vmem:[#allocation38_spill] sm:$0xff]  ;;  %v8269_v16 = vld [vmem:[#allocation48_spill] sm:$0xff] }
 0x2d5   : > { %v6812_v24 = vpop.permute.xlu1 %2326  ;;  %v6814_v50 = vpop.permute.xlu0 %2095  ;;  %v577_v21 = vadd.f32 %v5399_v34, %v6696_v27  ;;  %v8260_v34 = vld [vmem:[#allocation37_spill] sm:$0xff]  ;;  %v8272_v9 = vld [vmem:[#allocation60_spill] sm:$0xff]  ;;  %v8273_v15 = vld [vmem:[#allocation83_spill] sm:$0xff] }
 0x2d6   : > { %v8279_v12 = vld [vmem:[#allocation85_spill] sm:$0xff] }
 0x2d7   : > { %1858 = vrot.lane.b32.xlu1 %v1781_v54, %s5498_s10  ;;  %v594_v18 = vpack.c.bf16 %v577_v21, %v576_v58  ;;  %v8256_v54 = vld [vmem:[#allocation56_spill] sm:$0xff]  ;;  %v1521_v58 = vsel %vm1386_vm2, %v1520_v6, %v6478_v59  ;;  %v1461_v21 = vsel %vm1388_vm3, %v1460_v17, %v8260_v34  ;;  %v8278_v34 = vld [vmem:[#allocation62_spill] sm:$0xff] }
 0x2d8   : > { %1864 = vrot.lane.b32.xlu0 %v1842_v47, %s5499_s13  ;;  %v579_v47 = vadd.f32 %v5401_v8, %v6696_v27  ;;  %v1849_v27 = vsel %vm1396_vm7, %v1848_v46, %v8251_v36  ;;  %v1513_v45 = vsel %vm1384_vm1, %v8257_v37, %v8256_v54  ;;  %v8265_v8 = vld [vmem:[#allocation25_spill] sm:$0xff]  ;;  %v8266_v46 = vld [vmem:[#allocation58_spill] sm:$0xff]  ;;  %v1462_v38 = vsel %vm1390_vm4, %v1461_v21, %v8268_v31  ;;  %v8274_v54 = vld [vmem:[#allocation39_spill] sm:$0xff] }
 0x2d9   : > { %v6843_v2 = vpop.permute.xlu1 %1991  ;;  %v6845_v53 = vpop.permute.xlu0 %2336  ;;  %4900 = vmatprep.mubr.msk.bf16.mxu1 %vm812_vm0, %v594_v18  ;;  %v1514_v32 = vsel %vm1386_vm2, %v1513_v45, %v8259_v7  ;;  %v1455_v59 = vsel %vm1390_vm4, %v1454_v30, %v8265_v8  ;;  %v1522_v18 = vsel %vm1388_vm3, %v1521_v58, %v8267_v35  ;;  %v1575_v36 = vsel %vm1386_vm2, %v1574_v42, %v8269_v16  ;;  %v8275_v45 = vld [vmem:[#allocation49_spill] sm:$0xff]  ;;  %v8276_v6 = vld [vmem:[#allocation72_spill] sm:$0xff] }
 0x2da   : > { %v595_v44 = vpack.c.bf16 %v579_v47, %v578_v62  ;;  %v1581_v62 = vsel %vm1384_vm1, %v8264_v57, %v8263_v14  ;;  %v1515_v56 = vsel %vm1388_vm3, %v1514_v32, %v8266_v46  ;;  %v1523_v17 = vsel %vm1390_vm4, %v1522_v18, %v8273_v15  ;;  %v8277_v32 = vld [vmem:[#allocation27_spill] sm:$0xff]  ;;  %v8280_v42 = vld [vmem:[#allocation41_spill] sm:$0xff]  ;;  %v8281_v57 = vld [vmem:[#allocation50_spill] sm:$0xff] }
 0x2db   : > { %1866 = vrot.lane.b32.xlu1 %v1849_v27, %s5499_s13  ;;  %v8270_v27 = vld [vmem:[#allocation70_spill] sm:$0xff]  ;;  %v1516_v40 = vsel %vm1390_vm4, %v1515_v56, %v8272_v9  ;;  %v1463_v37 = vsel %vm1392_vm5, %v1462_v38, %v8274_v54  ;;  %v1576_v55 = vsel %vm1388_vm3, %v1575_v36, %v8275_v45  ;;  %v1524_v33 = vsel %vm1392_vm5, %v1523_v17, %v8279_v12  ;;  %v8282_v8 = vld [vmem:[#allocation73_spill] sm:$0xff]  ;;  %v8283_v56 = vld [vmem:[#allocation43_spill] sm:$0xff] }
 0x2dc   : > { %1860 = vrot.lane.b32.xlu0 %v1788_v43, %s5498_s10  ;;  %4901 = vmatmul.mubr.msk.bf16.gmra.mrb[36].mxu1 %vm812_vm0, %v595_v44  ;;  %v1582_v1 = vsel %vm1386_vm2, %v1581_v62, %v8270_v27  ;;  %v8271_v43 = vld [vmem:[#allocation26_spill] sm:$0xff]  ;;  %v1517_v21 = vsel %vm1392_vm5, %v1516_v40, %v8278_v34  ;;  %v1464_v14 = vsel %vm1394_vm6, %v1463_v37, %v8280_v42  ;;  %v8285_v38 = vld [vmem:[#allocation64_spill] sm:$0xff]  ;;  %v8286_v36 = vld [vmem:[#allocation87_spill] sm:$0xff] }
 0x2dd   : > { %v6862_v20 = vpop.permute.xlu1 %1997  ;;  %v6864_v5 = vpop.permute.xlu0 %2342  ;;  %v1456_v44 = vsel %vm1392_vm5, %v1455_v59, %v8271_v43  ;;  %v1583_v7 = vsel %vm1388_vm3, %v1582_v1, %v8276_v6  ;;  %v1577_v62 = vsel %vm1390_vm4, %v1576_v55, %v8281_v57  ;;  %v1465_v35 = vsel %vm1396_vm7, %v1464_v14, %v8283_v56  ;;  %v8284_v18 = vld [vmem:[#allocation30_spill] sm:$0xff]  ;;  %v8287_v1 = vld [vmem:[#allocation51_spill] sm:$0xff]  ;;  %v8290_v45 = vld [vmem:[#allocation52_spill] sm:$0xff] }
 0x2de   : > { %v1457_v58 = vsel %vm1394_vm6, %v1456_v44, %v8277_v32  ;;  %v1518_v16 = vsel %vm1394_vm6, %v1517_v21, %v8285_v38  ;;  %v1525_v27 = vsel %vm1394_vm6, %v1524_v33, %v8286_v36  ;;  %v1578_v43 = vsel %vm1392_vm5, %v1577_v62, %v8287_v1  ;;  %v8288_v44 = vld [vmem:[#allocation75_spill] sm:$0xff]  ;;  %v8289_v17 = vld [vmem:[#allocation66_spill] sm:$0xff]  ;;  %v8291_v6 = vld [vmem:[#allocation77_spill] sm:$0xff] }
 0x2df   : > { %1375 = vrot.lane.b32.xlu1 %v5877_v52, %s8143_s19  ;;  %v1458_v31 = vsel %vm1396_vm7, %v1457_v58, %v8284_v18  ;;  %v1519_v54 = vsel %vm1396_vm7, %v1518_v16, %v8289_v17  ;;  %v1526_v37 = vsel %vm1396_vm7, %v1525_v27, %v6471_v28  ;;  %v1579_v55 = vsel %vm1394_vm6, %v1578_v43, %v8290_v45  ;;  %v8292_v34 = vld [vmem:[#allocation54_spill] sm:$0xff]  ;;  %v8293_v12 = vld [vmem:[#allocation79_spill] sm:$0xff]  ;;  %v8294_v14 = vld [vmem:[#allocation17_spill] sm:$0xff] }
 0x2e0   : > { %1350 = vrot.lane.b32.xlu0 %v5873_v19, %s8124_s28  ;;  %v1580_v21 = vsel %vm1396_vm7, %v1579_v55, %v8292_v34  ;;  %v8295_v57 = vld [vmem:[#allocation16_spill] sm:$0xff]  ;;  %v8299_v55 = vld [vmem:[#allocation90_spill] sm:$0xff] }
 0x2e1   : > { %v6893_v47 = vpop.permute.xlu1 %2000  ;;  %v6895_v39 = vpop.permute.xlu0 %2345  ;;  %v8298_v45 = vld [vmem:[#allocation88_spill] sm:$0xff] }
 0x2e3   : > { %1378 = vrot.lane.b32.xlu1 %v5877_v52, %s8144_s21 }
 0x2e4   : > { %1353 = vrot.lane.b32.xlu0 %v5873_v19, %s8125_s22 }
 0x2e5   : > { %v6917_v61 = vpop.permute.xlu1 %2003  ;;  %v6919_v30 = vpop.permute.xlu0 %2348 }
 0x2e7   : > { %1381 = vrot.lane.b32.xlu1 %v5877_v52, %s8146_s3  ;;  %v1584_v52 = vsel %vm1390_vm4, %v1583_v7, %v8282_v8 }
 0x2e8   : > { %1356 = vrot.lane.b32.xlu0 %v5873_v19, %s8126_s12  ;;  %v1585_v9 = vsel %vm1392_vm5, %v1584_v52, %v8288_v44  ;;  %v8297_v44 = vld [vmem:[#allocation23_spill] sm:$0xff] }
 0x2e9   : > { %v6943_v59 = vpop.permute.xlu1 %2006  ;;  %v6945_v46 = vpop.permute.xlu0 %2013  ;;  %v1586_v7 = vsel %vm1394_vm6, %v1585_v9, %v8291_v6  ;;  %v8300_v6 = vld [vmem:[#allocation100_spill] sm:$0xff] }
 0x2ea   : > { %v1587_v28 = vsel %vm1396_vm7, %v1586_v7, %v8293_v12  ;;  %v8301_v7 = vld [vmem:[#allocation99_spill] sm:$0xff]  ;;  %v8303_v12 = vld [vmem:[#allocation102_spill] sm:$0xff] }
 0x2eb   : > { %1592 = vrot.lane.b32.xlu1 %v1465_v35, %s5497_s18  ;;  %v1983_v34 = vsel %vm1384_vm1, %v8301_v7, %v8300_v6  ;;  %v8310_v7 = vld [vmem:[#allocation117_spill] sm:$0xff] }
 0x2ec   : > { %1590 = vrot.lane.b32.xlu0 %v1458_v31, %s5497_s18  ;;  %v8296_v31 = vld [vmem:[#allocation15_spill] sm:$0xff] }
 0x2ed   : > { %v6961_v40 = vpop.permute.xlu1 %2009  ;;  %v6963_v15 = vpop.permute.xlu0 %2022  ;;  %v1976_v38 = vsel %vm1384_vm1, %v8296_v31, %v6489_v25  ;;  %v2098_v25 = vsel %vm1384_vm1, %v8297_v44, %v6639_v13 }
 0x2ee   : > { %v1977_v27 = vsel %vm1386_vm2, %v1976_v38, %v6480_v3  ;;  %v2099_v17 = vsel %vm1386_vm2, %v2098_v25, %v6631_v26  ;;  %v8304_v38 = vld [vmem:[#allocation94_spill] sm:$0xff] }
 0x2ef   : > { %1598 = vrot.lane.b32.xlu1 %v1526_v37, %s5498_s10  ;;  %v1978_v9 = vsel %vm1388_vm3, %v1977_v27, %v6487_v11  ;;  %v2100_v31 = vsel %vm1388_vm3, %v2099_v17, %v6637_v63  ;;  %v8305_v27 = vld [vmem:[#allocation104_spill] sm:$0xff] }
 0x2f0   : > { %1596 = vrot.lane.b32.xlu0 %v1519_v54, %s5498_s10  ;;  %v1979_v13 = vsel %vm1390_vm4, %v1978_v9, %v8298_v45  ;;  %v8306_v45 = vld [vmem:[#allocation24_spill] sm:$0xff] }
 0x2f1   : > { %v6975_v32 = vpop.permute.xlu1 %2256  ;;  %v6977_v58 = vpop.permute.xlu0 %2025  ;;  %v1980_v11 = vsel %vm1392_vm5, %v1979_v13, %v8299_v55  ;;  %v2037_v13 = vsel %vm1384_vm1, %v8306_v45, %v6843_v2  ;;  %v8314_v45 = vld [vmem:[#allocation19_spill] sm:$0xff] }
 0x2f3   : > { %1604 = vrot.lane.b32.xlu1 %v1587_v28, %s5499_s13  ;;  %v1984_v28 = vsel %vm1386_vm2, %v1983_v34, %v8303_v12 }
 0x2f4   : > { %1602 = vrot.lane.b32.xlu0 %v1580_v21, %s5499_s13 }
 0x2f5   : > { %v6985_v33 = vpop.permute.xlu1 %2259  ;;  %v6987_v42 = vpop.permute.xlu0 %2028 }
 0x2f7   : > { %1891 = vrot.lane.b32.xlu1 %v8294_v14, %s8149_s5 }
 0x2f8   : > { %1869 = vrot.lane.b32.xlu0 %v8295_v57, %s8122_s30 }
 0x2f9   : > { %v6993_v62 = vpop.permute.xlu1 %2262  ;;  %v6995_v8 = vpop.permute.xlu0 %2031 }
 0x2fb   : > { %1872 = vrot.lane.b32.xlu1 %v8295_v57, %s8162_s26 }
 0x2fc   : > { %1894 = vrot.lane.b32.xlu0 %v8294_v14, %s8148_s0 }
 0x2fd   : > { %v7001_v52 = vpop.permute.xlu1 %2265  ;;  %v7003_v56 = vpop.permute.xlu0 %2034 }
 0x2ff   : > { %1875 = vrot.lane.b32.xlu1 %v8295_v57, %s8164_s15 }
 0x300   : > { %1897 = vrot.lane.b32.xlu0 %v8294_v14, %s8151_s17 }
 0x301   : > { %v7009_v35 = vpop.permute.xlu1 %2268  ;;  %v7011_v18 = vpop.permute.xlu0 %2278 }
 0x303   : > { %1878 = vrot.lane.b32.xlu1 %v8295_v57, %s8123_s24 }
 0x304   : > { %1900 = vrot.lane.b32.xlu0 %v8294_v14, %s8139_s29 }
 0x305   : > { %v2075_v16 = vpop.permute.xlu1 %2074  ;;  %v7020_v36 = vpop.permute.xlu0 %2281 }
 0x306   : > { %v2105_v3 = vsel %vm1384_vm1, %v2075_v16, %v6669_v10  ;;  %v8302_v10 = vld [vmem:[#allocation92_spill] sm:$0xff] }
 0x307   : > { %1881 = vrot.lane.b32.xlu1 %v8295_v57, %s8124_s28  ;;  %v2106_v21 = vsel %vm1386_vm2, %v2105_v3, %v6677_v48  ;;  %v1981_v26 = vsel %vm1394_vm6, %v1980_v11, %v8302_v10  ;;  %v1985_v48 = vsel %vm1388_vm3, %v1984_v28, %v8305_v27  ;;  %v8307_v11 = vld [vmem:[#allocation113_spill] sm:$0xff]  ;;  %v8312_v28 = vld [vmem:[#allocation110_spill] sm:$0xff] }
 0x308   : > { %1903 = vrot.lane.b32.xlu0 %v8294_v14, %s8141_s11  ;;  %v1982_v16 = vsel %vm1396_vm7, %v1981_v26, %v8304_v38  ;;  %v1986_v3 = vsel %vm1390_vm4, %v1985_v48, %v6588_v22  ;;  %v2107_v63 = vsel %vm1388_vm3, %v2106_v21, %v6691_v29  ;;  %v8308_v22 = vld [vmem:[#allocation108_spill] sm:$0xff]  ;;  %v8309_v29 = vld [vmem:[#allocation115_spill] sm:$0xff]  ;;  %v8311_v21 = vld [vmem:[#allocation114_spill] sm:$0xff] }
 0x309   : > { %v7028_v1 = vpop.permute.xlu1 %2339  ;;  %v7030_v43 = vpop.permute.xlu0 %2284  ;;  %v1987_v55 = vsel %vm1392_vm5, %v1986_v3, %v6601_v23  ;;  %v2108_v10 = vsel %vm1390_vm4, %v2107_v63, %v6724_v60  ;;  %v8313_v38 = vld [vmem:[#allocation118_spill] sm:$0xff] }
 0x30a   : > { %v1988_v2 = vsel %vm1394_vm6, %v1987_v55, %v8308_v22  ;;  %v2109_v48 = vsel %vm1392_vm5, %v2108_v10, %v6749_v0  ;;  %v8316_v55 = vld [vmem:[#allocation96_spill] sm:$0xff] }
 0x30b   : > { %1884 = vrot.lane.b32.xlu1 %v8295_v57, %s8125_s22  ;;  %v2110_v0 = vsel %vm1394_vm6, %v2109_v48, %v6777_v49  ;;  %v8319_v22 = vld [vmem:[#allocation112_spill] sm:$0xff] }
 0x30c   : > { %1906 = vrot.lane.b32.xlu0 %v8294_v14, %s8143_s19 }
 0x30d   : > { %v2017_v54 = vpop.permute.xlu1 %2016  ;;  %v7045_v37 = vpop.permute.xlu0 %2287 }
 0x30e   : > { %v2044_v44 = vsel %vm1384_vm1, %v6945_v46, %v2017_v54  ;;  %v2101_v46 = vsel %vm1390_vm4, %v2100_v31, %v8307_v11  ;;  %v1989_v31 = vsel %vm1396_vm7, %v1988_v2, %v8312_v28  ;;  %v8317_v11 = vld [vmem:[#allocation18_spill] sm:$0xff] }
 0x30f   : > { %1887 = vrot.lane.b32.xlu1 %v8295_v57, %s8126_s12  ;;  %v2102_v6 = vsel %vm1392_vm5, %v2101_v46, %v8309_v29  ;;  %v2238_v46 = vsel %vm1384_vm1, %v8317_v11, %v8316_v55  ;;  %v8326_v55 = vld [vmem:[#allocation95_spill] sm:$0xff] }
 0x310   : > { %1909 = vrot.lane.b32.xlu0 %v8294_v14, %s8144_s21  ;;  %v2103_v34 = vsel %vm1394_vm6, %v2102_v6, %v8310_v7 }
 0x311   : > { %v2020_v25 = vpop.permute.xlu1 %2019  ;;  %v7072_v9 = vpop.permute.xlu0 %2290 }
 0x312   : > { %v2045_v17 = vsel %vm1386_vm2, %v2044_v44, %v2020_v25 }
 0x313   : > { %v2046_v54 = vsel %vm1388_vm3, %v2045_v17, %v6963_v15  ;;  %2114 = vrot.lane.b32.xlu1 %v1982_v16, %s5497_s18  ;;  %v2038_v15 = vsel %vm1386_vm2, %v2037_v13, %v8311_v21  ;;  %v8315_v13 = vld [vmem:[#allocation20_spill] sm:$0xff] }
 0x314   : > { %1912 = vrot.lane.b32.xlu0 %v8294_v14, %s8146_s3  ;;  %v2047_v23 = vsel %vm1390_vm4, %v2046_v54, %v6977_v58  ;;  %v2104_v58 = vsel %vm1396_vm7, %v2103_v34, %v8313_v38  ;;  %v2039_v16 = vsel %vm1388_vm3, %v2038_v15, %v6862_v20  ;;  %v8318_v54 = vld [vmem:[#allocation101_spill] sm:$0xff]  ;;  %v8321_v34 = vld [vmem:[#allocation103_spill] sm:$0xff] }
 0x315   : > { %v2276_v26 = vpop.permute.xlu1 %2275  ;;  %v7103_v14 = vpop.permute.xlu0 %2293  ;;  %v2048_v12 = vsel %vm1392_vm5, %v2047_v23, %v6987_v42  ;;  %v2040_v27 = vsel %vm1390_vm4, %v2039_v16, %v6893_v47  ;;  %v2245_v2 = vsel %vm1384_vm1, %v8319_v22, %v8318_v54  ;;  %v8320_v23 = vld [vmem:[#allocation89_spill] sm:$0xff] }
 0x316   : > { %v2049_v60 = vsel %vm1394_vm6, %v2048_v12, %v6995_v8  ;;  %v2041_v42 = vsel %vm1392_vm5, %v2040_v27, %v6917_v61  ;;  %v2111_v8 = vsel %vm1396_vm7, %v2110_v0, %v6814_v50  ;;  %v2239_v7 = vsel %vm1386_vm2, %v2238_v46, %v8320_v23  ;;  %v8322_v12 = vld [vmem:[#allocation91_spill] sm:$0xff] }
 0x317   : > { %2126 = vrot.lane.b32.xlu1 %v2104_v58, %s5499_s13  ;;  %v2042_v44 = vsel %vm1394_vm6, %v2041_v42, %v6943_v59  ;;  %v2050_v3 = vsel %vm1396_vm7, %v2049_v60, %v7003_v56  ;;  %v2246_v21 = vsel %vm1386_vm2, %v2245_v2, %v8321_v34  ;;  %v2240_v28 = vsel %vm1388_vm3, %v2239_v7, %v8322_v12  ;;  %v8324_v42 = vld [vmem:[#allocation93_spill] sm:$0xff]  ;;  %v8327_v46 = vld [vmem:[#allocation107_spill] sm:$0xff] }
 0x318   : > { %2116 = vrot.lane.b32.xlu0 %v1989_v31, %s5497_s18  ;;  %v2043_v47 = vsel %vm1396_vm7, %v2042_v44, %v6961_v40  ;;  %v8323_v31 = vld [vmem:[#allocation105_spill] sm:$0xff]  ;;  %v2306_v58 = vsel %vm1384_vm1, %v2276_v26, %v7011_v18  ;;  %v2241_v48 = vsel %vm1390_vm4, %v2240_v28, %v8324_v42  ;;  %v8325_v44 = vld [vmem:[#allocation106_spill] sm:$0xff]  ;;  %v2367_v7 = vsel %vm1384_vm1, %v6845_v53, %v7028_v1  ;;  %v8330_v53 = vld [vmem:[#allocation116_spill] sm:$0xff] }
 0x319   : > { %v7125_v20 = vpop.permute.xlu1 %1619  ;;  %v7127_v25 = vpop.permute.xlu0 %2351  ;;  %v2247_v38 = vsel %vm1388_vm3, %v2246_v21, %v8323_v31  ;;  %v2307_v18 = vsel %vm1386_vm2, %v2306_v58, %v7020_v36  ;;  %v2242_v11 = vsel %vm1392_vm5, %v2241_v48, %v8326_v55  ;;  %v8328_v21 = vld [vmem:[#allocation97_spill] sm:$0xff]  ;;  %v8332_v48 = vld [vmem:[#allocation42_spill] sm:$0xff] }
 0x31a   : > { %v2308_v36 = vsel %vm1388_vm3, %v2307_v18, %v7030_v43  ;;  %v2243_v12 = vsel %vm1394_vm6, %v2242_v11, %v8328_v21  ;;  %v8329_v28 = vld [vmem:[#allocation109_spill] sm:$0xff]  ;;  %v8334_v11 = vld [vmem:[#allocation98_spill] sm:$0xff]  ;;  %v8335_v21 = vld [vmem:[#allocation111_spill] sm:$0xff] }
 0x31b   : > { %2120 = vrot.lane.b32.xlu1 %v2043_v47, %s5498_s10  ;;  %v7198_v16 = vpop.f32.mrb[16].mxu1  ;;  %v2248_v47 = vsel %vm1390_vm4, %v2247_v38, %v8325_v44  ;;  %v2309_v43 = vsel %vm1390_vm4, %v2308_v36, %v7045_v37  ;;  %v8331_v1 = vld [vmem:[#allocation29_spill] sm:$0xff]  ;;  %v2244_v36 = vsel %vm1396_vm7, %v2243_v12, %v8334_v11  ;;  %v8336_v12 = vld [vmem:[#allocation119_spill] sm:$0xff] }
 0x31c   : > { %2122 = vrot.lane.b32.xlu0 %v2050_v3, %s5498_s10  ;;  %v7204_v27 = vpop.f32.mrb[17].mxu1  ;;  %v2249_v54 = vsel %vm1392_vm5, %v2248_v47, %v8327_v46  ;;  %v2299_v58 = vsel %vm1384_vm1, %v8331_v1, %v8330_v53  ;;  %v8333_v44 = vld [vmem:[#allocation45_spill] sm:$0xff]  ;;  %v2368_v47 = vsel %vm1386_vm2, %v2367_v7, %v6864_v5  ;;  %v8337_v53 = vld [vmem:[#allocation28_spill] sm:$0xff] }
 0x31d   : > { %v7137_v61 = vpop.permute.xlu1 %2271  ;;  %v7139_v59 = vpop.permute.xlu0 %1644  ;;  %v2250_v31 = vsel %vm1394_vm6, %v2249_v54, %v8329_v28  ;;  %v1660_v37 = vsel %vm1384_vm1, %v8333_v44, %v8332_v48  ;;  %v2310_v54 = vsel %vm1392_vm5, %v2309_v43, %v7072_v9  ;;  %v2369_v43 = vsel %vm1388_vm3, %v2368_v47, %v6895_v39  ;;  %v8338_v1 = vld [vmem:[#allocation44_spill] sm:$0xff] }
 0x31e   : > { %v7206_v60 = vpop.f32.mrb[18].mxu1  ;;  %v2251_v28 = vsel %vm1396_vm7, %v2250_v31, %v8335_v21  ;;  %v2311_v44 = vsel %vm1394_vm6, %v2310_v54, %v7103_v14  ;;  %v2370_v14 = vsel %vm1390_vm4, %v2369_v43, %v6919_v30  ;;  %v8342_v21 = vld [vmem:[#allocation32_spill] sm:$0xff]  ;;  %v8344_v43 = vld [vmem:[#allocation34_spill] sm:$0xff] }
 0x31f   : > { %2131 = vrot.lane.b32.xlu1 %v8314_v45, %s8122_s30  ;;  %v7218_v0 = vpop.f32.mrb[19].mxu1 }
 0x320   : > { %2128 = vrot.lane.b32.xlu0 %v2111_v8, %s5499_s13 }
 0x321   : > { %v7146_v40 = vpop.permute.xlu1 %2329  ;;  %v7148_v56 = vpop.permute.xlu0 %2296 }
 0x323   : > { %2156 = vrot.lane.b32.xlu1 %v8315_v13, %s8148_s0  ;;  %s5500_s0 = smov 64  }
 0x324   : > { %2153 = vrot.lane.b32.xlu0 %v8315_v13, %s8149_s5 }
 0x325   : > { %v7154_v49 = vpop.permute.xlu1 %1622  ;;  %v7156_v63 = vpop.permute.xlu0 %2354 }
 0x327   : > { %2159 = vrot.lane.b32.xlu1 %v8315_v13, %s8151_s17 }
 0x328   : > { %2134 = vrot.lane.b32.xlu0 %v8314_v45, %s8162_s26  ;;  %s7706_s26 = scalar_lea.vmem %s8037_s2, %s4603_s25 }
 0x329   : > { %v7162_v50 = vpop.permute.xlu1 %2332  ;;  %v7164_v17 = vpop.permute.xlu0 %1647 }
 0x32b   : > { %2162 = vrot.lane.b32.xlu1 %v8315_v13, %s8139_s29  ;;  %v7224_v8 = vpop.f32.mrb[20].mxu1 }
 0x32c   : > { %2137 = vrot.lane.b32.xlu0 %v8314_v45, %s8164_s15  ;;  %v7232_v22 = vpop.f32.mrb[21].mxu1  ;;  %s4606_s15 = sshll.u32 %s5615_s27, 6  ;;  %s446_s27 = sand.u32 1, %s5464_s14  }
 0x32d   : > { %v7176_v29 = vpop.permute.xlu1 %1625  ;;  %v7178_v6 = vpop.permute.xlu0 %2357  ;;  %s482_s25 = scalar_lea.vmem %s8041_s6, %s4606_s15 }
 0x32e   : > { %v7241_v34 = vpop.f32.mrb[22].mxu1 }
 0x32f   : > { %2165 = vrot.lane.b32.xlu1 %v8315_v13, %s8141_s11  ;;  %v7253_v38 = vpop.f32.mrb[23].mxu1 }
 0x330   : > { %2140 = vrot.lane.b32.xlu0 %v8314_v45, %s8123_s24  ;;  %s4440_s24 = sshll.u32 %s446_s27, 6 }
 0x331   : > { %v7188_v15 = vpop.permute.xlu1 %1338  ;;  %v7190_v10 = vpop.permute.xlu0 %1650 }
 0x333   : > { %2168 = vrot.lane.b32.xlu1 %v8315_v13, %s8143_s19 }
 0x334   : > { %2143 = vrot.lane.b32.xlu0 %v8314_v45, %s8124_s28  ;;  %s7962_s28 = scalar_lea.vmem [#allocation2], %s4440_s24 }
 0x335   : > { %v7214_v26 = vpop.permute.xlu1 %1363  ;;  %v7216_v3 = vpop.permute.xlu0 %1360 }
 0x337   : > { %2171 = vrot.lane.b32.xlu1 %v8315_v13, %s8144_s21 }
 0x338   : > { %2146 = vrot.lane.b32.xlu0 %v8314_v45, %s8125_s22  ;;  %s8346_s22 = sld [smem:[#allocation123_spill]] }
 0x339   : > { %v7234_v2 = vpop.permute.xlu1 %1366  ;;  %v7236_v23 = vpop.permute.xlu0 %1341 }
 0x33b   : > { %2174 = vrot.lane.b32.xlu1 %v8315_v13, %s8146_s3  ;;  %v7258_v42 = vpop.f32.mrb[24].mxu1  ;;  %v2300_v13 = vsel %vm1386_vm2, %v2299_v58, %v6975_v32  ;;  %s4300_s3 = sshll.u32 %s7962_s28, 4  ;;  %s7983_s3 = int_to_ptr.vmem [resolvable:$true] %s4300_s3 }
 0x33c   : > { %2149 = vrot.lane.b32.xlu0 %v8314_v45, %s8126_s12  ;;  %v2301_v46 = vsel %vm1388_vm3, %v2300_v13, %v6985_v33  ;;  %v7279_v32 = vpop.f32.mrb[25].mxu1  ;;  %v2360_v33 = vsel %vm1384_vm1, %v8337_v53, %v8336_v12  ;;  %v8343_v53 = vld [vmem:[#allocation33_spill] sm:$0xff]  ;;  %s4607_s12 = sshll.u32 %s5472_s16, 10  ;;  %s5402_s16 = scalar_lea.vmem %s7983_s3, 1024 }
 0x33d   : > { %v7267_v18 = vpop.permute.xlu1 %1369  ;;  %v2302_v5 = vsel %vm1390_vm4, %v2301_v46, %v6993_v62  ;;  %v7285_v7 = vpop.f32.mrb[26].mxu1  ;;  %v1661_v62 = vsel %vm1386_vm2, %v1660_v37, %v8338_v1  ;;  %v2361_v58 = vsel %vm1386_vm2, %v2360_v33, %v6722_v4  ;;  %v2312_v4 = vsel %vm1396_vm7, %v2311_v44, %v7148_v56  ;;  %v8341_v46 = vld [vmem:[#allocation46_spill] sm:$0xff]  ;;  %p5403_p12 = scmp.ne.s32.totalorder %s7983_s3, %s5402_s16 }
 0x33e   : > { %v7269_v55 = vpop.permute.xlu0 %1344  ;;  %v2303_v9 = vsel %vm1392_vm5, %v2302_v5, %v7001_v52  ;;  %v7294_v31 = vpop.f32.mrb[27].mxu1  ;;  %v8339_v52 = vld [vmem:[#allocation31_spill] sm:$0xff]  ;;  %v2362_v47 = vsel %vm1388_vm3, %v2361_v58, %v6747_v41  ;;  %v1662_v54 = vsel %vm1388_vm3, %v1661_v62, %v8341_v46 }
 0x33f   : > { %2378 = vrot.lane.b32.xlu1 %v2251_v28, %s5497_s18  ;;  %v2304_v48 = vsel %vm1394_vm6, %v2303_v9, %v7009_v35  ;;  %v2363_v35 = vsel %vm1390_vm4, %v2362_v47, %v6775_v51  ;;  %p5404_p13 = pnand %p5403_p12, %p5598_p4 }
 0x340   : > { %2376 = vrot.lane.b32.xlu0 %v2244_v36, %s5497_s18  ;;  %v8340_v36 = vld [vmem:[#allocation12_spill] sm:$0xff]  ;;  %v2305_v37 = vsel %vm1396_vm7, %v2304_v48, %v7137_v61  ;;  %v2364_v41 = vsel %vm1392_vm5, %v2363_v35, %v6812_v24  ;;  %v2371_v61 = vsel %vm1392_vm5, %v2370_v14, %v7127_v25  ;;  %s7980_s18 = scalar_lea.hbm %s8346_s22, %s4607_s12 }
 0x341   : > { %v1853_v13 = vpop.permute.xlu1 %1852  ;;  %v1653_v39 = vsel %vm1384_vm1, %v8340_v36, %v8339_v52  ;;  %v2365_v30 = vsel %vm1394_vm6, %v2364_v41, %v7146_v40  ;;  %v2372_v28 = vsel %vm1394_vm6, %v2371_v61, %v7156_v63  ;;  %v8345_v40 = vld [vmem:[#allocation47_spill] sm:$0xff]  ;;  %p5405_p0 = pneg %p5404_p13 }
 0x342   : > { %v1348_v11 = vpop.permute.xlu0 %1347  ;;  %v1654_v51 = vsel %vm1386_vm2, %v1653_v39, %v8342_v21  ;;  %v2366_v24 = vsel %vm1396_vm7, %v2365_v30, %v7162_v50  ;;  %v2373_v25 = vsel %vm1396_vm7, %v2372_v28, %v7178_v6  ;;  %v1663_v62 = vsel %vm1390_vm4, %v1662_v54, %v8345_v40 }
 0x343   : > { %2384 = vrot.lane.b32.xlu1 %v2312_v4, %s5498_s10  ;;  %v7325_v56 = vpop.f32.mrb[28].mxu1  ;;  %v1655_v33 = vsel %vm1388_vm3, %v1654_v51, %v8343_v53  ;;  %v1664_v6 = vsel %vm1392_vm5, %v1663_v62, %v7139_v59 }
 0x344   : > { %2382 = vrot.lane.b32.xlu0 %v2305_v37, %s5498_s10  ;;  %v7339_v9 = vpop.f32.mrb[29].mxu1  ;;  %v1656_v1 = vsel %vm1390_vm4, %v1655_v33, %v8344_v43  ;;  %v1665_v44 = vsel %vm1394_vm6, %v1664_v6, %v7164_v17  ;;  %s7988_s10 = scalar_lea.sflag [#allocation3], %s446_s27 }
 0x345   : > { %v1373_v5 = vpop.permute.xlu1 %1372  ;;  %v7347_v63 = vpop.f32.mrb[30].mxu1  ;;  %v1657_v50 = vsel %vm1392_vm5, %v1656_v1, %v7125_v20  ;;  %v1666_v47 = vsel %vm1396_vm7, %v1665_v44, %v7190_v10  ;;  %v1398_v10 = vsel %vm1384_vm1, %v7216_v3, %v7214_v26 }
 0x346   : > { %v1855_v12 = vpop.permute.xlu0 %1854  ;;  %v7353_v58 = vpop.f32.mrb[31].mxu1  ;;  %v1658_v48 = vsel %vm1394_vm6, %v1657_v50, %v7154_v49  ;;  %v1399_v37 = vsel %vm1386_vm2, %v1398_v10, %v7234_v2 }
 0x347   : > { %2390 = vrot.lane.b32.xlu1 %v2373_v25, %s5499_s13  ;;  %v1659_v39 = vsel %vm1396_vm7, %v1658_v48, %v7176_v29  ;;  %v1385_v29 = vsel %vm1384_vm1, %v5873_v19, %v7188_v15  ;;  %v1400_v14 = vsel %vm1388_vm3, %v1399_v37, %v7267_v18 }
 0x348   : > { %2388 = vrot.lane.b32.xlu0 %v2366_v24, %s5499_s13  ;;  %v1401_v15 = vsel %vm1390_vm4, %v1400_v14, %v1373_v5  ;;  %s5501_s13 = smov [#allocation2]  }
 0x349   : > { %v1859_v52 = vpop.permute.xlu1 %1858 }
 0x34a   : > { %v1865_v36 = vpop.permute.xlu0 %1864 }
 0x34b   : > { %2551 = vrot.lane.b32.xlu1 %v1666_v47, %s5500_s0 }
 0x34c   : > { %2549 = vrot.lane.b32.xlu0 %v1659_v39, %s5500_s0 }
 0x34d   : > { %v1867_v20 = vpop.permute.xlu1 %1866 }
 0x34e   : > { %v1861_v59 = vpop.permute.xlu0 %1860 }
 0x34f   : > { %2555 = vrot.lane.b32.xlu1 %v1855_v12, %s5500_s0 }
 0x350   : > { %2553 = vrot.lane.b32.xlu0 %v1853_v13, %s5500_s0  ;;  %v1387_v13 = vsel %vm1386_vm2, %v1385_v29, %v7236_v23 }
 0x351   : > { %v1376_v49 = vpop.permute.xlu1 %1375  ;;  %v1389_v46 = vsel %vm1388_vm3, %v1387_v13, %v7269_v55 }
 0x352   : > { %v1351_v17 = vpop.permute.xlu0 %1350  ;;  %v1391_v19 = vsel %vm1390_vm4, %v1389_v46, %v1348_v11  ;;  %v1402_v26 = vsel %vm1392_vm5, %v1401_v15, %v1376_v49 }
 0x353   : > { %2559 = vrot.lane.b32.xlu1 %v1861_v59, %s5500_s0  ;;  %v1393_v3 = vsel %vm1392_vm5, %v1391_v19, %v1351_v17 }
 0x354   : > { %2557 = vrot.lane.b32.xlu0 %v1859_v52, %s5500_s0 }
 0x355   : > { %v1379_v4 = vpop.permute.xlu1 %1378 }
 0x356   : > { %v1354_v35 = vpop.permute.xlu0 %1353  ;;  %v1403_v2 = vsel %vm1394_vm6, %v1402_v26, %v1379_v4 }
 0x357   : > { %2563 = vrot.lane.b32.xlu1 %v1867_v20, %s5500_s0  ;;  %v1395_v23 = vsel %vm1394_vm6, %v1393_v3, %v1354_v35 }
 0x358   : > { %2561 = vrot.lane.b32.xlu0 %v1865_v36, %s5500_s0 }
 0x359   : > { %v1382_v18 = vpop.permute.xlu1 %1381 }
 0x35a   : > { %v1357_v54 = vpop.permute.xlu0 %1356  ;;  %v1404_v55 = vsel %vm1396_vm7, %v1403_v2, %v1382_v18 }
 0x35b   : > { %v1397_v11 = vsel %vm1396_vm7, %v1395_v23, %v1357_v54  ;;  %2416 = vrot.lane.b32.xlu1 %v1404_v55, %s5500_s0 }
 0x35c   : > { %2414 = vrot.lane.b32.xlu0 %v1397_v11, %s5500_s0 }
 0x35d   : > { %v1593_v41 = vpop.permute.xlu1 %1592 }
 0x35e   : > { %v1591_v61 = vpop.permute.xlu0 %1590 }
 0x35f   : > { %2420 = vrot.lane.b32.xlu1 %v1593_v41, %s5500_s0 }
 0x360   : > { %2418 = vrot.lane.b32.xlu0 %v1591_v61, %s5500_s0 }
 0x361   : > { %v1599_v21 = vpop.permute.xlu1 %1598 }
 0x362   : > { %v1597_v51 = vpop.permute.xlu0 %1596 }
 0x363   : > { %2424 = vrot.lane.b32.xlu1 %v1599_v21, %s5500_s0 }
 0x364   : > { %2422 = vrot.lane.b32.xlu0 %v1597_v51, %s5500_s0 }
 0x365   : > { %v1605_v30 = vpop.permute.xlu1 %1604 }
 0x366   : > { %v1603_v28 = vpop.permute.xlu0 %1602 }
 0x367   : > { %2428 = vrot.lane.b32.xlu1 %v1605_v30, %s5500_s0 }
 0x368   : > { %2426 = vrot.lane.b32.xlu0 %v1603_v28, %s5500_s0 }
 0x369   : > { %v1892_v5 = vpop.permute.xlu1 %1891 }
 0x36a   : > { %v1870_v12 = vpop.permute.xlu0 %1869 }
 0x36b   : > { %v1915_v52 = vsel %vm1384_vm1, %v8295_v57, %v1870_v12 }
 0x36d   : > { %v1873_v53 = vpop.permute.xlu1 %1872 }
 0x36e   : > { %v1895_v33 = vpop.permute.xlu0 %1894  ;;  %v1916_v36 = vsel %vm1386_vm2, %v1915_v52, %v1873_v53 }
 0x36f   : > { %v1922_v49 = vsel %vm1384_vm1, %v1892_v5, %v1895_v33 }
 0x371   : > { %v1876_v24 = vpop.permute.xlu1 %1875 }
 0x372   : > { %v1898_v25 = vpop.permute.xlu0 %1897  ;;  %v1917_v20 = vsel %vm1388_vm3, %v1916_v36, %v1876_v24 }
 0x373   : > { %v1923_v29 = vsel %vm1386_vm2, %v1922_v49, %v1898_v25 }
 0x374   : > { %v7401_v43 = vpop.f32.mrb[16].mxu0 }
 0x375   : > { %v1879_v1 = vpop.permute.xlu1 %1878  ;;  %v7403_v62 = vpop.f32.mrb[17].mxu0 }
 0x376   : > { %v1901_v40 = vpop.permute.xlu0 %1900  ;;  %v7405_v50 = vpop.f32.mrb[18].mxu0  ;;  %v1918_v59 = vsel %vm1390_vm4, %v1917_v20, %v1879_v1 }
 0x377   : > { %v7407_v44 = vpop.f32.mrb[19].mxu0  ;;  %v1924_v57 = vsel %vm1388_vm3, %v1923_v29, %v1901_v40 }
 0x379   : > { %v1882_v6 = vpop.permute.xlu1 %1881 }
 0x37a   : > { %v1904_v48 = vpop.permute.xlu0 %1903  ;;  %v1919_v17 = vsel %vm1392_vm5, %v1918_v59, %v1882_v6 }
 0x37b   : > { %v1925_v35 = vsel %vm1390_vm4, %v1924_v57, %v1904_v48 }
 0x37d   : > { %v1885_v39 = vpop.permute.xlu1 %1884 }
 0x37e   : > { %v1907_v47 = vpop.permute.xlu0 %1906  ;;  %v1920_v10 = vsel %vm1394_vm6, %v1919_v17, %v1885_v39 }
 0x37f   : > { %v1926_v14 = vsel %vm1392_vm5, %v1925_v35, %v1907_v47 }
 0x381   : > { %v1888_v37 = vpop.permute.xlu1 %1887 }
 0x382   : > { %v1910_v13 = vpop.permute.xlu0 %1909  ;;  %v1921_v4 = vsel %vm1396_vm7, %v1920_v10, %v1888_v37 }
 0x383   : > { %2684 = vrot.lane.b32.xlu0 %v1921_v4, %s5500_s0  ;;  %v1927_v46 = vsel %vm1394_vm6, %v1926_v14, %v1910_v13 }
 0x385   : > { %v2115_v19 = vpop.permute.xlu1 %2114 }
 0x386   : > { %v1913_v15 = vpop.permute.xlu0 %1912 }
 0x387   : > { %v1928_v26 = vsel %vm1396_vm7, %v1927_v46, %v1913_v15 }
 0x388   : > { %2686 = vrot.lane.b32.xlu1 %v1928_v26, %s5500_s0 }
 0x389   : > { %v2127_v3 = vpop.permute.xlu1 %2126 }
 0x38a   : > { %v2117_v2 = vpop.permute.xlu0 %2116 }
 0x38d   : > { %v2121_v23 = vpop.permute.xlu1 %2120 }
 0x38e   : > { %v2123_v18 = vpop.permute.xlu0 %2122 }
 0x391   : > { %v2132_v54 = vpop.permute.xlu1 %2131 }
 0x392   : > { %v2129_v55 = vpop.permute.xlu0 %2128  ;;  %v2177_v40 = vsel %vm1384_vm1, %v8314_v45, %v2132_v54 }
 0x395   : > { %v2157_v11 = vpop.permute.xlu1 %2156 }
 0x396   : > { %v2154_v41 = vpop.permute.xlu0 %2153 }
 0x397   : > { %v2184_v6 = vsel %vm1384_vm1, %v2154_v41, %v2157_v11 }
 0x399   : > { %v2160_v61 = vpop.permute.xlu1 %2159 }
 0x39a   : > { %v2135_v21 = vpop.permute.xlu0 %2134  ;;  %v2185_v48 = vsel %vm1386_vm2, %v2184_v6, %v2160_v61 }
 0x39b   : > { %v2178_v52 = vsel %vm1386_vm2, %v2177_v40, %v2135_v21 }
 0x39d   : > { %v2163_v51 = vpop.permute.xlu1 %2162 }
 0x39e   : > { %v2138_v30 = vpop.permute.xlu0 %2137  ;;  %v2186_v47 = vsel %vm1388_vm3, %v2185_v48, %v2163_v51 }
 0x39f   : > { %v7426_v28 = vpop.f32.mrb[32].mxu1  ;;  %v2179_v20 = vsel %vm1388_vm3, %v2178_v52, %v2138_v30 }
 0x3a0   : > { %v7428_v5 = vpop.f32.mrb[33].mxu1 }
 0x3a1   : > { %v2166_v12 = vpop.permute.xlu1 %2165  ;;  %v7430_v33 = vpop.f32.mrb[34].mxu1 }
 0x3a2   : > { %v2141_v53 = vpop.permute.xlu0 %2140  ;;  %v7432_v24 = vpop.f32.mrb[35].mxu1  ;;  %v2187_v59 = vsel %vm1390_vm4, %v2186_v47, %v2166_v12 }
 0x3a3   : > { %v2180_v49 = vsel %vm1390_vm4, %v2179_v20, %v2141_v53 }
 0x3a5   : > { %v2169_v25 = vpop.permute.xlu1 %2168  ;;  %v7445_v29 = vpop.f32.mrb[20].mxu0 }
 0x3a6   : > { %v2144_v1 = vpop.permute.xlu0 %2143  ;;  %v2188_v17 = vsel %vm1392_vm5, %v2187_v59, %v2169_v25  ;;  %v7451_v14 = vpop.f32.mrb[21].mxu0 }
 0x3a7   : > { %v2181_v45 = vsel %vm1392_vm5, %v2180_v49, %v2144_v1  ;;  %v7455_v46 = vpop.f32.mrb[22].mxu0 }
 0x3a8   : > { %v7461_v41 = vpop.f32.mrb[23].mxu0 }
 0x3a9   : > { %v2172_v36 = vpop.permute.xlu1 %2171 }
 0x3aa   : > { %v2147_v39 = vpop.permute.xlu0 %2146  ;;  %v2189_v10 = vsel %vm1394_vm6, %v2188_v17, %v2172_v36 }
 0x3ab   : > { %v2182_v37 = vsel %vm1394_vm6, %v2181_v45, %v2147_v39 }
 0x3ad   : > { %v2175_v13 = vpop.permute.xlu1 %2174 }
 0x3ae   : > { %v2150_v57 = vpop.permute.xlu0 %2149  ;;  %v2190_v4 = vsel %vm1396_vm7, %v2189_v10, %v2175_v13 }
 0x3af   : > { %v2183_v35 = vsel %vm1396_vm7, %v2182_v37, %v2150_v57  ;;  %2821 = vrot.lane.b32.xlu1 %v2190_v4, %s5500_s0  ;;  %v7457_v15 = vpop.f32.mrb[36].mxu1 }
 0x3b0   : > { %2819 = vrot.lane.b32.xlu0 %v2183_v35, %s5500_s0  ;;  %v7459_v11 = vpop.f32.mrb[37].mxu1 }
 0x3b1   : > { %v2379_v26 = vpop.permute.xlu1 %2378  ;;  %v7465_v61 = vpop.f32.mrb[38].mxu1 }
 0x3b2   : > { %v2377_v54 = vpop.permute.xlu0 %2376  ;;  %v7469_v30 = vpop.f32.mrb[39].mxu1 }
 0x3b3   : > { %2690 = vrot.lane.b32.xlu1 %v2117_v2, %s5500_s0 }
 0x3b4   : > { %2688 = vrot.lane.b32.xlu0 %v2115_v19, %s5500_s0 }
 0x3b5   : > { %v2385_v21 = vpop.permute.xlu1 %2384 }
 0x3b6   : > { %v2383_v51 = vpop.permute.xlu0 %2382 }
 0x3b7   : > { %2825 = vrot.lane.b32.xlu1 %v2379_v26, %s5500_s0 }
 0x3b8   : > { %2823 = vrot.lane.b32.xlu0 %v2377_v54, %s5500_s0 }
 0x3b9   : > { %v2391_v12 = vpop.permute.xlu1 %2390 }
 0x3ba   : > { %v2389_v53 = vpop.permute.xlu0 %2388 }
 0x3bb   : > { %2698 = vrot.lane.b32.xlu1 %v2129_v55, %s5500_s0 }
 0x3bc   : > { %2696 = vrot.lane.b32.xlu0 %v2127_v3, %s5500_s0 }
 0x3bd   : > { %v2552_v2 = vpop.permute.xlu1 %2551 }
 0x3be   : > { %v2550_v19 = vpop.permute.xlu0 %2549 }
 0x3bf   : > { %2833 = vrot.lane.b32.xlu1 %v2391_v12, %s5500_s0  ;;  %v7480_v40 = vadd.f32 %v7279_v32, %v2550_v19 }
 0x3c0   : > { %2831 = vrot.lane.b32.xlu0 %v2389_v53, %s5500_s0 }
 0x3c1   : > { %v2556_v55 = vpop.permute.xlu1 %2555 }
 0x3c2   : > { %v2554_v25 = vpop.permute.xlu0 %2553  ;;  %v7491_v36 = vadd.f32 %v7285_v7, %v2556_v55 }
 0x3c3   : > { %2694 = vrot.lane.b32.xlu1 %v2123_v18, %s5500_s0  ;;  %v7483_v48 = vadd.f32 %v7258_v42, %v2554_v25  ;;  %v7488_v18 = vadd.f32 %v7294_v31, %v2552_v2 }
 0x3c4   : > { %2692 = vrot.lane.b32.xlu0 %v2121_v23, %s5500_s0  ;;  %v2957_v23 = vsel %vm2932_vm8, %v7480_v40, -inf  ;;  %v2966_v7 = vsel %vm2932_vm8, %v7491_v36, -inf }
 0x3c5   : > { %v2560_v3 = vpop.permute.xlu1 %2559  ;;  %v2963_v32 = vsel %vm2932_vm8, %v7483_v48, -inf  ;;  %v2960_v42 = vsel %vm2932_vm8, %v7488_v18, -inf }
 0x3c6   : > { %v2558_v1 = vpop.permute.xlu0 %2557  ;;  %v7501_v31 = vadd.f32 %v7353_v58, %v2560_v3 }
 0x3c7   : > { %2829 = vrot.lane.b32.xlu1 %v2385_v21, %s5500_s0  ;;  %v7496_v47 = vadd.f32 %v7339_v9, %v2558_v1 }
 0x3c8   : > { %2827 = vrot.lane.b32.xlu0 %v2383_v51, %s5500_s0  ;;  %v2972_v45 = vsel %vm2932_vm8, %v7501_v31, -inf  ;;  %s5406_s0 = sshll.u32 %s5501_s13, 4  ;;  %s5407_s0 = int_to_ptr.vmem [resolvable:$false] %s5406_s0 }
 0x3c9   : > { %v2564_v52 = vpop.permute.xlu1 %2563  ;;  %v2969_v9 = vsel %vm2932_vm8, %v7496_v47, -inf  ;;  %s5408_s15 = scalar_lea.vmem %s5407_s0, 2048  ;;  %p5409_p1 = scmp.lt.s32.totalorder %s7983_s3, %s5407_s0 }
 0x3ca   : > { %v2562_v6 = vpop.permute.xlu0 %2561  ;;  %v7511_v17 = vadd.f32 %v7347_v63, %v2564_v52  ;;  %p5410_p2 = scmp.lt.s32.totalorder %s5408_s15, %s5402_s16 }
 0x3cb   : > { %v7506_v59 = vadd.f32 %v7325_v56, %v2562_v6 }
 0x3cc   : > { %v2978_v63 = vsel %vm2932_vm8, %v7511_v17, -inf  ;;  %p5411_p3 = por %p5410_p2, %p5409_p1 }
 0x3cd   : > { %v2417_v20 = vpop.permute.xlu1 %2416  ;;  %v2975_v56 = vsel %vm2932_vm8, %v7506_v59, -inf }
 0x3ce   : > { %v2415_v39 = vpop.permute.xlu0 %2414  ;;  %v7521_v37 = vadd.f32 %v7218_v0, %v2417_v20  ;;  %p5412_p5 = pnand %p5411_p3, %p5405_p0 }
 0x3cf   : > { %v7516_v58 = vadd.f32 %v7204_v27, %v2415_v39 }
 0x3d0   : > { %v2936_v0 = vsel %vm2932_vm8, %v7521_v37, -inf }
 0x3d1   : > { %v2421_v10 = vpop.permute.xlu1 %2420  ;;  %v2933_v27 = vsel %vm2932_vm8, %v7516_v58, -inf }
 0x3d2   : > { %v2419_v49 = vpop.permute.xlu0 %2418  ;;  %v7531_v35 = vadd.f32 %v7206_v60, %v2421_v10 }
 0x3d3   : > { %v7526_v57 = vadd.f32 %v7198_v16, %v2419_v49 }
 0x3d4   : > { %v2942_v51 = vsel %vm2932_vm8, %v7531_v35, -inf }
 0x3d5   : > { %v2425_v4 = vpop.permute.xlu1 %2424  ;;  %v2939_v16 = vsel %vm2932_vm8, %v7526_v57, -inf }
 0x3d6   : > { %v2423_v13 = vpop.permute.xlu0 %2422  ;;  %v7541_v21 = vadd.f32 %v7253_v38, %v2425_v4 }
 0x3d7   : > { %v7536_v26 = vadd.f32 %v7232_v22, %v2423_v13 }
 0x3d8   : > { %v2948_v38 = vsel %vm2932_vm8, %v7541_v21, -inf }
 0x3d9   : > { %v2429_v60 = vpop.permute.xlu1 %2428  ;;  %v2945_v22 = vsel %vm2932_vm8, %v7536_v26, -inf }
 0x3da   : > { %v2427_v54 = vpop.permute.xlu0 %2426  ;;  %v7551_v19 = vadd.f32 %v7241_v34, %v2429_v60 }
 0x3db   : > { %v7546_v12 = vadd.f32 %v7224_v8, %v2427_v54 }
 0x3dc   : > { %v2954_v1 = vsel %vm2932_vm8, %v7551_v19, -inf }
 0x3dd   : > { %v2951_v8 = vsel %vm2932_vm8, %v7546_v12, -inf }
 0x3e7   : > { %2958 = vmax.xlane.f32.xlu0 %v2957_v23 }
 0x3eb   : > { %2964 = vmax.xlane.f32.xlu0 %v2963_v32  ;;  %2961 = vmax.xlane.f32.xlu1 %v2960_v42 }
 0x3ef   : > { %2967 = vmax.xlane.f32.xlu0 %v2966_v7  ;;  %2970 = vmax.xlane.f32.xlu1 %v2969_v9 }
 0x3f3   : > { %2973 = vmax.xlane.f32.xlu0 %v2972_v45  ;;  %2976 = vmax.xlane.f32.xlu1 %v2975_v56 }
 0x3f5   : > { %v2685_v53 = vpop.permute.xlu0 %2684 }
 0x3f6   : > { %v7556_v2 = vadd.f32 %v7403_v62, %v2685_v53 }
 0x3f7   : > { %2979 = vmax.xlane.f32.xlu0 %v2978_v63  ;;  %2934 = vmax.xlane.f32.xlu1 %v2933_v27 }
 0x3f8   : > { %v2981_v34 = vsel %vm2932_vm8, %v7556_v2, -inf }
 0x3fa   : > { %v2687_v25 = vpop.permute.xlu1 %2686 }
 0x3fb   : > { %2937 = vmax.xlane.f32.xlu0 %v2936_v0  ;;  %2940 = vmax.xlane.f32.xlu1 %v2939_v16  ;;  %v7561_v55 = vadd.f32 %v7407_v44, %v2687_v25 }
 0x3fd   : > { %v2984_v62 = vsel %vm2932_vm8, %v7561_v55, -inf }
 0x3ff   : > { %2943 = vmax.xlane.f32.xlu0 %v2942_v51  ;;  %2946 = vmax.xlane.f32.xlu1 %v2945_v22 }
 0x403   : > { %2949 = vmax.xlane.f32.xlu0 %v2948_v38  ;;  %2952 = vmax.xlane.f32.xlu1 %v2951_v8 }
 0x407   : > { %2955 = vmax.xlane.f32.xlu0 %v2954_v1  ;;  %2982 = vmax.xlane.f32.xlu1 %v2981_v34 }
 0x40b   : > { %2985 = vmax.xlane.f32.xlu0 %v2984_v62 }
 0x421   : > { %v2822_v3 = vpop.permute.xlu1 %2821 }
 0x422   : > { %v2820_v6 = vpop.permute.xlu0 %2819 }
 0x425   : > { %v2691_v23 = vpop.permute.xlu1 %2690 }
 0x426   : > { %v2689_v52 = vpop.permute.xlu0 %2688  ;;  %v7570_v39 = vadd.f32 %v7405_v50, %v2691_v23 }
 0x427   : > { %v7573_v44 = vadd.f32 %v7401_v43, %v2689_v52 }
 0x428   : > { %v2990_v32 = vsel %vm2932_vm8, %v7570_v39, -inf }
 0x429   : > { %v2987_v42 = vsel %vm2932_vm8, %v7573_v44, -inf  ;;  %v2826_v20 = vpop.permute.xlu1 %2825  ;;  %2991 = vmax.xlane.f32.xlu0 %v2990_v32 }
 0x42a   : > { %v2824_v7 = vpop.permute.xlu0 %2823  ;;  %2988 = vmax.xlane.f32.xlu1 %v2987_v42  ;;  %v7606_v16 = vadd.f32 %v7430_v33, %v2826_v20 }
 0x42b   : > { %v7609_v54 = vadd.f32 %v7426_v28, %v2824_v7 }
 0x42c   : > { %v3014_v28 = vsel %vm2932_vm8, %v7606_v16, -inf }
 0x42d   : > { %v2699_v9 = vpop.permute.xlu1 %2698  ;;  %v3011_v33 = vsel %vm2932_vm8, %v7609_v54, -inf }
 0x42e   : > { %v2697_v49 = vpop.permute.xlu0 %2696  ;;  %v7589_v27 = vadd.f32 %v7455_v46, %v2699_v9 }
 0x42f   : > { %v7586_v63 = vadd.f32 %v7445_v29, %v2697_v49 }
 0x430   : > { %v3002_v29 = vsel %vm2932_vm8, %v7589_v27, -inf }
 0x431   : > { %v2834_v45 = vpop.permute.xlu1 %2833  ;;  %v2999_v46 = vsel %vm2932_vm8, %v7586_v63, -inf }
 0x432   : > { %v2832_v10 = vpop.permute.xlu0 %2831  ;;  %v7629_v25 = vadd.f32 %v7465_v61, %v2834_v45 }
 0x433   : > { %v7626_v38 = vadd.f32 %v7457_v15, %v2832_v10 }
 0x434   : > { %v3026_v8 = vsel %vm2932_vm8, %v7629_v25, -inf }
 0x435   : > { %v2695_v56 = vpop.permute.xlu1 %2694  ;;  %v3023_v1 = vsel %vm2932_vm8, %v7626_v38, -inf }
 0x436   : > { %v2693_v50 = vpop.permute.xlu0 %2692  ;;  %v7580_v13 = vadd.f32 %v7461_v41, %v2695_v56  ;;  %v7596_v41 = vadd.f32 %v7428_v5, %v2820_v6 }
 0x437   : > { %v7583_v43 = vadd.f32 %v7451_v14, %v2693_v50  ;;  %v7599_v14 = vadd.f32 %v7432_v24, %v2822_v3 }
 0x438   : > { %v2996_v4 = vsel %vm2932_vm8, %v7580_v13, -inf  ;;  %v3005_v24 = vsel %vm2932_vm8, %v7596_v41, -inf }
 0x439   : > { %v2993_v0 = vsel %vm2932_vm8, %v7583_v43, -inf  ;;  %2997 = vmax.xlane.f32.xlu0 %v2996_v4  ;;  %v3008_v5 = vsel %vm2932_vm8, %v7599_v14, -inf  ;;  %v2830_v51 = vpop.permute.xlu1 %2829 }
 0x43a   : > { %2994 = vmax.xlane.f32.xlu1 %v2993_v0  ;;  %v2828_v60 = vpop.permute.xlu0 %2827  ;;  %v7619_v53 = vadd.f32 %v7469_v30, %v2830_v51 }
 0x43b   : > { %v7616_v22 = vadd.f32 %v7459_v11, %v2828_v60 }
 0x43c   : > { %v3020_v11 = vsel %vm2932_vm8, %v7619_v53, -inf }
 0x43d   : > { %3003 = vmax.xlane.f32.xlu0 %v3002_v29  ;;  %v3017_v30 = vsel %vm2932_vm8, %v7616_v22, -inf }
 0x43e   : > { %3000 = vmax.xlane.f32.xlu1 %v2999_v46 }
 0x441   : > { %3009 = vmax.xlane.f32.xlu0 %v3008_v5 }
 0x442   : > { %3006 = vmax.xlane.f32.xlu1 %v3005_v24 }
 0x445   : > { %3015 = vmax.xlane.f32.xlu0 %v3014_v28 }
 0x446   : > { %3012 = vmax.xlane.f32.xlu1 %v3011_v33 }
 0x449   : > { %3021 = vmax.xlane.f32.xlu0 %v3020_v11 }
 0x44a   : > { %3018 = vmax.xlane.f32.xlu1 %v3017_v30 }
 0x44d   : > { %3027 = vmax.xlane.f32.xlu0 %v3026_v8 }
 0x44e   : > { %3024 = vmax.xlane.f32.xlu1 %v3023_v1 }
 0x474   : > { %v2959_v15 = vpop.xlane.xlu0 %2958 }
 0x475   : > { %v3037_v61 = vsub.f32 %v7480_v40, %v2959_v15 }
 0x477   : > { %v3077_v34 = vmul.f32 1.442695, %v3037_v61 }
 0x478   : > { %v2965_v62 = vpop.xlane.xlu0 %2964  ;;  %v2962_v6 = vpop.xlane.xlu1 %2961 }
 0x479   : > { %5235 = vpow2.f32 %v3077_v34  ;;  %v3039_v3 = vsub.f32 %v7483_v48, %v2965_v62  ;;  %v3038_v23 = vsub.f32 %v7488_v18, %v2962_v6 }
 0x47b   : > { %v3081_v52 = vmul.f32 1.442695, %v3039_v3  ;;  %v3079_v32 = vmul.f32 1.442695, %v3038_v23 }
 0x47c   : > { %v2968_v42 = vpop.xlane.xlu0 %2967  ;;  %v2971_v7 = vpop.xlane.xlu1 %2970 }
 0x47d   : > { %5237 = vpow2.f32 %v3081_v52  ;;  %v3040_v20 = vsub.f32 %v7491_v36, %v2968_v42  ;;  %v3041_v9 = vsub.f32 %v7496_v47, %v2971_v7 }
 0x47e   : > { %5239 = vpow2.f32 %v3079_v32 }
 0x47f   : > { %v3083_v49 = vmul.f32 1.442695, %v3040_v20  ;;  %v3085_v40 = vmul.f32 1.442695, %v3041_v9 }
 0x480   : > { %v2974_v45 = vpop.xlane.xlu0 %2973  ;;  %v2977_v48 = vpop.xlane.xlu1 %2976 }
 0x481   : > { %5241 = vpow2.f32 %v3083_v49  ;;  %v3042_v10 = vsub.f32 %v7501_v31, %v2974_v45  ;;  %v3043_v18 = vsub.f32 %v7506_v59, %v2977_v48 }
 0x482   : > { %5243 = vpow2.f32 %v3085_v40 }
 0x483   : > { %v7646_v56 = vpop.eup %5235  ;;  %v3087_v50 = vmul.f32 1.442695, %v3042_v10  ;;  %v3089_v4 = vmul.f32 1.442695, %v3043_v18 }
 0x484   : > { %v2980_v0 = vpop.xlane.xlu0 %2979  ;;  %v3149_v36 = vsel %vm2932_vm8, %v7646_v56, 0.0  ;;  %v2935_v29 = vpop.xlane.xlu1 %2934 }
 0x485   : > { %5245 = vpow2.f32 %v3087_v50  ;;  %v3044_v47 = vsub.f32 %v7511_v17, %v2980_v0  ;;  %3150 = vadd.xlane.f32.xlu1 %v3149_v36  ;;  %v3029_v31 = vsub.f32 %v7516_v58, %v2935_v29 }
 0x486   : > { %5247 = vpow2.f32 %v3089_v4 }
 0x487   : > { %v7652_v46 = vpop.eup %5237  ;;  %v3091_v5 = vmul.f32 1.442695, %v3044_v47  ;;  %v3061_v24 = vmul.f32 1.442695, %v3029_v31 }
 0x488   : > { %v7654_v59 = vpop.eup %5239  ;;  %v2938_v51 = vpop.xlane.xlu0 %2937  ;;  %v3155_v60 = vsel %vm2932_vm8, %v7652_v46, 0.0 }
 0x489   : > { %5249 = vpow2.f32 %v3091_v5  ;;  %v3030_v28 = vsub.f32 %v7521_v37, %v2938_v51  ;;  %3156 = vadd.xlane.f32.xlu1 %v3155_v60  ;;  %v2941_v17 = vpop.xlane.xlu1 %2940  ;;  %v3152_v33 = vsel %vm2932_vm8, %v7654_v59, 0.0 }
 0x48a   : > { %5251 = vpow2.f32 %v3061_v24  ;;  %v3031_v58 = vsub.f32 %v7526_v57, %v2941_v17  ;;  %3153 = vadd.xlane.f32.xlu0 %v3152_v33  ;;  %v5212_v17 = vld [vmem:[%s7706_s26 + $0x28] sm:$0xff]  }
 0x48b   : > { %v7662_v11 = vpop.eup %5241  ;;  %v3063_v30 = vmul.f32 1.442695, %v3030_v28 }
 0x48c   : > { %v7664_v8 = vpop.eup %5243  ;;  %v3065_v1 = vmul.f32 1.442695, %v3031_v58  ;;  %v2944_v15 = vpop.xlane.xlu0 %2943  ;;  %v3158_v61 = vsel %vm2932_vm8, %v7662_v11, 0.0 }
 0x48d   : > { %5253 = vpow2.f32 %v3063_v30  ;;  %v3032_v37 = vsub.f32 %v7531_v35, %v2944_v15  ;;  %v2947_v34 = vpop.xlane.xlu1 %2946  ;;  %v3161_v62 = vsel %vm2932_vm8, %v7664_v8, 0.0  ;;  %v5213_v15 = vld [vmem:[%s7706_s26 + $0x30] sm:$0xff]  }
 0x48e   : > { %5255 = vpow2.f32 %v3065_v1  ;;  %v3033_v57 = vsub.f32 %v7536_v26, %v2947_v34  ;;  %3159 = vadd.xlane.f32.xlu0 %v3158_v61  ;;  %3162 = vadd.xlane.f32.xlu1 %v3161_v62 }
 0x48f   : > { %v7672_v3 = vpop.eup %5245  ;;  %v3067_v6 = vmul.f32 1.442695, %v3032_v37 }
 0x490   : > { %v7674_v23 = vpop.eup %5247  ;;  %v3069_v52 = vmul.f32 1.442695, %v3033_v57  ;;  %v2950_v32 = vpop.xlane.xlu0 %2949  ;;  %v3164_v42 = vsel %vm2932_vm8, %v7672_v3, 0.0  ;;  %v5214_v57 = vld [vmem:[%s7706_s26 + $0x38] sm:$0xff]  }
 0x491   : > { %5257 = vpow2.f32 %v3067_v6  ;;  %v3034_v35 = vsub.f32 %v7541_v21, %v2950_v32  ;;  %v2953_v20 = vpop.xlane.xlu1 %2952  ;;  %v3167_v7 = vsel %vm2932_vm8, %v7674_v23, 0.0  ;;  %v5215_v32 = vld [vmem:[%s7706_s26] sm:$0xff]  }
 0x492   : > { %5259 = vpow2.f32 %v3069_v52  ;;  %v3035_v26 = vsub.f32 %v7546_v12, %v2953_v20  ;;  %3165 = vadd.xlane.f32.xlu0 %v3164_v42  ;;  %3168 = vadd.xlane.f32.xlu1 %v3167_v7  ;;  %v5216_v42 = vld [vmem:[%s7706_s26 + $0x8] sm:$0xff]   ;;  %v5218_v20 = vld [vmem:[%s7706_s26 + $0x18] sm:$0xff]  }
 0x493   : > { %v7682_v9 = vpop.eup %5249  ;;  %v3071_v49 = vmul.f32 1.442695, %v3034_v35  ;;  %4904 = vmatprep.subr.bf16.mxu0 %v5215_v32  ;;  %v5217_v35 = vld [vmem:[%s7706_s26 + $0x10] sm:$0xff]  }
 0x494   : > { %v7684_v40 = vpop.eup %5251  ;;  %v3073_v45 = vmul.f32 1.442695, %v3035_v26  ;;  %v2956_v10 = vpop.xlane.xlu0 %2955  ;;  %v3170_v48 = vsel %vm2932_vm8, %v7682_v9, 0.0  ;;  %4905 = vmatpush3.bf16.msra.mxu0 %v5215_v32 }
 0x495   : > { %5261 = vpow2.f32 %v3071_v49  ;;  %v3036_v21 = vsub.f32 %v7551_v19, %v2956_v10  ;;  %v2983_v18 = vpop.xlane.xlu1 %2982  ;;  %v3125_v12 = vsel %vm2932_vm8, %v7684_v40, 0.0  ;;  %4906 = vmatprep.subr.bf16.mxu0 %v5216_v42 }
 0x496   : > { %5263 = vpow2.f32 %v3073_v45  ;;  %v3045_v50 = vsub.f32 %v7556_v2, %v2983_v18  ;;  %3171 = vadd.xlane.f32.xlu0 %v3170_v48  ;;  %3126 = vadd.xlane.f32.xlu1 %v3125_v12  ;;  %v5211_v2 = vld [vmem:[%s7706_s26 + $0x20] sm:$0xff]  }
 0x497   : > { %v7692_v4 = vpop.eup %5253  ;;  %v3075_v0 = vmul.f32 1.442695, %v3036_v21  ;;  %4920 = vmatprep.subr.bf16.mxu1 %v5211_v2 }
 0x498   : > { %v7694_v36 = vpop.eup %5255  ;;  %v3093_v47 = vmul.f32 1.442695, %v3045_v50  ;;  %v2986_v29 = vpop.xlane.xlu0 %2985  ;;  %v3128_v19 = vsel %vm2932_vm8, %v7692_v4, 0.0  ;;  %4921 = vmatpush3.bf16.msra.mxu1 %v5211_v2  ;;  %4907 = vmatpush3.bf16.msra.mxu0 %v5216_v42 }
 0x499   : > { %5265 = vpow2.f32 %v3075_v0  ;;  %v3046_v31 = vsub.f32 %v7561_v55, %v2986_v29  ;;  %v3131_v5 = vsel %vm2932_vm8, %v7694_v36, 0.0  ;;  %4922 = vmatprep.subr.bf16.mxu1 %v5212_v17  ;;  %4908 = vmatprep.subr.bf16.mxu0 %v5217_v35 }
 0x49a   : > { %5267 = vpow2.f32 %v3093_v47  ;;  %3129 = vadd.xlane.f32.xlu0 %v3128_v19  ;;  %3132 = vadd.xlane.f32.xlu1 %v3131_v5  ;;  %v7753_v47 = vld [vmem:[%s7706_s26 + $0x40] sm:$0xff]  }
 0x49b   : > { %v7709_v24 = vpop.eup %5257  ;;  %v3095_v51 = vmul.f32 1.442695, %v3046_v31 }
 0x49c   : > { %v7711_v60 = vpop.eup %5259  ;;  %v3134_v55 = vsel %vm2932_vm8, %v7709_v24, 0.0  ;;  %4923 = vmatpush3.bf16.msra.mxu1 %v5212_v17  ;;  %4909 = vmatpush3.bf16.msra.mxu0 %v5217_v35 }
 0x49d   : > { %5269 = vpow2.f32 %v3095_v51  ;;  %v3137_v28 = vsel %vm2932_vm8, %v7711_v60, 0.0  ;;  %4924 = vmatprep.subr.bf16.mxu1 %v5213_v15  ;;  %4910 = vmatprep.subr.bf16.mxu0 %v5218_v20 }
 0x49e   : > { %3135 = vadd.xlane.f32.xlu0 %v3134_v55  ;;  %3138 = vadd.xlane.f32.xlu1 %v3137_v28 }
 0x49f   : > { %v7718_v33 = vpop.eup %5261 }
 0x4a0   : > { %v7720_v58 = vpop.eup %5263  ;;  %v3140_v30 = vsel %vm2932_vm8, %v7718_v33, 0.0  ;;  %4925 = vmatpush3.bf16.msra.mxu1 %v5213_v15  ;;  %4911 = vmatpush3.bf16.msra.mxu0 %v5218_v20 }
 0x4a1   : > { %v3143_v1 = vsel %vm2932_vm8, %v7720_v58, 0.0  ;;  %4926 = vmatprep.subr.bf16.mxu1 %v5214_v57  ;;  %4936 = vmatprep.subr.bf16.mxu0 %v7753_v47 }
 0x4a2   : > { %3141 = vadd.xlane.f32.xlu0 %v3140_v30  ;;  %3144 = vadd.xlane.f32.xlu1 %v3143_v1 }
 0x4a3   : > { %v7727_v61 = vpop.eup %5265 }
 0x4a4   : > { %v7729_v37 = vpop.eup %5267  ;;  %v3146_v34 = vsel %vm2932_vm8, %v7727_v61, 0.0  ;;  %4927 = vmatpush3.bf16.msra.mxu1 %v5214_v57 }
 0x4a5   : > { %v3173_v62 = vsel %vm2932_vm8, %v7729_v37, 0.0 }
 0x4a6   : > { %3147 = vadd.xlane.f32.xlu0 %v3146_v34  ;;  %3174 = vadd.xlane.f32.xlu1 %v3173_v62 }
 0x4a7   : > { %v7736_v6 = vpop.eup %5269 }
 0x4a8   : > { %v3176_v52 = vsel %vm2932_vm8, %v7736_v6, 0.0 }
 0x4aa   : > { %3177 = vadd.xlane.f32.xlu0 %v3176_v52 }
 0x4b6   : > { %v2992_v7 = vpop.xlane.xlu0 %2991 }
 0x4b7   : > { %v2989_v26 = vpop.xlane.xlu1 %2988  ;;  %v3048_v49 = vsub.f32 %v7570_v39, %v2992_v7 }
 0x4b8   : > { %v3047_v45 = vsub.f32 %v7573_v44, %v2989_v26 }
 0x4b9   : > { %v3099_v10 = vmul.f32 1.442695, %v3048_v49 }
 0x4ba   : > { %v3097_v48 = vmul.f32 1.442695, %v3047_v45 }
 0x4bb   : > { %5271 = vpow2.f32 %v3099_v10 }
 0x4bc   : > { %5273 = vpow2.f32 %v3097_v48 }
 0x4c5   : > { %v7746_v21 = vpop.eup %5271 }
 0x4c6   : > { %v7748_v18 = vpop.eup %5273  ;;  %v2998_v12 = vpop.xlane.xlu0 %2997  ;;  %v3182_v0 = vsel %vm2932_vm8, %v7746_v21, 0.0 }
 0x4c7   : > { %v2995_v50 = vpop.xlane.xlu1 %2994  ;;  %v3050_v39 = vsub.f32 %v7580_v13, %v2998_v12  ;;  %3183 = vadd.xlane.f32.xlu0 %v3182_v0  ;;  %v3179_v29 = vsel %vm2932_vm8, %v7748_v18, 0.0 }
 0x4c8   : > { %v3049_v44 = vsub.f32 %v7583_v43, %v2995_v50  ;;  %3180 = vadd.xlane.f32.xlu1 %v3179_v29 }
 0x4c9   : > { %v3103_v19 = vmul.f32 1.442695, %v3050_v39 }
 0x4ca   : > { %v3101_v31 = vmul.f32 1.442695, %v3049_v44  ;;  %v3004_v5 = vpop.xlane.xlu0 %3003 }
 0x4cb   : > { %v3001_v2 = vpop.xlane.xlu1 %3000  ;;  %5275 = vpow2.f32 %v3103_v19  ;;  %v3052_v51 = vsub.f32 %v7589_v27, %v3004_v5 }
 0x4cc   : > { %v3051_v55 = vsub.f32 %v7586_v63, %v3001_v2  ;;  %5277 = vpow2.f32 %v3101_v31 }
 0x4cd   : > { %v3107_v13 = vmul.f32 1.442695, %v3052_v51 }
 0x4ce   : > { %v3105_v28 = vmul.f32 1.442695, %v3051_v55  ;;  %v3010_v43 = vpop.xlane.xlu0 %3009 }
 0x4cf   : > { %v3007_v17 = vpop.xlane.xlu1 %3006  ;;  %5279 = vpow2.f32 %v3107_v13  ;;  %v3054_v30 = vsub.f32 %v7599_v14, %v3010_v43 }
 0x4d0   : > { %v3053_v1 = vsub.f32 %v7596_v41, %v3007_v17  ;;  %5281 = vpow2.f32 %v3105_v28 }
 0x4d1   : > { %v3111_v15 = vmul.f32 1.442695, %v3054_v30 }
 0x4d2   : > { %v3109_v34 = vmul.f32 1.442695, %v3053_v1  ;;  %v3016_v62 = vpop.xlane.xlu0 %3015 }
 0x4d3   : > { %v3013_v57 = vpop.xlane.xlu1 %3012  ;;  %5283 = vpow2.f32 %v3111_v15  ;;  %v3056_v27 = vsub.f32 %v7606_v16, %v3016_v62 }
 0x4d4   : > { %v3055_v63 = vsub.f32 %v7609_v54, %v3013_v57  ;;  %5285 = vpow2.f32 %v3109_v34  ;;  %v5223_v34 = vld [vmem:[%s7706_s26 + $0x60] sm:$0xff]  }
 0x4d5   : > { %v7766_v52 = vpop.eup %5275  ;;  %v3115_v32 = vmul.f32 1.442695, %v3056_v27  ;;  %4952 = vmatprep.subr.bf16.mxu1 %v5223_v34 }
 0x4d6   : > { %v3113_v42 = vmul.f32 1.442695, %v3055_v63  ;;  %v7768_v35 = vpop.eup %5277  ;;  %v3022_v14 = vpop.xlane.xlu0 %3021  ;;  %v3188_v41 = vsel %vm2932_vm8, %v7766_v52, 0.0 }
 0x4d7   : > { %v3019_v20 = vpop.xlane.xlu1 %3018  ;;  %5287 = vpow2.f32 %v3115_v32  ;;  %v3058_v7 = vsub.f32 %v7619_v53, %v3022_v14  ;;  %3189 = vadd.xlane.f32.xlu0 %v3188_v41  ;;  %v3185_v16 = vsel %vm2932_vm8, %v7768_v35, 0.0 }
 0x4d8   : > { %v3057_v26 = vsub.f32 %v7616_v22, %v3019_v20  ;;  %5289 = vpow2.f32 %v3113_v42  ;;  %3186 = vadd.xlane.f32.xlu1 %v3185_v16 }
 0x4d9   : > { %v7776_v54 = vpop.eup %5279  ;;  %v3119_v49 = vmul.f32 1.442695, %v3058_v7 }
 0x4da   : > { %v3117_v45 = vmul.f32 1.442695, %v3057_v26  ;;  %v7778_v10 = vpop.eup %5281  ;;  %v3028_v48 = vpop.xlane.xlu0 %3027  ;;  %v3194_v50 = vsel %vm2932_vm8, %v7776_v54, 0.0 }
 0x4db   : > { %v3025_v12 = vpop.xlane.xlu1 %3024  ;;  %5291 = vpow2.f32 %v3119_v49  ;;  %v3060_v22 = vsub.f32 %v7629_v25, %v3028_v48  ;;  %3195 = vadd.xlane.f32.xlu0 %v3194_v50  ;;  %v3191_v0 = vsel %vm2932_vm8, %v7778_v10, 0.0 }
 0x4dc   : > { %v3059_v53 = vsub.f32 %v7626_v38, %v3025_v12  ;;  %5293 = vpow2.f32 %v3117_v45  ;;  %3192 = vadd.xlane.f32.xlu1 %v3191_v0 }
 0x4dd   : > { %v7786_v39 = vpop.eup %5283  ;;  %v3123_v44 = vmul.f32 1.442695, %v3060_v22 }
 0x4de   : > { %v3121_v29 = vmul.f32 1.442695, %v3059_v53  ;;  %v7788_v19 = vpop.eup %5285  ;;  %v3200_v31 = vsel %vm2932_vm8, %v7786_v39, 0.0 }
 0x4df   : > { %5295 = vpow2.f32 %v3123_v44  ;;  %3201 = vadd.xlane.f32.xlu0 %v3200_v31  ;;  %v3197_v38 = vsel %vm2932_vm8, %v7788_v19, 0.0 }
 0x4e0   : > { %5297 = vpow2.f32 %v3121_v29  ;;  %3198 = vadd.xlane.f32.xlu1 %v3197_v38 }
 0x4e1   : > { %v7794_v25 = vpop.eup %5287 }
 0x4e2   : > { %v7796_v5 = vpop.eup %5289  ;;  %v3206_v2 = vsel %vm2932_vm8, %v7794_v25, 0.0 }
 0x4e3   : > { %3207 = vadd.xlane.f32.xlu0 %v3206_v2  ;;  %v3203_v51 = vsel %vm2932_vm8, %v7796_v5, 0.0 }
 0x4e4   : > { %3204 = vadd.xlane.f32.xlu1 %v3203_v51 }
 0x4e5   : > { %v7802_v55 = vpop.eup %5291 }
 0x4e6   : > { %v7804_v13 = vpop.eup %5293  ;;  %v3212_v28 = vsel %vm2932_vm8, %v7802_v55, 0.0 }
 0x4e7   : > { %3213 = vadd.xlane.f32.xlu0 %v3212_v28  ;;  %v3209_v43 = vsel %vm2932_vm8, %v7804_v13, 0.0  ;;  %v5225_v28 = vld [vmem:[%s7706_s26 + $0x70] sm:$0xff]  }
 0x4e8   : > { %3210 = vadd.xlane.f32.xlu1 %v3209_v43 }
 0x4e9   : > { %v7810_v17 = vpop.eup %5295 }
 0x4ea   : > { %v7812_v30 = vpop.eup %5297  ;;  %v3218_v1 = vsel %vm2932_vm8, %v7810_v17, 0.0 }
 0x4eb   : > { %3219 = vadd.xlane.f32.xlu0 %v3218_v1  ;;  %v3215_v15 = vsel %vm2932_vm8, %v7812_v30, 0.0 }
 0x4ec   : > { %3216 = vadd.xlane.f32.xlu1 %v3215_v15 }
 0x512   : > { %v3151_v62 = vpop.xlane.xlu1 %3150 }
 0x513   : > { %5299 = vrcp.f32 %v3151_v62 }
 0x516   : > { %v3157_v57 = vpop.xlane.xlu1 %3156 }
 0x517   : > { %v3154_v27 = vpop.xlane.xlu0 %3153 }
 0x518   : > { %5301 = vrcp.f32 %v3154_v27 }
 0x519   : > { %5303 = vrcp.f32 %v3157_v57 }
 0x51b   : > { %v3160_v63 = vpop.xlane.xlu0 %3159  ;;  %v3163_v32 = vpop.xlane.xlu1 %3162 }
 0x51c   : > { %5305 = vrcp.f32 %v3160_v63 }
 0x51d   : > { %5307 = vrcp.f32 %v3163_v32  ;;  %v5300_v20 = vpop.eup %5299 }
 0x51e   : > { %v3261_v16 = vmul.f32 %v5300_v20, %v7646_v56  ;;  %v5224_v56 = vld [vmem:[%s7706_s26 + $0x68] sm:$0xff]  }
 0x51f   : > { %v3166_v42 = vpop.xlane.xlu0 %3165  ;;  %v3169_v14 = vpop.xlane.xlu1 %3168 }
 0x520   : > { %5309 = vrcp.f32 %v3166_v42 }
 0x521   : > { %5311 = vrcp.f32 %v3169_v14 }
 0x522   : > { %v5302_v41 = vpop.eup %5301 }
 0x523   : > { %v3172_v7 = vpop.xlane.xlu0 %3171  ;;  %v3127_v26 = vpop.xlane.xlu1 %3126  ;;  %v3262_v49 = vmul.f32 %v5302_v41, %v7654_v59 }
 0x524   : > { %v5304_v45 = vpop.eup %5303  ;;  %5313 = vrcp.f32 %v3172_v7 }
 0x525   : > { %v3289_v48 = vpack.c.bf16 %v3262_v49, %v3261_v16  ;;  %5315 = vrcp.f32 %v3127_v26  ;;  %v3263_v50 = vmul.f32 %v5304_v45, %v7652_v46 }
 0x526   : > { %v5306_v12 = vpop.eup %5305 }
 0x527   : > { %v3264_v22 = vmul.f32 %v5306_v12, %v7662_v11  ;;  %v3130_v53 = vpop.xlane.xlu0 %3129  ;;  %4928 = vmatprep.mubr.msk.bf16.mxu1 %vm2932_vm8, %v3289_v48  ;;  %v3133_v0 = vpop.xlane.xlu1 %3132  ;;  %v5221_v12 = vld [vmem:[%s7706_s26 + $0x50] sm:$0xff]  }
 0x528   : > { %v5308_v44 = vpop.eup %5307  ;;  %5317 = vrcp.f32 %v3130_v53 }
 0x529   : > { %v3290_v29 = vpack.c.bf16 %v3264_v22, %v3263_v50  ;;  %5319 = vrcp.f32 %v3133_v0  ;;  %v3265_v2 = vmul.f32 %v5308_v44, %v7664_v8 }
 0x52a   : > { %v5310_v31 = vpop.eup %5309 }
 0x52b   : > { %v3136_v59 = vpop.xlane.xlu0 %3135  ;;  %4929 = vmatmul.mubr.msk.bf16.vlgmr.msra.gmra.mrb[40].mxu1 %vm2932_vm8, %v3290_v29  ;;  %v3139_v38 = vpop.xlane.xlu1 %3138  ;;  %v3266_v46 = vmul.f32 %v5310_v31, %v7672_v3 }
 0x52c   : > { %v5312_v11 = vpop.eup %5311  ;;  %5321 = vrcp.f32 %v3136_v59  ;;  %4953 = vmatpush3.bf16.msra.mxu1 %v5223_v34  ;;  %v5226_v34 = vld [vmem:[%s7706_s26 + $0x78] sm:$0xff]  }
 0x52d   : > { %v3291_v51 = vpack.c.bf16 %v3266_v46, %v3265_v2  ;;  %4954 = vmatprep.subr.bf16.mxu1 %v5224_v56  ;;  %5323 = vrcp.f32 %v3139_v38  ;;  %v3267_v62 = vmul.f32 %v5312_v11, %v7674_v23 }
 0x52e   : > { %v5314_v43 = vpop.eup %5313 }
 0x52f   : > { %v3142_v1 = vpop.xlane.xlu0 %3141  ;;  %4932 = vmatprep.mubr.msk.bf16.mxu1 %vm2932_vm8, %v3291_v51  ;;  %v3145_v15 = vpop.xlane.xlu1 %3144  ;;  %v3268_v57 = vmul.f32 %v5314_v43, %v7682_v9 }
 0x530   : > { %v5316_v8 = vpop.eup %5315  ;;  %5325 = vrcp.f32 %v3142_v1  ;;  %4955 = vmatpush3.bf16.msra.mxu1 %v5224_v56 }
 0x531   : > { %v3292_v3 = vpack.c.bf16 %v3268_v57, %v3267_v62  ;;  %4956 = vmatprep.subr.bf16.mxu1 %v5225_v28  ;;  %5327 = vrcp.f32 %v3145_v15  ;;  %v3253_v42 = vmul.f32 %v5316_v8, %v7684_v40 }
 0x532   : > { %v5318_v27 = vpop.eup %5317 }
 0x533   : > { %v3148_v63 = vpop.xlane.xlu0 %3147  ;;  %4933 = vmatmul.mubr.msk.bf16.gmra.mrb[44].mxu1 %vm2932_vm8, %v3292_v3  ;;  %v3175_v32 = vpop.xlane.xlu1 %3174  ;;  %v3254_v14 = vmul.f32 %v5318_v27, %v7692_v4  ;;  %v5220_v4 = vld [vmem:[%s7706_s26 + $0x48] sm:$0xff]  }
 0x534   : > { %v5320_v23 = vpop.eup %5319  ;;  %5329 = vrcp.f32 %v3148_v63  ;;  %4957 = vmatpush3.bf16.msra.mxu1 %v5225_v28 }
 0x535   : > { %v3285_v9 = vpack.c.bf16 %v3254_v14, %v3253_v42  ;;  %4958 = vmatprep.subr.bf16.mxu1 %v5226_v34  ;;  %5331 = vrcp.f32 %v3175_v32  ;;  %v3255_v41 = vmul.f32 %v5320_v23, %v7694_v36 }
 0x536   : > { %v5322_v20 = vpop.eup %5321 }
 0x537   : > { %v3256_v7 = vmul.f32 %v5322_v20, %v7709_v24  ;;  %v3178_v26 = vpop.xlane.xlu0 %3177  ;;  %4912 = vmatprep.mubr.msk.bf16.mxu0 %vm2932_vm8, %v3285_v9  ;;  %v5324_v16 = vpop.eup %5323 }
 0x538   : > { %5333 = vrcp.f32 %v3178_v26  ;;  %4959 = vmatpush3.bf16.msra.mxu1 %v5226_v34  ;;  %v3257_v45 = vmul.f32 %v5324_v16, %v7711_v60  ;;  %v5222_v60 = vld [vmem:[%s7706_s26 + $0x58] sm:$0xff]  }
 0x539   : > { %v3286_v40 = vpack.c.bf16 %v3256_v7, %v3255_v41 }
 0x53a   : > { %v5326_v49 = vpop.eup %5325 }
 0x53b   : > { %4913 = vmatmul.mubr.msk.bf16.vlgmr.msra.gmra.mrb[24].mxu0 %vm2932_vm8, %v3286_v40  ;;  %v3258_v48 = vmul.f32 %v5326_v49, %v7718_v33  ;;  %v5328_v36 = vpop.eup %5327 }
 0x53c   : > { %4937 = vmatpush3.bf16.msra.mxu0 %v7753_v47  ;;  %v3259_v22 = vmul.f32 %v5328_v36, %v7720_v58  ;;  %v5227_v58 = vld [vmem:[%s8042_s7 + $0x10] sm:$0xff]  }
 0x53d   : > { %v3287_v24 = vpack.c.bf16 %v3258_v48, %v3257_v45  ;;  %4938 = vmatprep.subr.bf16.mxu0 %v5220_v4 }
 0x53e   : > { %v5330_v50 = vpop.eup %5329 }
 0x53f   : > { %4916 = vmatprep.mubr.msk.bf16.mxu0 %vm2932_vm8, %v3287_v24  ;;  %v3260_v53 = vmul.f32 %v5330_v50, %v7727_v61  ;;  %v5332_v0 = vpop.eup %5331 }
 0x540   : > { %4939 = vmatpush3.bf16.msra.mxu0 %v5220_v4  ;;  %v3269_v33 = vmul.f32 %v5332_v0, %v7729_v37 }
 0x541   : > { %v3288_v44 = vpack.c.bf16 %v3260_v53, %v3259_v22  ;;  %4940 = vmatprep.subr.bf16.mxu0 %v5221_v12 }
 0x542   : > { %v5334_v29 = vpop.eup %5333 }
 0x543   : > { %4917 = vmatmul.mubr.msk.bf16.gmra.mrb[28].mxu0 %vm2932_vm8, %v3288_v44  ;;  %v3270_v47 = vmul.f32 %v5334_v29, %v7736_v6 }
 0x544   : > { %4941 = vmatpush3.bf16.msra.mxu0 %v5221_v12 }
 0x545   : > { %v3293_v56 = vpack.c.bf16 %v3270_v47, %v3269_v33  ;;  %4942 = vmatprep.subr.bf16.mxu0 %v5222_v60  ;;  %v5231_v33 = vld [vmem:[%s8042_s7 + $0x20] sm:$0xff]  }
 0x547   : > { %4944 = vmatprep.mubr.msk.bf16.mxu0 %vm2932_vm8, %v3293_v56 }
 0x548   : > { %4943 = vmatpush3.bf16.msra.mxu0 %v5222_v60 }
 0x549   : > { %4968 = vmatprep.subr.bf16.mxu0 %v5227_v58 }
 0x554   : > { %v3184_v61 = vpop.xlane.xlu0 %3183 }
 0x555   : > { %5335 = vrcp.f32 %v3184_v61  ;;  %v3181_v31 = vpop.xlane.xlu1 %3180 }
 0x556   : > { %5337 = vrcp.f32 %v3181_v31 }
 0x55f   : > { %v5336_v59 = vpop.eup %5335 }
 0x560   : > { %v5338_v38 = vpop.eup %5337  ;;  %v3272_v37 = vmul.f32 %v5336_v59, %v7746_v21 }
 0x561   : > { %v3271_v6 = vmul.f32 %v5338_v38, %v7748_v18 }
 0x563   : > { %v3294_v2 = vpack.c.bf16 %v3272_v37, %v3271_v6 }
 0x564   : > { %v3190_v46 = vpop.xlane.xlu0 %3189 }
 0x565   : > { %5339 = vrcp.f32 %v3190_v46  ;;  %4945 = vmatmul.mubr.msk.bf16.vlgmr.msra.gmra.mrb[32].mxu0 %vm2932_vm8, %v3294_v2  ;;  %v3187_v11 = vpop.xlane.xlu1 %3186  ;;  %v5232_v46 = vld [vmem:[%s8042_s7 + $0x28] sm:$0xff]  }
 0x566   : > { %5341 = vrcp.f32 %v3187_v11  ;;  %4969 = vmatpush3.bf16.msra.mxu0 %v5227_v58 }
 0x568   : > { %v3196_v51 = vpop.xlane.xlu0 %3195 }
 0x569   : > { %5343 = vrcp.f32 %v3196_v51  ;;  %v3193_v28 = vpop.xlane.xlu1 %3192 }
 0x56a   : > { %5345 = vrcp.f32 %v3193_v28  ;;  %v5233_v28 = vld [vmem:[%s8042_s7 + $0x30] sm:$0xff]  }
 0x56c   : > { %v3202_v43 = vpop.xlane.xlu0 %3201 }
 0x56d   : > { %5347 = vrcp.f32 %v3202_v43  ;;  %v3199_v1 = vpop.xlane.xlu1 %3198 }
 0x56e   : > { %5349 = vrcp.f32 %v3199_v1 }
 0x56f   : > { %v5340_v15 = vpop.eup %5339 }
 0x570   : > { %v5342_v21 = vpop.eup %5341  ;;  %v3208_v62 = vpop.xlane.xlu0 %3207  ;;  %v3274_v18 = vmul.f32 %v5340_v15, %v7766_v52 }
 0x571   : > { %5351 = vrcp.f32 %v3208_v62  ;;  %v3205_v57 = vpop.xlane.xlu1 %3204  ;;  %v3273_v8 = vmul.f32 %v5342_v21, %v7768_v35 }
 0x572   : > { %5353 = vrcp.f32 %v3205_v57 }
 0x573   : > { %v5344_v3 = vpop.eup %5343  ;;  %v3295_v34 = vpack.c.bf16 %v3274_v18, %v3273_v8 }
 0x574   : > { %v5346_v27 = vpop.eup %5345  ;;  %v3214_v63 = vpop.xlane.xlu0 %3213  ;;  %v3276_v32 = vmul.f32 %v5344_v3, %v7776_v54 }
 0x575   : > { %5355 = vrcp.f32 %v3214_v63  ;;  %4948 = vmatprep.mubr.msk.bf16.mxu0 %vm2932_vm8, %v3295_v34  ;;  %v3211_v42 = vpop.xlane.xlu1 %3210  ;;  %v3275_v14 = vmul.f32 %v5346_v27, %v7778_v10  ;;  %v5234_v27 = vld [vmem:[%s8042_s7 + $0x38] sm:$0xff]  }
 0x576   : > { %5357 = vrcp.f32 %v3211_v42 }
 0x577   : > { %v5348_v23 = vpop.eup %5347  ;;  %v3296_v52 = vpack.c.bf16 %v3276_v32, %v3275_v14 }
 0x578   : > { %v5350_v9 = vpop.eup %5349  ;;  %v3220_v20 = vpop.xlane.xlu0 %3219  ;;  %v3278_v35 = vmul.f32 %v5348_v23, %v7786_v39  ;;  %v5228_v39 = vld [vmem:[%s8042_s7 + $0x18] sm:$0xff]  }
 0x579   : > { %5359 = vrcp.f32 %v3220_v20  ;;  %4949 = vmatmul.mubr.msk.bf16.gmra.mrb[36].mxu0 %vm2932_vm8, %v3296_v52  ;;  %v3217_v41 = vpop.xlane.xlu1 %3216  ;;  %v3277_v7 = vmul.f32 %v5350_v9, %v7788_v19  ;;  %4970 = vmatprep.subr.bf16.mxu0 %v5228_v39 }
 0x57a   : > { %5361 = vrcp.f32 %v3217_v41  ;;  %4971 = vmatpush3.bf16.msra.mxu0 %v5228_v39  ;;  %v4143_v39 = vld [vmem:[%s482_s25 + $0x10] sm:$0xff] }
 0x57b   : > { %v5352_v54 = vpop.eup %5351  ;;  %v3297_v26 = vpack.c.bf16 %v3278_v35, %v3277_v7 }
 0x57c   : > { %v5354_v16 = vpop.eup %5353  ;;  %v3280_v40 = vmul.f32 %v5352_v54, %v7794_v25 }
 0x57d   : > { %v3279_v10 = vmul.f32 %v5354_v16, %v7796_v5  ;;  %4960 = vmatprep.mubr.msk.bf16.mxu1 %vm2932_vm8, %v3297_v26 }
 0x57f   : > { %v5356_v4 = vpop.eup %5355  ;;  %v3298_v49 = vpack.c.bf16 %v3280_v40, %v3279_v10 }
 0x580   : > { %v5358_v45 = vpop.eup %5357  ;;  %v3282_v48 = vmul.f32 %v5356_v4, %v7802_v55  ;;  %v5229_v55 = vld [vmem:[%s8042_s7] sm:$0xff]  }
 0x581   : > { %4961 = vmatmul.mubr.msk.bf16.vlgmr.msra.gmra.mrb[48].mxu1 %vm2932_vm8, %v3298_v49  ;;  %v3281_v19 = vmul.f32 %v5358_v45, %v7804_v13  ;;  %4980 = vmatprep.subr.bf16.mxu0 %v5229_v55 }
 0x583   : > { %v5360_v25 = vpop.eup %5359  ;;  %v3299_v36 = vpack.c.bf16 %v3282_v48, %v3281_v19  ;;  %v4144_v48 = vld [vmem:[%s482_s25 + $0x18] sm:$0xff] }
 0x584   : > { %v5362_v5 = vpop.eup %5361  ;;  %v3284_v24 = vmul.f32 %v5360_v25, %v7810_v17  ;;  %v5230_v17 = vld [vmem:[%s8042_s7 + $0x8] sm:$0xff]  }
 0x585   : > { %4964 = vmatprep.mubr.msk.bf16.mxu1 %vm2932_vm8, %v3299_v36  ;;  %v3283_v12 = vmul.f32 %v5362_v5, %v7812_v30  ;;  %v4141_v36 = vld [vmem:[%s482_s25] sm:$0xff] }
 0x587   : > { %v3300_v50 = vpack.c.bf16 %v3284_v24, %v3283_v12 }
 0x589   : > { %4965 = vmatmul.mubr.msk.bf16.gmra.mrb[52].mxu1 %vm2932_vm8, %v3300_v50  ;;  %v4142_v50 = vld [vmem:[%s482_s25 + $0x8] sm:$0xff] }
 0x5fe   : > { %v4930_v13 = vpop.f32.mrb[40].mxu1 }
 0x5ff   : > { %v3504_v22 = vpop.f32.mrb[41].mxu1 }
 0x600   : > { %v4931_v53 = vpop.f32.mrb[42].mxu1 }
 0x601   : > { %v3742_v0 = vpack.c.bf16 %v4931_v53, %v4930_v13  ;;  %v3507_v44 = vpop.f32.mrb[43].mxu1 }
 0x602   : > { %v3741_v60 = vpack.c.bf16 %v3507_v44, %v3504_v22  ;;  %v4145_v22 = vld [vmem:[%s482_s25 + $0x20] sm:$0xff]  ;;  %v4146_v44 = vld [vmem:[%s482_s25 + $0x28] sm:$0xff] }
 0x604   : > { %4972 = vmatprep.mubr.msk.bf16.mxu0 %vm812_vm0, %v3741_v60 }
 0x605   : > { %4973 = vmatmul.mubr.msk.bf16.vlgmr.msra.gmra.mrb[40].mxu0 %vm812_vm0, %v3742_v0 }
 0x606   : > { %v4934_v30 = vpop.f32.mrb[44].mxu1  ;;  %4981 = vmatpush3.bf16.msra.mxu0 %v5229_v55 }
 0x607   : > { %v3520_v29 = vpop.f32.mrb[45].mxu1  ;;  %4982 = vmatprep.subr.bf16.mxu0 %v5230_v17 }
 0x608   : > { %v4935_v47 = vpop.f32.mrb[46].mxu1 }
 0x609   : > { %v3744_v56 = vpack.c.bf16 %v4935_v47, %v4934_v30  ;;  %v3523_v58 = vpop.f32.mrb[47].mxu1  ;;  %v4147_v30 = vld [vmem:[%s482_s25 + $0x30] sm:$0xff]  ;;  %v4148_v47 = vld [vmem:[%s482_s25 + $0x38] sm:$0xff] }
 0x60a   : > { %v3743_v61 = vpack.c.bf16 %v3523_v58, %v3520_v29  ;;  %4983 = vmatpush3.bf16.msra.mxu0 %v5230_v17 }
 0x60b   : > { %4992 = vmatprep.subr.bf16.mxu0 %v5231_v33 }
 0x60c   : > { %4976 = vmatprep.mubr.msk.bf16.mxu0 %vm812_vm0, %v3743_v61 }
 0x60d   : > { %4977 = vmatmul.mubr.msk.bf16.gmra.mrb[44].mxu0 %vm812_vm0, %v3744_v56 }
 0x60e   : > { %v4914_v31 = vpop.f32.mrb[24].mxu0 }
 0x60f   : > { %v3403_v59 = vpop.f32.mrb[25].mxu0 }
 0x610   : > { %v4915_v38 = vpop.f32.mrb[26].mxu0 }
 0x611   : > { %v3738_v37 = vpack.c.bf16 %v4915_v38, %v4914_v31  ;;  %v3406_v6 = vpop.f32.mrb[27].mxu0 }
 0x612   : > { %v3737_v2 = vpack.c.bf16 %v3406_v6, %v3403_v59 }
 0x614   : > { %4984 = vmatprep.mubr.msk.bf16.mxu0 %vm812_vm0, %v3737_v2 }
 0x615   : > { %4985 = vmatmul.mubr.msk.bf16.vlgmr.msra.gmra.mrb[40].mxu0 %vm812_vm0, %v3738_v37 }
 0x616   : > { %v4918_v11 = vpop.f32.mrb[28].mxu0  ;;  %4993 = vmatpush3.bf16.msra.mxu0 %v5231_v33 }
 0x617   : > { %v3419_v51 = vpop.f32.mrb[29].mxu0  ;;  %4994 = vmatprep.subr.bf16.mxu0 %v5232_v46 }
 0x618   : > { %v4919_v43 = vpop.f32.mrb[30].mxu0 }
 0x619   : > { %v3740_v1 = vpack.c.bf16 %v4919_v43, %v4918_v11  ;;  %v3422_v15 = vpop.f32.mrb[31].mxu0 }
 0x61a   : > { %v3739_v21 = vpack.c.bf16 %v3422_v15, %v3419_v51  ;;  %4995 = vmatpush3.bf16.msra.mxu0 %v5232_v46 }
 0x61b   : > { %5004 = vmatprep.subr.bf16.mxu0 %v5233_v28 }
 0x61c   : > { %4988 = vmatprep.mubr.msk.bf16.mxu0 %vm812_vm0, %v3739_v21 }
 0x61d   : > { %4989 = vmatmul.mubr.msk.bf16.gmra.mrb[44].mxu0 %vm812_vm0, %v3740_v1 }
 0x638   : > { %v4946_v62 = vpop.f32.mrb[32].mxu0 }
 0x639   : > { %v3605_v18 = vpop.f32.mrb[33].mxu0 }
 0x63a   : > { %v4947_v57 = vpop.f32.mrb[34].mxu0 }
 0x63b   : > { %v3746_v8 = vpack.c.bf16 %v4947_v57, %v4946_v62  ;;  %v3608_v3 = vpop.f32.mrb[35].mxu0 }
 0x63c   : > { %v3745_v34 = vpack.c.bf16 %v3608_v3, %v3605_v18 }
 0x63e   : > { %4996 = vmatprep.mubr.msk.bf16.mxu0 %vm812_vm0, %v3745_v34 }
 0x63f   : > { %4997 = vmatmul.mubr.msk.bf16.vlgmr.msra.gmra.mrb[40].mxu0 %vm812_vm0, %v3746_v8 }
 0x640   : > { %5005 = vmatpush3.bf16.msra.mxu0 %v5233_v28 }
 0x641   : > { %5006 = vmatprep.subr.bf16.mxu0 %v5234_v27 }
 0x644   : > { %5007 = vmatpush3.bf16.msra.mxu0 %v5234_v27 }
 0x64c   : > { %v4950_v63 = vpop.f32.mrb[36].mxu0 }
 0x64d   : > { %v3621_v32 = vpop.f32.mrb[37].mxu0 }
 0x64e   : > { %v4951_v42 = vpop.f32.mrb[38].mxu0 }
 0x64f   : > { %v3748_v14 = vpack.c.bf16 %v4951_v42, %v4950_v63  ;;  %v3624_v23 = vpop.f32.mrb[39].mxu0 }
 0x650   : > { %v3747_v52 = vpack.c.bf16 %v3624_v23, %v3621_v32 }
 0x652   : > { %5000 = vmatprep.mubr.msk.bf16.mxu0 %vm812_vm0, %v3747_v52 }
 0x653   : > { %5001 = vmatmul.mubr.msk.bf16.gmra.mrb[44].mxu0 %vm812_vm0, %v3748_v14 }
 0x654   : > { %v4962_v9 = vpop.f32.mrb[48].mxu1 }
 0x655   : > { %v3706_v20 = vpop.f32.mrb[49].mxu1 }
 0x656   : > { %v4963_v35 = vpop.f32.mrb[50].mxu1 }
 0x657   : > { %v3750_v41 = vpack.c.bf16 %v4963_v35, %v4962_v9  ;;  %v3709_v7 = vpop.f32.mrb[51].mxu1 }
 0x658   : > { %v3749_v54 = vpack.c.bf16 %v3709_v7, %v3706_v20 }
 0x65a   : > { %5008 = vmatprep.mubr.msk.bf16.mxu0 %vm812_vm0, %v3749_v54 }
 0x65b   : > { %5009 = vmatmul.mubr.msk.bf16.vlgmr.msra.gmra.mrb[40].mxu0 %vm812_vm0, %v3750_v41 }
 0x65c   : > { %v4966_v26 = vpop.f32.mrb[52].mxu1 }
 0x65d   : > { %v3722_v16 = vpop.f32.mrb[53].mxu1 }
 0x65e   : > { %v4967_v40 = vpop.f32.mrb[54].mxu1 }
 0x65f   : > { %v3752_v10 = vpack.c.bf16 %v4967_v40, %v4966_v26  ;;  %v3725_v4 = vpop.f32.mrb[55].mxu1 }
 0x660   : > { %v3751_v49 = vpack.c.bf16 %v3725_v4, %v3722_v16 }
 0x662   : > { %5012 = vmatprep.mubr.msk.bf16.mxu0 %vm812_vm0, %v3751_v49 }
 0x663   : > { %5013 = vmatmul.mubr.msk.bf16.gmra.mrb[44].mxu0 %vm812_vm0, %v3752_v10 }
 0x72e   : > { %v5010_v45 = vpop.f32.mrb[40].mxu0 }
 0x72f   : > { %v4151_v19 = vadd.f32 %v5010_v45, %v4143_v39  ;;  %v4102_v25 = vpop.f32.mrb[41].mxu0 }
 0x730   : > { %v5011_v5 = vpop.f32.mrb[42].mxu0  ;;  %v4149_v55 = vadd.f32 %v4141_v36, %v4102_v25 }
 0x731   : > { %v4152_v24 = vadd.f32 %v5011_v5, %v4144_v48  ;;  %4161 = vadd.xlane.f32.xlu1 %v4151_v19  ;;  %v4105_v12 = vpop.f32.mrb[43].mxu0 }
 0x732   : > { %v4150_v13 = vadd.f32 %v4142_v50, %v4105_v12 }
 0x733   : > { %4163 = vadd.xlane.f32.xlu0 %v4152_v24 }
 0x735   : > { %4157 = vadd.xlane.f32.xlu1 %v4149_v55 }
 0x736   : > { %v5014_v53 = vpop.f32.mrb[44].mxu0 }
 0x737   : > { %4159 = vadd.xlane.f32.xlu0 %v4150_v13  ;;  %v4118_v0 = vpop.f32.mrb[45].mxu0  ;;  %v4155_v56 = vadd.f32 %v5014_v53, %v4147_v30  ;;  %v4595_v53 = vld [vmem:[%s8043_s8] ss:$0 sm:$0xff] }
 0x738   : > { %v4153_v60 = vadd.f32 %v4145_v22, %v4118_v0  ;;  %v5015_v17 = vpop.f32.mrb[46].mxu0 }
 0x739   : > { %v4121_v29 = vpop.f32.mrb[47].mxu0  ;;  %v4156_v58 = vadd.f32 %v5015_v17, %v4148_v47 }
 0x73a   : > { %v4154_v33 = vadd.f32 %v4146_v44, %v4121_v29  ;;  %4165 = vadd.xlane.f32.xlu1 %v4153_v60  ;;  %v4596_v29 = vld [vmem:[%s8044_s9] ss:$0 sm:$0xff] }
 0x73c   : > { %4167 = vadd.xlane.f32.xlu0 %v4154_v33 }
 0x73e   : > { %4169 = vadd.xlane.f32.xlu1 %v4155_v56 }
 0x740   : > { %4171 = vadd.xlane.f32.xlu0 %v4156_v58 }
 0x7be   : > { %v4162_v61 = vpop.xlane.xlu1 %4161 }
 0x7bf   : > { %v4176_v31 = vmul.f32 0.0078125, %v4162_v61 }
 0x7c0   : > { %v4164_v59 = vpop.xlane.xlu0 %4163 }
 0x7c1   : > { %v7918_v38 = vsub.f32 %v4151_v19, %v4176_v31  ;;  %v4177_v37 = vmul.f32 0.0078125, %v4164_v59 }
 0x7c2   : > { %v4158_v6 = vpop.xlane.xlu1 %4157 }
 0x7c3   : > { %v7920_v2 = vsub.f32 %v4152_v24, %v4177_v37  ;;  %v4174_v46 = vmul.f32 0.0078125, %v4158_v6  ;;  %v4192_v11 = vmul.f32 %v7918_v38, %v7918_v38 }
 0x7c4   : > { %v4160_v51 = vpop.xlane.xlu0 %4159 }
 0x7c5   : > { %v7924_v28 = vsub.f32 %v4149_v55, %v4174_v46  ;;  %v4175_v43 = vmul.f32 0.0078125, %v4160_v51  ;;  %4202 = vadd.xlane.f32.xlu1 %v4192_v11  ;;  %v4193_v1 = vmul.f32 %v7920_v2, %v7920_v2 }
 0x7c7   : > { %v7928_v15 = vsub.f32 %v4150_v13, %v4175_v43  ;;  %4204 = vadd.xlane.f32.xlu0 %v4193_v1  ;;  %v4166_v21 = vpop.xlane.xlu1 %4165  ;;  %v4190_v62 = vmul.f32 %v7924_v28, %v7924_v28 }
 0x7c8   : > { %v4178_v18 = vmul.f32 0.0078125, %v4166_v21 }
 0x7c9   : > { %v4168_v57 = vpop.xlane.xlu0 %4167  ;;  %4198 = vadd.xlane.f32.xlu1 %v4190_v62  ;;  %v4191_v8 = vmul.f32 %v7928_v15, %v7928_v15 }
 0x7ca   : > { %v7934_v3 = vsub.f32 %v4153_v60, %v4178_v18  ;;  %v4179_v34 = vmul.f32 0.0078125, %v4168_v57 }
 0x7cb   : > { %4200 = vadd.xlane.f32.xlu0 %v4191_v8  ;;  %v4170_v27 = vpop.xlane.xlu1 %4169 }
 0x7cc   : > { %v7936_v63 = vsub.f32 %v4154_v33, %v4179_v34  ;;  %v4180_v32 = vmul.f32 0.0078125, %v4170_v27  ;;  %v4194_v42 = vmul.f32 %v7934_v3, %v7934_v3 }
 0x7cd   : > { %v4172_v14 = vpop.xlane.xlu0 %4171 }
 0x7ce   : > { %v7940_v23 = vsub.f32 %v4155_v56, %v4180_v32  ;;  %v4181_v52 = vmul.f32 0.0078125, %v4172_v14  ;;  %4206 = vadd.xlane.f32.xlu1 %v4194_v42  ;;  %v4195_v9 = vmul.f32 %v7936_v63, %v7936_v63 }
 0x7d0   : > { %v7944_v20 = vsub.f32 %v4156_v58, %v4181_v52  ;;  %4208 = vadd.xlane.f32.xlu0 %v4195_v9  ;;  %v4196_v35 = vmul.f32 %v7940_v23, %v7940_v23 }
 0x7d2   : > { %4210 = vadd.xlane.f32.xlu1 %v4196_v35  ;;  %v4197_v41 = vmul.f32 %v7944_v20, %v7944_v20 }
 0x7d4   : > { %4212 = vadd.xlane.f32.xlu0 %v4197_v41 }
 0x852   : > { %v4203_v7 = vpop.xlane.xlu1 %4202 }
 0x853   : > { %v4216_v54 = vmul.f32 0.0078125, %v4203_v7 }
 0x854   : > { %v4205_v26 = vpop.xlane.xlu0 %4204 }
 0x855   : > { %v4224_v16 = vadd.f32 1e-05, %v4216_v54  ;;  %v4217_v40 = vmul.f32 0.0078125, %v4205_v26 }
 0x856   : > { %v4199_v10 = vpop.xlane.xlu1 %4198 }
 0x857   : > { %5363 = vrsqrt.f32 %v4224_v16  ;;  %v4225_v4 = vadd.f32 1e-05, %v4217_v40  ;;  %v4214_v49 = vmul.f32 0.0078125, %v4199_v10 }
 0x858   : > { %v4201_v39 = vpop.xlane.xlu0 %4200 }
 0x859   : > { %5365 = vrsqrt.f32 %v4225_v4  ;;  %v4222_v45 = vadd.f32 1e-05, %v4214_v49  ;;  %v4215_v48 = vmul.f32 0.0078125, %v4201_v39 }
 0x85b   : > { %5367 = vrsqrt.f32 %v4222_v45  ;;  %v4223_v19 = vadd.f32 1e-05, %v4215_v48  ;;  %v4207_v25 = vpop.xlane.xlu1 %4206 }
 0x85c   : > { %v4218_v36 = vmul.f32 0.0078125, %v4207_v25 }
 0x85d   : > { %5369 = vrsqrt.f32 %v4223_v19  ;;  %v4209_v5 = vpop.xlane.xlu0 %4208 }
 0x85e   : > { %v4226_v24 = vadd.f32 1e-05, %v4218_v36  ;;  %v4219_v12 = vmul.f32 0.0078125, %v4209_v5 }
 0x85f   : > { %v4211_v50 = vpop.xlane.xlu1 %4210 }
 0x860   : > { %5371 = vrsqrt.f32 %v4226_v24  ;;  %v4227_v55 = vadd.f32 1e-05, %v4219_v12  ;;  %v4220_v13 = vmul.f32 0.0078125, %v4211_v50 }
 0x861   : > { %v5364_v22 = vpop.eup %5363  ;;  %v4213_v0 = vpop.xlane.xlu0 %4212 }
 0x862   : > { %v4240_v44 = vmul.f32 %v5364_v22, %v7918_v38  ;;  %5373 = vrsqrt.f32 %v4227_v55  ;;  %v4228_v60 = vadd.f32 1e-05, %v4220_v13  ;;  %v4221_v17 = vmul.f32 0.0078125, %v4213_v0 }
 0x863   : > { %v5366_v30 = vpop.eup %5365 }
 0x864   : > { %v4255_v33 = vmul.f32 %v4595_v53, %v4240_v44  ;;  %v4241_v47 = vmul.f32 %v5366_v30, %v7920_v2  ;;  %5375 = vrsqrt.f32 %v4228_v60  ;;  %v4229_v56 = vadd.f32 1e-05, %v4221_v17 }
 0x865   : > { %v5368_v58 = vpop.eup %5367 }
 0x866   : > { %v4270_v61 = vadd.f32 %v4596_v29, %v4255_v33  ;;  %v4256_v31 = vmul.f32 %v4595_v53, %v4241_v47  ;;  %v4238_v59 = vmul.f32 %v5368_v58, %v7924_v28  ;;  %5377 = vrsqrt.f32 %v4229_v56 }
 0x867   : > { %v5370_v38 = vpop.eup %5369 }
 0x868   : > { %4278 = vst [vmem:[%s7962_s28 + $0x10] sm:$0xff] %v4270_v61  ;;  %v4271_v37 = vadd.f32 %v4596_v29, %v4256_v31  ;;  %v4253_v6 = vmul.f32 %v4595_v53, %v4238_v59  ;;  %v4239_v2 = vmul.f32 %v5370_v38, %v7928_v15 }
 0x86a   : > { %v5372_v46 = vpop.eup %5371  ;;  %4279 = vst [vmem:[%s7962_s28 + $0x18] sm:$0xff] %v4271_v37  ;;  %v4268_v11 = vadd.f32 %v4596_v29, %v4253_v6  ;;  %v4254_v51 = vmul.f32 %v4595_v53, %v4239_v2 }
 0x86b   : > { %v4242_v28 = vmul.f32 %v5372_v46, %v7934_v3 }
 0x86c   : > { %v5374_v43 = vpop.eup %5373  ;;  %4276 = vst [vmem:[%s7962_s28] sm:$0xff] %v4268_v11  ;;  %v4269_v1 = vadd.f32 %v4596_v29, %v4254_v51 }
 0x86d   : > { %v4257_v21 = vmul.f32 %v4595_v53, %v4242_v28  ;;  %v4243_v62 = vmul.f32 %v5374_v43, %v7936_v63 }
 0x86e   : > { %v5376_v18 = vpop.eup %5375  ;;  %4277 = vst [vmem:[%s7962_s28 + $0x8] sm:$0xff] %v4269_v1 }
 0x86f   : > { %v4272_v15 = vadd.f32 %v4596_v29, %v4257_v21  ;;  %v4258_v57 = vmul.f32 %v4595_v53, %v4243_v62  ;;  %v4244_v8 = vmul.f32 %v5376_v18, %v7940_v23 }
 0x870   : > { %v5378_v34 = vpop.eup %5377 }
 0x871   : > { %4280 = vst [vmem:[%s7962_s28 + $0x20] sm:$0xff] %v4272_v15  ;;  %v4273_v3 = vadd.f32 %v4596_v29, %v4258_v57  ;;  %v4259_v27 = vmul.f32 %v4595_v53, %v4244_v8  ;;  %v4245_v32 = vmul.f32 %v5378_v34, %v7944_v20 }
 0x873   : > { %4281 = vst [vmem:[%s7962_s28 + $0x28] sm:$0xff] %v4273_v3  ;;  %v4274_v63 = vadd.f32 %v4596_v29, %v4259_v27  ;;  %v4260_v42 = vmul.f32 %v4595_v53, %v4245_v32 }
 0x875   : > { %4282 = vst [vmem:[%s7962_s28 + $0x30] sm:$0xff] %v4274_v63  ;;  %v4275_v14 = vadd.f32 %v4596_v29, %v4260_v42 }
 0x877   : > { %4283 = vst [vmem:[%s7962_s28 + $0x38] sm:$0xff] %v4275_v14 }
 0x878   : > { %5415 = shalt.err (!%p5412_p5)
}
 0x879   : > { %s5416_s17 = scalar_lea.hbm %s7980_s18, 1024  ;;  %s5420_s27 = scalar_lea.hbm %s8346_s22, 2048 }
 0x87a   : > { %p5417_p6 = scmp.ne.s32.totalorder %s7980_s18, %s5416_s17  ;;  %p5421_p10 = scmp.lt.u32.totalorder %s7980_s18, %s8346_s22 }
 0x87b   : > { %p5422_p11 = scmp.lt.u32.totalorder %s5420_s27, %s5416_s17  ;;  %p5424_p13 = scmp.lt.u32.totalorder %s5416_s17, %s7980_s18 }
 0x87c   : > { %p5418_p7 = pnand %p5417_p6, %p5598_p4 }
 0x87d   : > { %p5423_p12 = por %p5422_p11, %p5421_p10 }
 0x87e   : > { %p5419_p9 = pneg %p5418_p7 }
 0x87f   : > { %p5425_p0 = por %p5424_p13, %p5423_p12 }
 0x881   : > { %p5426_p1 = pnand %p5425_p0, %p5419_p9 }
 0x883   : > { %5429 = shalt.err (!%p5426_p1)
}
 0x884   : > { %s5502_s24 = smov 128  }
 0x885   : > { %5088 = dma.vmem_to_hbm [thread:$0]  (%p5598_p4), %s7983_s3, 1024, %s7980_s18, %s7988_s10, %s5502_s24, %s5502_s24, %s8149_s5  }
 0x886 PF: > { %s8347_s29 = sld [smem:[#allocation8_spill]]  ;;  %s8348_s30 = sld [smem:[#allocation5_spill]] }
 0x88c   : > { %p5094_p2 = scmp.ge.s32.totalorder %s8347_s29, 2  ;;  %s4315_s12 = sand.u32 1, %s8348_s30  }
 0x88d   : > { %s4316_s21 = scalar_lea.sflag [#allocation3], %s4315_s12 }
 0x88e   : > { %p5091_p3 = pnand %p5094_p2, %p5605_p8 }
 0x890   : > { %5455 = dma.done.wait (!%p5091_p3), %s4316_s21, 1024  }
 0x891   : > { %5457 = vsyncadd (!%p5091_p3), %s4316_s21, 4294966272  ;;  %s23_s18 = sadd.s32 1, %s8347_s29   ;;  %s8350_s23 = sld [smem:[#allocation6_spill]] }
 0x892   : > { %p20_p5 = scmp.ge.s32.totalorder %s23_s18, 4   ;;  %s8351_s15 = sld [smem:[#allocation11_spill]] }
 0x893   : > { %s8352_s16 = sld [smem:[#allocation7_spill]]  ;;  %s8353_s17 = sld [smem:[#allocation9_spill]] }
 0x894   : > { %s8354_s13 = smov %s5464_s14  ;;  %22 = sbr.rel (!%p20_p5) target bundleno = 9 (0x9), region = 108 }
 0x897   : > { %s8355_s14 = smov %s8350_s23 }
 0x89b   :  { %4321 = vsyncpa [#allocation3], 1 }
 0x89c   :  { %4323 = vsyncpa [#allocation3 + $0x1], 1 }

</bundles_post_ra>
